<compile_context>
chip_gen: v5e
topology: v5e:2x2
jax: 0.10.0
libtpu: 0.0.40
codegen_flags: <defaults>
</compile_context>

<pallas_src>
import functools

import numpy as np

import jax
import jax.numpy as jnp
from jax.experimental import pallas as pl
from jax.experimental.pallas import tpu as pltpu

# Matmul operand dtype (accumulation is always f32 via preferred_element_type).
COMPUTE_DTYPE = jnp.bfloat16

# Static geometry for 64x64 inputs (Network.compute_fc_size(4, 64, 64) == 1024).
C_IN, H_IN = 4, 64
K1, S1, OC1, OH1 = 8, 4, 32, 15          # conv1: 64 -> 15
K2, S2, OC2, OH2 = 4, 2, 64, 6           # conv2: 15 -> 6
K3, S3, OC3, OH3 = 3, 1, 64, 4           # conv3: 6  -> 4
FC_H = 512
N_FEAT = OC3 * OH3 * OH3                 # 1024


# ---------------------------------------------------------------------------
# The fused kernel: one grid step == one sample, everything stays in VMEM.
# ---------------------------------------------------------------------------
def _fused_net_kernel(n_actions,
                      p1_ref, w1_ref, b1_ref,
                      g2_ref, w2_ref, b2_ref,
                      g3_ref, w3_ref, b3_ref,
                      wc2_ref, bc_ref,
                      wav_ref, bav_ref,
                      q_ref):
    f32 = jnp.float32
    cd = COMPUTE_DTYPE

    # ---- conv1: im2col patches [225,256] @ W1 [256,32] + b1, ReLU ----------
    p1 = p1_ref[0]                                               # (225, 256)
    y1 = jnp.dot(p1, w1_ref[...], preferred_element_type=f32)
    y1 = jnp.maximum(y1 + b1_ref[...].astype(f32), 0.0).astype(cd)   # (225, 32)

    # ---- conv2 (k=4, s=2): sum over 16 taps of (G2_t @ Y1) @ W2_t ----------
    acc2 = jnp.zeros((OH2 * OH2, OC2), f32)                      # (36, 64)
    for t in range(K2 * K2):
        g = jnp.dot(g2_ref[t], y1, preferred_element_type=f32).astype(cd)
        acc2 = acc2 + jnp.dot(g, w2_ref[t], preferred_element_type=f32)
    y2 = jnp.maximum(acc2 + b2_ref[...].astype(f32), 0.0).astype(cd)  # (36, 64)

    # ---- conv3 (k=3, s=1): sum over 9 taps ---------------------------------
    acc3 = jnp.zeros((OH3 * OH3, OC3), f32)                      # (16, 64)
    for t in range(K3 * K3):
        g = jnp.dot(g3_ref[t], y2, preferred_element_type=f32).astype(cd)
        acc3 = acc3 + jnp.dot(g, w3_ref[t], preferred_element_type=f32)
    y3 = jnp.maximum(acc3 + b3_ref[...].astype(f32), 0.0).astype(cd)  # (16, 64)

    # ---- flatten + fc_common (no activation, matching the reference) -------
    # Wc2 is pre-arranged so that row r / column-block r*512:(r+1)*512 of
    # (Y3 @ Wc2) equals Y3[r, :] @ Wc_r; summing the 16 diagonal blocks is
    # exactly fc_common(flatten(Y3)) — no in-kernel reshape needed.
    h2 = jnp.dot(y3, wc2_ref[...], preferred_element_type=f32)   # (16, 8192)
    h = bc_ref[...].astype(f32)                                  # (1, 512)
    for r in range(OH3 * OH3):
        h = h + h2[r:r + 1, r * FC_H:(r + 1) * FC_H]

    # ---- fused advantage|value head + dueling combine ----------------------
    av = jnp.dot(h.astype(cd), wav_ref[...], preferred_element_type=f32)
    av = av + bav_ref[...].astype(f32)                           # (1, A + 1)
    adv = av[:, :n_actions]
    val = av[:, n_actions:n_actions + 1]
    q = val + adv - jnp.mean(adv, axis=1, keepdims=True)
    q_ref[...] = q[None].astype(q_ref.dtype)                     # (1, 1, A)


# ---------------------------------------------------------------------------
# pallas_call wrapper
# ---------------------------------------------------------------------------
def _fused_call(patches, kp):
    B = patches.shape[0]
    A = kp["w_av"].shape[1] - 1

    def const_spec(a):
        nd = a.ndim
        return pl.BlockSpec(a.shape, lambda b, _nd=nd: (0,) * _nd)

    names = ["w1", "b1", "g2", "w2", "b2", "g3", "w3", "b3",
             "wc2", "bc", "w_av", "b_av"]
    weights = [kp[n] for n in names]

    flops_per_sample = 2 * (
        OH1 * OH1 * (K1 * K1 * C_IN) * OC1
        + K2 * K2 * (OH2 * OH2 * OH1 * OH1 * OC1 + OH2 * OH2 * OC1 * OC2)
        + K3 * K3 * (OH3 * OH3 * OH2 * OH2 * OC2 + OH3 * OH3 * OC2 * OC3)
        + OH3 * OH3 * OC3 * OH3 * OH3 * FC_H
        + FC_H * (A + 1))
    weight_bytes = sum(int(np.prod(w.shape)) * w.dtype.itemsize for w in weights)
    bytes_per_sample = (patches.shape[1] * patches.shape[2]
                        * patches.dtype.itemsize + 4 * A)
    cost = pl.CostEstimate(flops=B * flops_per_sample, transcendentals=0,
                           bytes_accessed=B * bytes_per_sample + weight_bytes)

    return pl.pallas_call(
        functools.partial(_fused_net_kernel, A),
        out_shape=jax.ShapeDtypeStruct((B, 1, A), jnp.float32),
        grid=(B,),
        in_specs=[pl.BlockSpec((1, OH1 * OH1, K1 * K1 * C_IN),
                               lambda b: (b, 0, 0))]
                 + [const_spec(w) for w in weights],
        out_specs=pl.BlockSpec((1, 1, A), lambda b: (b, 0, 0)),
        compiler_params=pltpu.CompilerParams(
            dimension_semantics=("parallel",)),
        cost_estimate=cost,
    )(patches, *weights)


# ---------------------------------------------------------------------------
# Wrapper-side conv1 im2col (pure data movement, fused by XLA)
# ---------------------------------------------------------------------------
def _conv1_im2col(state_t):
    """[B, 4, 64, 64] NCHW -> patches [B, 225, 256], column order (i, j, c)."""
    x = jnp.transpose(state_t, (0, 2, 3, 1)).astype(COMPUTE_DTYPE)   # NHWC
    B = x.shape[0]
    lim = S1 * (OH1 - 1) + 1
    cols = []
    for i in range(K1):
        for j in range(K1):
            cols.append(x[:, i:i + lim:S1, j:j + lim:S1, :])          # [B,15,15,4]
    p = jnp.stack(cols, axis=3)                                       # [B,15,15,64,4]
    return p.reshape(B, OH1 * OH1, K1 * K1 * C_IN)


# ---------------------------------------------------------------------------
# Forward pass (matches Network.forward semantics)
# ---------------------------------------------------------------------------
@jax.jit
def network_forward(kp, state_t):
    patches = _conv1_im2col(state_t)
    q = _fused_call(patches, kp)          # (B, 1, A)
    return q[:, 0, :]                     # (B, A) float32


# ---------------------------------------------------------------------------
# Parameters: PyTorch layout + one-time permutation into kernel layout
# ---------------------------------------------------------------------------
def init_params(key, n_actions):
    """Parameters in PyTorch layout (Conv2d [OC,C,KH,KW]; Linear [out,in])."""
    def uni(k, shape, fan_in):
        bound = 1.0 / jnp.sqrt(jnp.float32(fan_in))
        return jax.random.uniform(k, shape, jnp.float32, -bound, bound)

    ks = jax.random.split(key, 12)
    return {
        "conv1_w": uni(ks[0], (OC1, C_IN, K1, K1), C_IN * K1 * K1),
        "conv1_b": uni(ks[1], (OC1,), C_IN * K1 * K1),
        "conv2_w": uni(ks[2], (OC2, OC1, K2, K2), OC1 * K2 * K2),
        "conv2_b": uni(ks[3], (OC2,), OC1 * K2 * K2),
        "conv3_w": uni(ks[4], (OC3, OC2, K3, K3), OC2 * K3 * K3),
        "conv3_b": uni(ks[5], (OC3,), OC2 * K3 * K3),
        "fc_common_w": uni(ks[6], (FC_H, N_FEAT), N_FEAT),
        "fc_common_b": uni(ks[7], (FC_H,), N_FEAT),
        "fc_adv_w": uni(ks[8], (n_actions, FC_H), FC_H),
        "fc_adv_b": uni(ks[9], (n_actions,), FC_H),
        "fc_val_w": uni(ks[10], (1, FC_H), FC_H),
        "fc_val_b": uni(ks[11], (1,), FC_H),
    }


def _selection(oh_out, k, s, w_in):
    """One-hot gather matrices G[t, r, q]: q = (oh*s+i)*w_in + (ow*s+j)."""
    g = np.zeros((k * k, oh_out * oh_out, w_in * w_in), np.float32)
    for i in range(k):
        for j in range(k):
            for oh in range(oh_out):
                for ow in range(oh_out):
                    q = (oh * s + i) * w_in + (ow * s + j)
                    g[i * k + j, oh * oh_out + ow, q] = 1.0
    return jnp.asarray(g)


def prepare_params(p):
    """One-time permutation of PyTorch-layout weights into kernel layout."""
    cd = COMPUTE_DTYPE

    def conv_taps(w):  # [OC, C, KH, KW] -> [KH*KW, C, OC]
        oc, c, kh, kw = w.shape
        return jnp.transpose(w, (2, 3, 1, 0)).reshape(kh * kw, c, oc)

    w1 = conv_taps(p["conv1_w"]).reshape(K1 * K1 * C_IN, OC1)    # (256, 32)
    w2 = conv_taps(p["conv2_w"])                                 # (16, 32, 64)
    w3 = conv_taps(p["conv3_w"])                                 # (9, 64, 64)

    g2 = _selection(OH2, K2, S2, OH1)                            # (16, 36, 225)
    g3 = _selection(OH3, K3, S3, OH2)                            # (9, 16, 36)

    # feat produced in-kernel: row r = conv3 spatial pos (h*4+w), col c = channel.
    # PyTorch flatten index = c*16 + r, so Wc2[c, r*512 + o] = fc_common_w[o, c*16 + r].
    wc = p["fc_common_w"].reshape(FC_H, OC3, OH3 * OH3)          # [o, c, r]
    wc2 = jnp.transpose(wc, (1, 2, 0)).reshape(OC3, OH3 * OH3 * FC_H)   # (64, 8192)

    # Fused advantage|value head: columns 0..A-1 = advantage, last column = value.
    w_av = jnp.concatenate([p["fc_adv_w"], p["fc_val_w"]], axis=0).T    # (512, A+1)
    b_av = jnp.concatenate([p["fc_adv_b"], p["fc_val_b"]], axis=0)

    return {
        "w1": w1.astype(cd), "b1": p["conv1_b"].reshape(1, -1),
        "g2": g2.astype(cd), "w2": w2.astype(cd), "b2": p["conv2_b"].reshape(1, -1),
        "g3": g3.astype(cd), "w3": w3.astype(cd), "b3": p["conv3_b"].reshape(1, -1),
        "wc2": wc2.astype(cd), "bc": p["fc_common_b"].reshape(1, -1),
        "w_av": w_av.astype(cd), "b_av": b_av.reshape(1, -1),
    }


if __name__ == "__main__":
    n_actions = 6
    key = jax.random.PRNGKey(0)
    k_params, k_input = jax.random.split(key)
    params = init_params(k_params, n_actions)
    kparams = prepare_params(params)
    # The conv stack + fc sizes imply 64x64 spatial input (fc_size = 64*4*4 = 1024),
    # exactly as the PyTorch module's compute_fc_size(4, 64, 64).
    state_t = jax.random.uniform(k_input, (2, 4, 64, 64), jnp.float32)
    q = network_forward(kparams, state_t)
    jax.block_until_ready(q)
    assert q.shape == (2, n_actions) and q.dtype == jnp.float32
    print("KERNEL_OK")
</pallas_src>

<mosaic_0001>
module attributes {stable_mosaic.version = 11 : i64} {
  func.func @_fused_net_kernel(%arg0: i32, %arg1: memref<1x225x256xbf16, #tpu.memory_space<vmem>>, %arg2: memref<256x32xbf16, #tpu.memory_space<vmem>>, %arg3: memref<1x32xf32, #tpu.memory_space<vmem>>, %arg4: memref<16x36x225xbf16, #tpu.memory_space<vmem>>, %arg5: memref<16x32x64xbf16, #tpu.memory_space<vmem>>, %arg6: memref<1x64xf32, #tpu.memory_space<vmem>>, %arg7: memref<9x16x36xbf16, #tpu.memory_space<vmem>>, %arg8: memref<9x64x64xbf16, #tpu.memory_space<vmem>>, %arg9: memref<1x64xf32, #tpu.memory_space<vmem>>, %arg10: memref<64x8192xbf16, #tpu.memory_space<vmem>>, %arg11: memref<1x512xf32, #tpu.memory_space<vmem>>, %arg12: memref<512x7xbf16, #tpu.memory_space<vmem>>, %arg13: memref<1x7xf32, #tpu.memory_space<vmem>>, %arg14: memref<1x1x6xf32, #tpu.memory_space<vmem>>) attributes {dimension_semantics = [#tpu.dimension_semantics<parallel>], iteration_bounds = array<i64: 2>, scalar_prefetch = 0 : i64, scratch_operands = 0 : i64, tpu.core_type = #tpu.core_type<tc>, window_params = [{transform_indices = @transform_0, window_bounds = array<i64: 1, 225, 256>}, {pipeline_mode = #tpu.pipeline_mode<synchronous>, transform_indices = @transform_1, window_bounds = array<i64: 256, 32>}, {pipeline_mode = #tpu.pipeline_mode<synchronous>, transform_indices = @transform_2, window_bounds = array<i64: 1, 32>}, {pipeline_mode = #tpu.pipeline_mode<synchronous>, transform_indices = @transform_3, window_bounds = array<i64: 16, 36, 225>}, {pipeline_mode = #tpu.pipeline_mode<synchronous>, transform_indices = @transform_4, window_bounds = array<i64: 16, 32, 64>}, {pipeline_mode = #tpu.pipeline_mode<synchronous>, transform_indices = @transform_5, window_bounds = array<i64: 1, 64>}, {pipeline_mode = #tpu.pipeline_mode<synchronous>, transform_indices = @transform_6, window_bounds = array<i64: 9, 16, 36>}, {pipeline_mode = #tpu.pipeline_mode<synchronous>, transform_indices = @transform_7, window_bounds = array<i64: 9, 64, 64>}, {pipeline_mode = #tpu.pipeline_mode<synchronous>, transform_indices = @transform_8, window_bounds = array<i64: 1, 64>}, {pipeline_mode = #tpu.pipeline_mode<synchronous>, transform_indices = @transform_9, window_bounds = array<i64: 64, 8192>}, {pipeline_mode = #tpu.pipeline_mode<synchronous>, transform_indices = @transform_10, window_bounds = array<i64: 1, 512>}, {pipeline_mode = #tpu.pipeline_mode<synchronous>, transform_indices = @transform_11, window_bounds = array<i64: 512, 7>}, {pipeline_mode = #tpu.pipeline_mode<synchronous>, transform_indices = @transform_12, window_bounds = array<i64: 1, 7>}, {transform_indices = @transform_13, window_bounds = array<i64: 1, 1, 6>}]} {
    %c0 = arith.constant 0 : index
    %c0_0 = arith.constant 0 : index
    %c0_1 = arith.constant 0 : index
    %0 = vector.load %arg1[%c0, %c0_0, %c0_1] : memref<1x225x256xbf16, #tpu.memory_space<vmem>>, vector<1x225x256xbf16>
    %1 = vector.shape_cast %0 : vector<1x225x256xbf16> to vector<225x256xbf16>
    %c0_2 = arith.constant 0 : index
    %c0_3 = arith.constant 0 : index
    %2 = vector.load %arg2[%c0_2, %c0_3] : memref<256x32xbf16, #tpu.memory_space<vmem>>, vector<256x32xbf16>
    %cst = arith.constant dense<0.000000e+00> : vector<225x32xf32>
    %3 = tpu.matmul %1, %2, %cst {dimension_numbers = #tpu.dot_dimension_numbers<[1], [0], [0], [1], [0, 0, 1, 1], [], []>} : vector<225x256xbf16>, vector<256x32xbf16>, vector<225x32xf32> -> vector<225x32xf32>
    %c0_4 = arith.constant 0 : index
    %c0_5 = arith.constant 0 : index
    %4 = vector.load %arg3[%c0_4, %c0_5] : memref<1x32xf32, #tpu.memory_space<vmem>>, vector<1x32xf32>
    %5 = vector.broadcast %4 : vector<1x32xf32> to vector<225x32xf32>
    %6 = arith.addf %3, %5 : vector<225x32xf32>
    %cst_6 = arith.constant 0.000000e+00 : f32
    %7 = vector.broadcast %cst_6 : f32 to vector<225x32xf32>
    %8 = arith.maximumf %6, %7 : vector<225x32xf32>
    %9 = arith.truncf %8 : vector<225x32xf32> to vector<225x32xbf16>
    %cst_7 = arith.constant 0.000000e+00 : f32
    %10 = vector.broadcast %cst_7 : f32 to vector<36x64xf32>
    %c0_8 = arith.constant 0 : index
    %c0_9 = arith.constant 0 : index
    %c0_10 = arith.constant 0 : index
    %11 = vector.load %arg4[%c0_8, %c0_9, %c0_10] : memref<16x36x225xbf16, #tpu.memory_space<vmem>>, vector<1x36x225xbf16>
    %12 = vector.shape_cast %11 : vector<1x36x225xbf16> to vector<36x225xbf16>
    %cst_11 = arith.constant dense<0.000000e+00> : vector<36x32xf32>
    %13 = tpu.matmul %12, %9, %cst_11 {dimension_numbers = #tpu.dot_dimension_numbers<[1], [0], [0], [1], [0, 0, 1, 1], [], []>} : vector<36x225xbf16>, vector<225x32xbf16>, vector<36x32xf32> -> vector<36x32xf32>
    %14 = arith.truncf %13 : vector<36x32xf32> to vector<36x32xbf16>
    %c0_12 = arith.constant 0 : index
    %c0_13 = arith.constant 0 : index
    %c0_14 = arith.constant 0 : index
    %15 = vector.load %arg5[%c0_12, %c0_13, %c0_14] : memref<16x32x64xbf16, #tpu.memory_space<vmem>>, vector<1x32x64xbf16>
    %16 = vector.shape_cast %15 : vector<1x32x64xbf16> to vector<32x64xbf16>
    %cst_15 = arith.constant dense<0.000000e+00> : vector<36x64xf32>
    %17 = tpu.matmul %14, %16, %cst_15 {dimension_numbers = #tpu.dot_dimension_numbers<[1], [0], [0], [1], [0, 0, 1, 1], [], []>} : vector<36x32xbf16>, vector<32x64xbf16>, vector<36x64xf32> -> vector<36x64xf32>
    %18 = arith.addf %10, %17 : vector<36x64xf32>
    %c1 = arith.constant 1 : index
    %c0_16 = arith.constant 0 : index
    %c0_17 = arith.constant 0 : index
    %19 = vector.load %arg4[%c1, %c0_16, %c0_17] : memref<16x36x225xbf16, #tpu.memory_space<vmem>>, vector<1x36x225xbf16>
    %20 = vector.shape_cast %19 : vector<1x36x225xbf16> to vector<36x225xbf16>
    %cst_18 = arith.constant dense<0.000000e+00> : vector<36x32xf32>
    %21 = tpu.matmul %20, %9, %cst_18 {dimension_numbers = #tpu.dot_dimension_numbers<[1], [0], [0], [1], [0, 0, 1, 1], [], []>} : vector<36x225xbf16>, vector<225x32xbf16>, vector<36x32xf32> -> vector<36x32xf32>
    %22 = arith.truncf %21 : vector<36x32xf32> to vector<36x32xbf16>
    %c1_19 = arith.constant 1 : index
    %c0_20 = arith.constant 0 : index
    %c0_21 = arith.constant 0 : index
    %23 = vector.load %arg5[%c1_19, %c0_20, %c0_21] : memref<16x32x64xbf16, #tpu.memory_space<vmem>>, vector<1x32x64xbf16>
    %24 = vector.shape_cast %23 : vector<1x32x64xbf16> to vector<32x64xbf16>
    %cst_22 = arith.constant dense<0.000000e+00> : vector<36x64xf32>
    %25 = tpu.matmul %22, %24, %cst_22 {dimension_numbers = #tpu.dot_dimension_numbers<[1], [0], [0], [1], [0, 0, 1, 1], [], []>} : vector<36x32xbf16>, vector<32x64xbf16>, vector<36x64xf32> -> vector<36x64xf32>
    %26 = arith.addf %18, %25 : vector<36x64xf32>
    %c2 = arith.constant 2 : index
    %c0_23 = arith.constant 0 : index
    %c0_24 = arith.constant 0 : index
    %27 = vector.load %arg4[%c2, %c0_23, %c0_24] : memref<16x36x225xbf16, #tpu.memory_space<vmem>>, vector<1x36x225xbf16>
    %28 = vector.shape_cast %27 : vector<1x36x225xbf16> to vector<36x225xbf16>
    %cst_25 = arith.constant dense<0.000000e+00> : vector<36x32xf32>
    %29 = tpu.matmul %28, %9, %cst_25 {dimension_numbers = #tpu.dot_dimension_numbers<[1], [0], [0], [1], [0, 0, 1, 1], [], []>} : vector<36x225xbf16>, vector<225x32xbf16>, vector<36x32xf32> -> vector<36x32xf32>
    %30 = arith.truncf %29 : vector<36x32xf32> to vector<36x32xbf16>
    %c2_26 = arith.constant 2 : index
    %c0_27 = arith.constant 0 : index
    %c0_28 = arith.constant 0 : index
    %31 = vector.load %arg5[%c2_26, %c0_27, %c0_28] : memref<16x32x64xbf16, #tpu.memory_space<vmem>>, vector<1x32x64xbf16>
    %32 = vector.shape_cast %31 : vector<1x32x64xbf16> to vector<32x64xbf16>
    %cst_29 = arith.constant dense<0.000000e+00> : vector<36x64xf32>
    %33 = tpu.matmul %30, %32, %cst_29 {dimension_numbers = #tpu.dot_dimension_numbers<[1], [0], [0], [1], [0, 0, 1, 1], [], []>} : vector<36x32xbf16>, vector<32x64xbf16>, vector<36x64xf32> -> vector<36x64xf32>
    %34 = arith.addf %26, %33 : vector<36x64xf32>
    %c3 = arith.constant 3 : index
    %c0_30 = arith.constant 0 : index
    %c0_31 = arith.constant 0 : index
    %35 = vector.load %arg4[%c3, %c0_30, %c0_31] : memref<16x36x225xbf16, #tpu.memory_space<vmem>>, vector<1x36x225xbf16>
    %36 = vector.shape_cast %35 : vector<1x36x225xbf16> to vector<36x225xbf16>
    %cst_32 = arith.constant dense<0.000000e+00> : vector<36x32xf32>
    %37 = tpu.matmul %36, %9, %cst_32 {dimension_numbers = #tpu.dot_dimension_numbers<[1], [0], [0], [1], [0, 0, 1, 1], [], []>} : vector<36x225xbf16>, vector<225x32xbf16>, vector<36x32xf32> -> vector<36x32xf32>
    %38 = arith.truncf %37 : vector<36x32xf32> to vector<36x32xbf16>
    %c3_33 = arith.constant 3 : index
    %c0_34 = arith.constant 0 : index
    %c0_35 = arith.constant 0 : index
    %39 = vector.load %arg5[%c3_33, %c0_34, %c0_35] : memref<16x32x64xbf16, #tpu.memory_space<vmem>>, vector<1x32x64xbf16>
    %40 = vector.shape_cast %39 : vector<1x32x64xbf16> to vector<32x64xbf16>
    %cst_36 = arith.constant dense<0.000000e+00> : vector<36x64xf32>
    %41 = tpu.matmul %38, %40, %cst_36 {dimension_numbers = #tpu.dot_dimension_numbers<[1], [0], [0], [1], [0, 0, 1, 1], [], []>} : vector<36x32xbf16>, vector<32x64xbf16>, vector<36x64xf32> -> vector<36x64xf32>
    %42 = arith.addf %34, %41 : vector<36x64xf32>
    %c4 = arith.constant 4 : index
    %c0_37 = arith.constant 0 : index
    %c0_38 = arith.constant 0 : index
    %43 = vector.load %arg4[%c4, %c0_37, %c0_38] : memref<16x36x225xbf16, #tpu.memory_space<vmem>>, vector<1x36x225xbf16>
    %44 = vector.shape_cast %43 : vector<1x36x225xbf16> to vector<36x225xbf16>
    %cst_39 = arith.constant dense<0.000000e+00> : vector<36x32xf32>
    %45 = tpu.matmul %44, %9, %cst_39 {dimension_numbers = #tpu.dot_dimension_numbers<[1], [0], [0], [1], [0, 0, 1, 1], [], []>} : vector<36x225xbf16>, vector<225x32xbf16>, vector<36x32xf32> -> vector<36x32xf32>
    %46 = arith.truncf %45 : vector<36x32xf32> to vector<36x32xbf16>
    %c4_40 = arith.constant 4 : index
    %c0_41 = arith.constant 0 : index
    %c0_42 = arith.constant 0 : index
    %47 = vector.load %arg5[%c4_40, %c0_41, %c0_42] : memref<16x32x64xbf16, #tpu.memory_space<vmem>>, vector<1x32x64xbf16>
    %48 = vector.shape_cast %47 : vector<1x32x64xbf16> to vector<32x64xbf16>
    %cst_43 = arith.constant dense<0.000000e+00> : vector<36x64xf32>
    %49 = tpu.matmul %46, %48, %cst_43 {dimension_numbers = #tpu.dot_dimension_numbers<[1], [0], [0], [1], [0, 0, 1, 1], [], []>} : vector<36x32xbf16>, vector<32x64xbf16>, vector<36x64xf32> -> vector<36x64xf32>
    %50 = arith.addf %42, %49 : vector<36x64xf32>
    %c5 = arith.constant 5 : index
    %c0_44 = arith.constant 0 : index
    %c0_45 = arith.constant 0 : index
    %51 = vector.load %arg4[%c5, %c0_44, %c0_45] : memref<16x36x225xbf16, #tpu.memory_space<vmem>>, vector<1x36x225xbf16>
    %52 = vector.shape_cast %51 : vector<1x36x225xbf16> to vector<36x225xbf16>
    %cst_46 = arith.constant dense<0.000000e+00> : vector<36x32xf32>
    %53 = tpu.matmul %52, %9, %cst_46 {dimension_numbers = #tpu.dot_dimension_numbers<[1], [0], [0], [1], [0, 0, 1, 1], [], []>} : vector<36x225xbf16>, vector<225x32xbf16>, vector<36x32xf32> -> vector<36x32xf32>
    %54 = arith.truncf %53 : vector<36x32xf32> to vector<36x32xbf16>
    %c5_47 = arith.constant 5 : index
    %c0_48 = arith.constant 0 : index
    %c0_49 = arith.constant 0 : index
    %55 = vector.load %arg5[%c5_47, %c0_48, %c0_49] : memref<16x32x64xbf16, #tpu.memory_space<vmem>>, vector<1x32x64xbf16>
    %56 = vector.shape_cast %55 : vector<1x32x64xbf16> to vector<32x64xbf16>
    %cst_50 = arith.constant dense<0.000000e+00> : vector<36x64xf32>
    %57 = tpu.matmul %54, %56, %cst_50 {dimension_numbers = #tpu.dot_dimension_numbers<[1], [0], [0], [1], [0, 0, 1, 1], [], []>} : vector<36x32xbf16>, vector<32x64xbf16>, vector<36x64xf32> -> vector<36x64xf32>
    %58 = arith.addf %50, %57 : vector<36x64xf32>
    %c6 = arith.constant 6 : index
    %c0_51 = arith.constant 0 : index
    %c0_52 = arith.constant 0 : index
    %59 = vector.load %arg4[%c6, %c0_51, %c0_52] : memref<16x36x225xbf16, #tpu.memory_space<vmem>>, vector<1x36x225xbf16>
    %60 = vector.shape_cast %59 : vector<1x36x225xbf16> to vector<36x225xbf16>
    %cst_53 = arith.constant dense<0.000000e+00> : vector<36x32xf32>
    %61 = tpu.matmul %60, %9, %cst_53 {dimension_numbers = #tpu.dot_dimension_numbers<[1], [0], [0], [1], [0, 0, 1, 1], [], []>} : vector<36x225xbf16>, vector<225x32xbf16>, vector<36x32xf32> -> vector<36x32xf32>
    %62 = arith.truncf %61 : vector<36x32xf32> to vector<36x32xbf16>
    %c6_54 = arith.constant 6 : index
    %c0_55 = arith.constant 0 : index
    %c0_56 = arith.constant 0 : index
    %63 = vector.load %arg5[%c6_54, %c0_55, %c0_56] : memref<16x32x64xbf16, #tpu.memory_space<vmem>>, vector<1x32x64xbf16>
    %64 = vector.shape_cast %63 : vector<1x32x64xbf16> to vector<32x64xbf16>
    %cst_57 = arith.constant dense<0.000000e+00> : vector<36x64xf32>
    %65 = tpu.matmul %62, %64, %cst_57 {dimension_numbers = #tpu.dot_dimension_numbers<[1], [0], [0], [1], [0, 0, 1, 1], [], []>} : vector<36x32xbf16>, vector<32x64xbf16>, vector<36x64xf32> -> vector<36x64xf32>
    %66 = arith.addf %58, %65 : vector<36x64xf32>
    %c7 = arith.constant 7 : index
    %c0_58 = arith.constant 0 : index
    %c0_59 = arith.constant 0 : index
    %67 = vector.load %arg4[%c7, %c0_58, %c0_59] : memref<16x36x225xbf16, #tpu.memory_space<vmem>>, vector<1x36x225xbf16>
    %68 = vector.shape_cast %67 : vector<1x36x225xbf16> to vector<36x225xbf16>
    %cst_60 = arith.constant dense<0.000000e+00> : vector<36x32xf32>
    %69 = tpu.matmul %68, %9, %cst_60 {dimension_numbers = #tpu.dot_dimension_numbers<[1], [0], [0], [1], [0, 0, 1, 1], [], []>} : vector<36x225xbf16>, vector<225x32xbf16>, vector<36x32xf32> -> vector<36x32xf32>
    %70 = arith.truncf %69 : vector<36x32xf32> to vector<36x32xbf16>
    %c7_61 = arith.constant 7 : index
    %c0_62 = arith.constant 0 : index
    %c0_63 = arith.constant 0 : index
    %71 = vector.load %arg5[%c7_61, %c0_62, %c0_63] : memref<16x32x64xbf16, #tpu.memory_space<vmem>>, vector<1x32x64xbf16>
    %72 = vector.shape_cast %71 : vector<1x32x64xbf16> to vector<32x64xbf16>
    %cst_64 = arith.constant dense<0.000000e+00> : vector<36x64xf32>
    %73 = tpu.matmul %70, %72, %cst_64 {dimension_numbers = #tpu.dot_dimension_numbers<[1], [0], [0], [1], [0, 0, 1, 1], [], []>} : vector<36x32xbf16>, vector<32x64xbf16>, vector<36x64xf32> -> vector<36x64xf32>
    %74 = arith.addf %66, %73 : vector<36x64xf32>
    %c8 = arith.constant 8 : index
    %c0_65 = arith.constant 0 : index
    %c0_66 = arith.constant 0 : index
    %75 = vector.load %arg4[%c8, %c0_65, %c0_66] : memref<16x36x225xbf16, #tpu.memory_space<vmem>>, vector<1x36x225xbf16>
    %76 = vector.shape_cast %75 : vector<1x36x225xbf16> to vector<36x225xbf16>
    %cst_67 = arith.constant dense<0.000000e+00> : vector<36x32xf32>
    %77 = tpu.matmul %76, %9, %cst_67 {dimension_numbers = #tpu.dot_dimension_numbers<[1], [0], [0], [1], [0, 0, 1, 1], [], []>} : vector<36x225xbf16>, vector<225x32xbf16>, vector<36x32xf32> -> vector<36x32xf32>
    %78 = arith.truncf %77 : vector<36x32xf32> to vector<36x32xbf16>
    %c8_68 = arith.constant 8 : index
    %c0_69 = arith.constant 0 : index
    %c0_70 = arith.constant 0 : index
    %79 = vector.load %arg5[%c8_68, %c0_69, %c0_70] : memref<16x32x64xbf16, #tpu.memory_space<vmem>>, vector<1x32x64xbf16>
    %80 = vector.shape_cast %79 : vector<1x32x64xbf16> to vector<32x64xbf16>
    %cst_71 = arith.constant dense<0.000000e+00> : vector<36x64xf32>
    %81 = tpu.matmul %78, %80, %cst_71 {dimension_numbers = #tpu.dot_dimension_numbers<[1], [0], [0], [1], [0, 0, 1, 1], [], []>} : vector<36x32xbf16>, vector<32x64xbf16>, vector<36x64xf32> -> vector<36x64xf32>
    %82 = arith.addf %74, %81 : vector<36x64xf32>
    %c9 = arith.constant 9 : index
    %c0_72 = arith.constant 0 : index
    %c0_73 = arith.constant 0 : index
    %83 = vector.load %arg4[%c9, %c0_72, %c0_73] : memref<16x36x225xbf16, #tpu.memory_space<vmem>>, vector<1x36x225xbf16>
    %84 = vector.shape_cast %83 : vector<1x36x225xbf16> to vector<36x225xbf16>
    %cst_74 = arith.constant dense<0.000000e+00> : vector<36x32xf32>
    %85 = tpu.matmul %84, %9, %cst_74 {dimension_numbers = #tpu.dot_dimension_numbers<[1], [0], [0], [1], [0, 0, 1, 1], [], []>} : vector<36x225xbf16>, vector<225x32xbf16>, vector<36x32xf32> -> vector<36x32xf32>
    %86 = arith.truncf %85 : vector<36x32xf32> to vector<36x32xbf16>
    %c9_75 = arith.constant 9 : index
    %c0_76 = arith.constant 0 : index
    %c0_77 = arith.constant 0 : index
    %87 = vector.load %arg5[%c9_75, %c0_76, %c0_77] : memref<16x32x64xbf16, #tpu.memory_space<vmem>>, vector<1x32x64xbf16>
    %88 = vector.shape_cast %87 : vector<1x32x64xbf16> to vector<32x64xbf16>
    %cst_78 = arith.constant dense<0.000000e+00> : vector<36x64xf32>
    %89 = tpu.matmul %86, %88, %cst_78 {dimension_numbers = #tpu.dot_dimension_numbers<[1], [0], [0], [1], [0, 0, 1, 1], [], []>} : vector<36x32xbf16>, vector<32x64xbf16>, vector<36x64xf32> -> vector<36x64xf32>
    %90 = arith.addf %82, %89 : vector<36x64xf32>
    %c10 = arith.constant 10 : index
    %c0_79 = arith.constant 0 : index
    %c0_80 = arith.constant 0 : index
    %91 = vector.load %arg4[%c10, %c0_79, %c0_80] : memref<16x36x225xbf16, #tpu.memory_space<vmem>>, vector<1x36x225xbf16>
    %92 = vector.shape_cast %91 : vector<1x36x225xbf16> to vector<36x225xbf16>
    %cst_81 = arith.constant dense<0.000000e+00> : vector<36x32xf32>
    %93 = tpu.matmul %92, %9, %cst_81 {dimension_numbers = #tpu.dot_dimension_numbers<[1], [0], [0], [1], [0, 0, 1, 1], [], []>} : vector<36x225xbf16>, vector<225x32xbf16>, vector<36x32xf32> -> vector<36x32xf32>
    %94 = arith.truncf %93 : vector<36x32xf32> to vector<36x32xbf16>
    %c10_82 = arith.constant 10 : index
    %c0_83 = arith.constant 0 : index
    %c0_84 = arith.constant 0 : index
    %95 = vector.load %arg5[%c10_82, %c0_83, %c0_84] : memref<16x32x64xbf16, #tpu.memory_space<vmem>>, vector<1x32x64xbf16>
    %96 = vector.shape_cast %95 : vector<1x32x64xbf16> to vector<32x64xbf16>
    %cst_85 = arith.constant dense<0.000000e+00> : vector<36x64xf32>
    %97 = tpu.matmul %94, %96, %cst_85 {dimension_numbers = #tpu.dot_dimension_numbers<[1], [0], [0], [1], [0, 0, 1, 1], [], []>} : vector<36x32xbf16>, vector<32x64xbf16>, vector<36x64xf32> -> vector<36x64xf32>
    %98 = arith.addf %90, %97 : vector<36x64xf32>
    %c11 = arith.constant 11 : index
    %c0_86 = arith.constant 0 : index
    %c0_87 = arith.constant 0 : index
    %99 = vector.load %arg4[%c11, %c0_86, %c0_87] : memref<16x36x225xbf16, #tpu.memory_space<vmem>>, vector<1x36x225xbf16>
    %100 = vector.shape_cast %99 : vector<1x36x225xbf16> to vector<36x225xbf16>
    %cst_88 = arith.constant dense<0.000000e+00> : vector<36x32xf32>
    %101 = tpu.matmul %100, %9, %cst_88 {dimension_numbers = #tpu.dot_dimension_numbers<[1], [0], [0], [1], [0, 0, 1, 1], [], []>} : vector<36x225xbf16>, vector<225x32xbf16>, vector<36x32xf32> -> vector<36x32xf32>
    %102 = arith.truncf %101 : vector<36x32xf32> to vector<36x32xbf16>
    %c11_89 = arith.constant 11 : index
    %c0_90 = arith.constant 0 : index
    %c0_91 = arith.constant 0 : index
    %103 = vector.load %arg5[%c11_89, %c0_90, %c0_91] : memref<16x32x64xbf16, #tpu.memory_space<vmem>>, vector<1x32x64xbf16>
    %104 = vector.shape_cast %103 : vector<1x32x64xbf16> to vector<32x64xbf16>
    %cst_92 = arith.constant dense<0.000000e+00> : vector<36x64xf32>
    %105 = tpu.matmul %102, %104, %cst_92 {dimension_numbers = #tpu.dot_dimension_numbers<[1], [0], [0], [1], [0, 0, 1, 1], [], []>} : vector<36x32xbf16>, vector<32x64xbf16>, vector<36x64xf32> -> vector<36x64xf32>
    %106 = arith.addf %98, %105 : vector<36x64xf32>
    %c12 = arith.constant 12 : index
    %c0_93 = arith.constant 0 : index
    %c0_94 = arith.constant 0 : index
    %107 = vector.load %arg4[%c12, %c0_93, %c0_94] : memref<16x36x225xbf16, #tpu.memory_space<vmem>>, vector<1x36x225xbf16>
    %108 = vector.shape_cast %107 : vector<1x36x225xbf16> to vector<36x225xbf16>
    %cst_95 = arith.constant dense<0.000000e+00> : vector<36x32xf32>
    %109 = tpu.matmul %108, %9, %cst_95 {dimension_numbers = #tpu.dot_dimension_numbers<[1], [0], [0], [1], [0, 0, 1, 1], [], []>} : vector<36x225xbf16>, vector<225x32xbf16>, vector<36x32xf32> -> vector<36x32xf32>
    %110 = arith.truncf %109 : vector<36x32xf32> to vector<36x32xbf16>
    %c12_96 = arith.constant 12 : index
    %c0_97 = arith.constant 0 : index
    %c0_98 = arith.constant 0 : index
    %111 = vector.load %arg5[%c12_96, %c0_97, %c0_98] : memref<16x32x64xbf16, #tpu.memory_space<vmem>>, vector<1x32x64xbf16>
    %112 = vector.shape_cast %111 : vector<1x32x64xbf16> to vector<32x64xbf16>
    %cst_99 = arith.constant dense<0.000000e+00> : vector<36x64xf32>
    %113 = tpu.matmul %110, %112, %cst_99 {dimension_numbers = #tpu.dot_dimension_numbers<[1], [0], [0], [1], [0, 0, 1, 1], [], []>} : vector<36x32xbf16>, vector<32x64xbf16>, vector<36x64xf32> -> vector<36x64xf32>
    %114 = arith.addf %106, %113 : vector<36x64xf32>
    %c13 = arith.constant 13 : index
    %c0_100 = arith.constant 0 : index
    %c0_101 = arith.constant 0 : index
    %115 = vector.load %arg4[%c13, %c0_100, %c0_101] : memref<16x36x225xbf16, #tpu.memory_space<vmem>>, vector<1x36x225xbf16>
    %116 = vector.shape_cast %115 : vector<1x36x225xbf16> to vector<36x225xbf16>
    %cst_102 = arith.constant dense<0.000000e+00> : vector<36x32xf32>
    %117 = tpu.matmul %116, %9, %cst_102 {dimension_numbers = #tpu.dot_dimension_numbers<[1], [0], [0], [1], [0, 0, 1, 1], [], []>} : vector<36x225xbf16>, vector<225x32xbf16>, vector<36x32xf32> -> vector<36x32xf32>
    %118 = arith.truncf %117 : vector<36x32xf32> to vector<36x32xbf16>
    %c13_103 = arith.constant 13 : index
    %c0_104 = arith.constant 0 : index
    %c0_105 = arith.constant 0 : index
    %119 = vector.load %arg5[%c13_103, %c0_104, %c0_105] : memref<16x32x64xbf16, #tpu.memory_space<vmem>>, vector<1x32x64xbf16>
    %120 = vector.shape_cast %119 : vector<1x32x64xbf16> to vector<32x64xbf16>
    %cst_106 = arith.constant dense<0.000000e+00> : vector<36x64xf32>
    %121 = tpu.matmul %118, %120, %cst_106 {dimension_numbers = #tpu.dot_dimension_numbers<[1], [0], [0], [1], [0, 0, 1, 1], [], []>} : vector<36x32xbf16>, vector<32x64xbf16>, vector<36x64xf32> -> vector<36x64xf32>
    %122 = arith.addf %114, %121 : vector<36x64xf32>
    %c14 = arith.constant 14 : index
    %c0_107 = arith.constant 0 : index
    %c0_108 = arith.constant 0 : index
    %123 = vector.load %arg4[%c14, %c0_107, %c0_108] : memref<16x36x225xbf16, #tpu.memory_space<vmem>>, vector<1x36x225xbf16>
    %124 = vector.shape_cast %123 : vector<1x36x225xbf16> to vector<36x225xbf16>
    %cst_109 = arith.constant dense<0.000000e+00> : vector<36x32xf32>
    %125 = tpu.matmul %124, %9, %cst_109 {dimension_numbers = #tpu.dot_dimension_numbers<[1], [0], [0], [1], [0, 0, 1, 1], [], []>} : vector<36x225xbf16>, vector<225x32xbf16>, vector<36x32xf32> -> vector<36x32xf32>
    %126 = arith.truncf %125 : vector<36x32xf32> to vector<36x32xbf16>
    %c14_110 = arith.constant 14 : index
    %c0_111 = arith.constant 0 : index
    %c0_112 = arith.constant 0 : index
    %127 = vector.load %arg5[%c14_110, %c0_111, %c0_112] : memref<16x32x64xbf16, #tpu.memory_space<vmem>>, vector<1x32x64xbf16>
    %128 = vector.shape_cast %127 : vector<1x32x64xbf16> to vector<32x64xbf16>
    %cst_113 = arith.constant dense<0.000000e+00> : vector<36x64xf32>
    %129 = tpu.matmul %126, %128, %cst_113 {dimension_numbers = #tpu.dot_dimension_numbers<[1], [0], [0], [1], [0, 0, 1, 1], [], []>} : vector<36x32xbf16>, vector<32x64xbf16>, vector<36x64xf32> -> vector<36x64xf32>
    %130 = arith.addf %122, %129 : vector<36x64xf32>
    %c15 = arith.constant 15 : index
    %c0_114 = arith.constant 0 : index
    %c0_115 = arith.constant 0 : index
    %131 = vector.load %arg4[%c15, %c0_114, %c0_115] : memref<16x36x225xbf16, #tpu.memory_space<vmem>>, vector<1x36x225xbf16>
    %132 = vector.shape_cast %131 : vector<1x36x225xbf16> to vector<36x225xbf16>
    %cst_116 = arith.constant dense<0.000000e+00> : vector<36x32xf32>
    %133 = tpu.matmul %132, %9, %cst_116 {dimension_numbers = #tpu.dot_dimension_numbers<[1], [0], [0], [1], [0, 0, 1, 1], [], []>} : vector<36x225xbf16>, vector<225x32xbf16>, vector<36x32xf32> -> vector<36x32xf32>
    %134 = arith.truncf %133 : vector<36x32xf32> to vector<36x32xbf16>
    %c15_117 = arith.constant 15 : index
    %c0_118 = arith.constant 0 : index
    %c0_119 = arith.constant 0 : index
    %135 = vector.load %arg5[%c15_117, %c0_118, %c0_119] : memref<16x32x64xbf16, #tpu.memory_space<vmem>>, vector<1x32x64xbf16>
    %136 = vector.shape_cast %135 : vector<1x32x64xbf16> to vector<32x64xbf16>
    %cst_120 = arith.constant dense<0.000000e+00> : vector<36x64xf32>
    %137 = tpu.matmul %134, %136, %cst_120 {dimension_numbers = #tpu.dot_dimension_numbers<[1], [0], [0], [1], [0, 0, 1, 1], [], []>} : vector<36x32xbf16>, vector<32x64xbf16>, vector<36x64xf32> -> vector<36x64xf32>
    %138 = arith.addf %130, %137 : vector<36x64xf32>
    %c0_121 = arith.constant 0 : index
    %c0_122 = arith.constant 0 : index
    %139 = vector.load %arg6[%c0_121, %c0_122] : memref<1x64xf32, #tpu.memory_space<vmem>>, vector<1x64xf32>
    %140 = vector.broadcast %139 : vector<1x64xf32> to vector<36x64xf32>
    %141 = arith.addf %138, %140 : vector<36x64xf32>
    %cst_123 = arith.constant 0.000000e+00 : f32
    %142 = vector.broadcast %cst_123 : f32 to vector<36x64xf32>
    %143 = arith.maximumf %141, %142 : vector<36x64xf32>
    %144 = arith.truncf %143 : vector<36x64xf32> to vector<36x64xbf16>
    %cst_124 = arith.constant 0.000000e+00 : f32
    %145 = vector.broadcast %cst_124 : f32 to vector<16x64xf32>
    %c0_125 = arith.constant 0 : index
    %c0_126 = arith.constant 0 : index
    %c0_127 = arith.constant 0 : index
    %146 = vector.load %arg7[%c0_125, %c0_126, %c0_127] : memref<9x16x36xbf16, #tpu.memory_space<vmem>>, vector<1x16x36xbf16>
    %147 = vector.shape_cast %146 : vector<1x16x36xbf16> to vector<16x36xbf16>
    %cst_128 = arith.constant dense<0.000000e+00> : vector<16x64xf32>
    %148 = tpu.matmul %147, %144, %cst_128 {dimension_numbers = #tpu.dot_dimension_numbers<[1], [0], [0], [1], [0, 0, 1, 1], [], []>} : vector<16x36xbf16>, vector<36x64xbf16>, vector<16x64xf32> -> vector<16x64xf32>
    %149 = arith.truncf %148 : vector<16x64xf32> to vector<16x64xbf16>
    %c0_129 = arith.constant 0 : index
    %c0_130 = arith.constant 0 : index
    %c0_131 = arith.constant 0 : index
    %150 = vector.load %arg8[%c0_129, %c0_130, %c0_131] : memref<9x64x64xbf16, #tpu.memory_space<vmem>>, vector<1x64x64xbf16>
    %151 = vector.shape_cast %150 : vector<1x64x64xbf16> to vector<64x64xbf16>
    %cst_132 = arith.constant dense<0.000000e+00> : vector<16x64xf32>
    %152 = tpu.matmul %149, %151, %cst_132 {dimension_numbers = #tpu.dot_dimension_numbers<[1], [0], [0], [1], [0, 0, 1, 1], [], []>} : vector<16x64xbf16>, vector<64x64xbf16>, vector<16x64xf32> -> vector<16x64xf32>
    %153 = arith.addf %145, %152 : vector<16x64xf32>
    %c1_133 = arith.constant 1 : index
    %c0_134 = arith.constant 0 : index
    %c0_135 = arith.constant 0 : index
    %154 = vector.load %arg7[%c1_133, %c0_134, %c0_135] : memref<9x16x36xbf16, #tpu.memory_space<vmem>>, vector<1x16x36xbf16>
    %155 = vector.shape_cast %154 : vector<1x16x36xbf16> to vector<16x36xbf16>
    %cst_136 = arith.constant dense<0.000000e+00> : vector<16x64xf32>
    %156 = tpu.matmul %155, %144, %cst_136 {dimension_numbers = #tpu.dot_dimension_numbers<[1], [0], [0], [1], [0, 0, 1, 1], [], []>} : vector<16x36xbf16>, vector<36x64xbf16>, vector<16x64xf32> -> vector<16x64xf32>
    %157 = arith.truncf %156 : vector<16x64xf32> to vector<16x64xbf16>
    %c1_137 = arith.constant 1 : index
    %c0_138 = arith.constant 0 : index
    %c0_139 = arith.constant 0 : index
    %158 = vector.load %arg8[%c1_137, %c0_138, %c0_139] : memref<9x64x64xbf16, #tpu.memory_space<vmem>>, vector<1x64x64xbf16>
    %159 = vector.shape_cast %158 : vector<1x64x64xbf16> to vector<64x64xbf16>
    %cst_140 = arith.constant dense<0.000000e+00> : vector<16x64xf32>
    %160 = tpu.matmul %157, %159, %cst_140 {dimension_numbers = #tpu.dot_dimension_numbers<[1], [0], [0], [1], [0, 0, 1, 1], [], []>} : vector<16x64xbf16>, vector<64x64xbf16>, vector<16x64xf32> -> vector<16x64xf32>
    %161 = arith.addf %153, %160 : vector<16x64xf32>
    %c2_141 = arith.constant 2 : index
    %c0_142 = arith.constant 0 : index
    %c0_143 = arith.constant 0 : index
    %162 = vector.load %arg7[%c2_141, %c0_142, %c0_143] : memref<9x16x36xbf16, #tpu.memory_space<vmem>>, vector<1x16x36xbf16>
    %163 = vector.shape_cast %162 : vector<1x16x36xbf16> to vector<16x36xbf16>
    %cst_144 = arith.constant dense<0.000000e+00> : vector<16x64xf32>
    %164 = tpu.matmul %163, %144, %cst_144 {dimension_numbers = #tpu.dot_dimension_numbers<[1], [0], [0], [1], [0, 0, 1, 1], [], []>} : vector<16x36xbf16>, vector<36x64xbf16>, vector<16x64xf32> -> vector<16x64xf32>
    %165 = arith.truncf %164 : vector<16x64xf32> to vector<16x64xbf16>
    %c2_145 = arith.constant 2 : index
    %c0_146 = arith.constant 0 : index
    %c0_147 = arith.constant 0 : index
    %166 = vector.load %arg8[%c2_145, %c0_146, %c0_147] : memref<9x64x64xbf16, #tpu.memory_space<vmem>>, vector<1x64x64xbf16>
    %167 = vector.shape_cast %166 : vector<1x64x64xbf16> to vector<64x64xbf16>
    %cst_148 = arith.constant dense<0.000000e+00> : vector<16x64xf32>
    %168 = tpu.matmul %165, %167, %cst_148 {dimension_numbers = #tpu.dot_dimension_numbers<[1], [0], [0], [1], [0, 0, 1, 1], [], []>} : vector<16x64xbf16>, vector<64x64xbf16>, vector<16x64xf32> -> vector<16x64xf32>
    %169 = arith.addf %161, %168 : vector<16x64xf32>
    %c3_149 = arith.constant 3 : index
    %c0_150 = arith.constant 0 : index
    %c0_151 = arith.constant 0 : index
    %170 = vector.load %arg7[%c3_149, %c0_150, %c0_151] : memref<9x16x36xbf16, #tpu.memory_space<vmem>>, vector<1x16x36xbf16>
    %171 = vector.shape_cast %170 : vector<1x16x36xbf16> to vector<16x36xbf16>
    %cst_152 = arith.constant dense<0.000000e+00> : vector<16x64xf32>
    %172 = tpu.matmul %171, %144, %cst_152 {dimension_numbers = #tpu.dot_dimension_numbers<[1], [0], [0], [1], [0, 0, 1, 1], [], []>} : vector<16x36xbf16>, vector<36x64xbf16>, vector<16x64xf32> -> vector<16x64xf32>
    %173 = arith.truncf %172 : vector<16x64xf32> to vector<16x64xbf16>
    %c3_153 = arith.constant 3 : index
    %c0_154 = arith.constant 0 : index
    %c0_155 = arith.constant 0 : index
    %174 = vector.load %arg8[%c3_153, %c0_154, %c0_155] : memref<9x64x64xbf16, #tpu.memory_space<vmem>>, vector<1x64x64xbf16>
    %175 = vector.shape_cast %174 : vector<1x64x64xbf16> to vector<64x64xbf16>
    %cst_156 = arith.constant dense<0.000000e+00> : vector<16x64xf32>
    %176 = tpu.matmul %173, %175, %cst_156 {dimension_numbers = #tpu.dot_dimension_numbers<[1], [0], [0], [1], [0, 0, 1, 1], [], []>} : vector<16x64xbf16>, vector<64x64xbf16>, vector<16x64xf32> -> vector<16x64xf32>
    %177 = arith.addf %169, %176 : vector<16x64xf32>
    %c4_157 = arith.constant 4 : index
    %c0_158 = arith.constant 0 : index
    %c0_159 = arith.constant 0 : index
    %178 = vector.load %arg7[%c4_157, %c0_158, %c0_159] : memref<9x16x36xbf16, #tpu.memory_space<vmem>>, vector<1x16x36xbf16>
    %179 = vector.shape_cast %178 : vector<1x16x36xbf16> to vector<16x36xbf16>
    %cst_160 = arith.constant dense<0.000000e+00> : vector<16x64xf32>
    %180 = tpu.matmul %179, %144, %cst_160 {dimension_numbers = #tpu.dot_dimension_numbers<[1], [0], [0], [1], [0, 0, 1, 1], [], []>} : vector<16x36xbf16>, vector<36x64xbf16>, vector<16x64xf32> -> vector<16x64xf32>
    %181 = arith.truncf %180 : vector<16x64xf32> to vector<16x64xbf16>
    %c4_161 = arith.constant 4 : index
    %c0_162 = arith.constant 0 : index
    %c0_163 = arith.constant 0 : index
    %182 = vector.load %arg8[%c4_161, %c0_162, %c0_163] : memref<9x64x64xbf16, #tpu.memory_space<vmem>>, vector<1x64x64xbf16>
    %183 = vector.shape_cast %182 : vector<1x64x64xbf16> to vector<64x64xbf16>
    %cst_164 = arith.constant dense<0.000000e+00> : vector<16x64xf32>
    %184 = tpu.matmul %181, %183, %cst_164 {dimension_numbers = #tpu.dot_dimension_numbers<[1], [0], [0], [1], [0, 0, 1, 1], [], []>} : vector<16x64xbf16>, vector<64x64xbf16>, vector<16x64xf32> -> vector<16x64xf32>
    %185 = arith.addf %177, %184 : vector<16x64xf32>
    %c5_165 = arith.constant 5 : index
    %c0_166 = arith.constant 0 : index
    %c0_167 = arith.constant 0 : index
    %186 = vector.load %arg7[%c5_165, %c0_166, %c0_167] : memref<9x16x36xbf16, #tpu.memory_space<vmem>>, vector<1x16x36xbf16>
    %187 = vector.shape_cast %186 : vector<1x16x36xbf16> to vector<16x36xbf16>
    %cst_168 = arith.constant dense<0.000000e+00> : vector<16x64xf32>
    %188 = tpu.matmul %187, %144, %cst_168 {dimension_numbers = #tpu.dot_dimension_numbers<[1], [0], [0], [1], [0, 0, 1, 1], [], []>} : vector<16x36xbf16>, vector<36x64xbf16>, vector<16x64xf32> -> vector<16x64xf32>
    %189 = arith.truncf %188 : vector<16x64xf32> to vector<16x64xbf16>
    %c5_169 = arith.constant 5 : index
    %c0_170 = arith.constant 0 : index
    %c0_171 = arith.constant 0 : index
    %190 = vector.load %arg8[%c5_169, %c0_170, %c0_171] : memref<9x64x64xbf16, #tpu.memory_space<vmem>>, vector<1x64x64xbf16>
    %191 = vector.shape_cast %190 : vector<1x64x64xbf16> to vector<64x64xbf16>
    %cst_172 = arith.constant dense<0.000000e+00> : vector<16x64xf32>
    %192 = tpu.matmul %189, %191, %cst_172 {dimension_numbers = #tpu.dot_dimension_numbers<[1], [0], [0], [1], [0, 0, 1, 1], [], []>} : vector<16x64xbf16>, vector<64x64xbf16>, vector<16x64xf32> -> vector<16x64xf32>
    %193 = arith.addf %185, %192 : vector<16x64xf32>
    %c6_173 = arith.constant 6 : index
    %c0_174 = arith.constant 0 : index
    %c0_175 = arith.constant 0 : index
    %194 = vector.load %arg7[%c6_173, %c0_174, %c0_175] : memref<9x16x36xbf16, #tpu.memory_space<vmem>>, vector<1x16x36xbf16>
    %195 = vector.shape_cast %194 : vector<1x16x36xbf16> to vector<16x36xbf16>
    %cst_176 = arith.constant dense<0.000000e+00> : vector<16x64xf32>
    %196 = tpu.matmul %195, %144, %cst_176 {dimension_numbers = #tpu.dot_dimension_numbers<[1], [0], [0], [1], [0, 0, 1, 1], [], []>} : vector<16x36xbf16>, vector<36x64xbf16>, vector<16x64xf32> -> vector<16x64xf32>
    %197 = arith.truncf %196 : vector<16x64xf32> to vector<16x64xbf16>
    %c6_177 = arith.constant 6 : index
    %c0_178 = arith.constant 0 : index
    %c0_179 = arith.constant 0 : index
    %198 = vector.load %arg8[%c6_177, %c0_178, %c0_179] : memref<9x64x64xbf16, #tpu.memory_space<vmem>>, vector<1x64x64xbf16>
    %199 = vector.shape_cast %198 : vector<1x64x64xbf16> to vector<64x64xbf16>
    %cst_180 = arith.constant dense<0.000000e+00> : vector<16x64xf32>
    %200 = tpu.matmul %197, %199, %cst_180 {dimension_numbers = #tpu.dot_dimension_numbers<[1], [0], [0], [1], [0, 0, 1, 1], [], []>} : vector<16x64xbf16>, vector<64x64xbf16>, vector<16x64xf32> -> vector<16x64xf32>
    %201 = arith.addf %193, %200 : vector<16x64xf32>
    %c7_181 = arith.constant 7 : index
    %c0_182 = arith.constant 0 : index
    %c0_183 = arith.constant 0 : index
    %202 = vector.load %arg7[%c7_181, %c0_182, %c0_183] : memref<9x16x36xbf16, #tpu.memory_space<vmem>>, vector<1x16x36xbf16>
    %203 = vector.shape_cast %202 : vector<1x16x36xbf16> to vector<16x36xbf16>
    %cst_184 = arith.constant dense<0.000000e+00> : vector<16x64xf32>
    %204 = tpu.matmul %203, %144, %cst_184 {dimension_numbers = #tpu.dot_dimension_numbers<[1], [0], [0], [1], [0, 0, 1, 1], [], []>} : vector<16x36xbf16>, vector<36x64xbf16>, vector<16x64xf32> -> vector<16x64xf32>
    %205 = arith.truncf %204 : vector<16x64xf32> to vector<16x64xbf16>
    %c7_185 = arith.constant 7 : index
    %c0_186 = arith.constant 0 : index
    %c0_187 = arith.constant 0 : index
    %206 = vector.load %arg8[%c7_185, %c0_186, %c0_187] : memref<9x64x64xbf16, #tpu.memory_space<vmem>>, vector<1x64x64xbf16>
    %207 = vector.shape_cast %206 : vector<1x64x64xbf16> to vector<64x64xbf16>
    %cst_188 = arith.constant dense<0.000000e+00> : vector<16x64xf32>
    %208 = tpu.matmul %205, %207, %cst_188 {dimension_numbers = #tpu.dot_dimension_numbers<[1], [0], [0], [1], [0, 0, 1, 1], [], []>} : vector<16x64xbf16>, vector<64x64xbf16>, vector<16x64xf32> -> vector<16x64xf32>
    %209 = arith.addf %201, %208 : vector<16x64xf32>
    %c8_189 = arith.constant 8 : index
    %c0_190 = arith.constant 0 : index
    %c0_191 = arith.constant 0 : index
    %210 = vector.load %arg7[%c8_189, %c0_190, %c0_191] : memref<9x16x36xbf16, #tpu.memory_space<vmem>>, vector<1x16x36xbf16>
    %211 = vector.shape_cast %210 : vector<1x16x36xbf16> to vector<16x36xbf16>
    %cst_192 = arith.constant dense<0.000000e+00> : vector<16x64xf32>
    %212 = tpu.matmul %211, %144, %cst_192 {dimension_numbers = #tpu.dot_dimension_numbers<[1], [0], [0], [1], [0, 0, 1, 1], [], []>} : vector<16x36xbf16>, vector<36x64xbf16>, vector<16x64xf32> -> vector<16x64xf32>
    %213 = arith.truncf %212 : vector<16x64xf32> to vector<16x64xbf16>
    %c8_193 = arith.constant 8 : index
    %c0_194 = arith.constant 0 : index
    %c0_195 = arith.constant 0 : index
    %214 = vector.load %arg8[%c8_193, %c0_194, %c0_195] : memref<9x64x64xbf16, #tpu.memory_space<vmem>>, vector<1x64x64xbf16>
    %215 = vector.shape_cast %214 : vector<1x64x64xbf16> to vector<64x64xbf16>
    %cst_196 = arith.constant dense<0.000000e+00> : vector<16x64xf32>
    %216 = tpu.matmul %213, %215, %cst_196 {dimension_numbers = #tpu.dot_dimension_numbers<[1], [0], [0], [1], [0, 0, 1, 1], [], []>} : vector<16x64xbf16>, vector<64x64xbf16>, vector<16x64xf32> -> vector<16x64xf32>
    %217 = arith.addf %209, %216 : vector<16x64xf32>
    %c0_197 = arith.constant 0 : index
    %c0_198 = arith.constant 0 : index
    %218 = vector.load %arg9[%c0_197, %c0_198] : memref<1x64xf32, #tpu.memory_space<vmem>>, vector<1x64xf32>
    %219 = vector.broadcast %218 : vector<1x64xf32> to vector<16x64xf32>
    %220 = arith.addf %217, %219 : vector<16x64xf32>
    %cst_199 = arith.constant 0.000000e+00 : f32
    %221 = vector.broadcast %cst_199 : f32 to vector<16x64xf32>
    %222 = arith.maximumf %220, %221 : vector<16x64xf32>
    %223 = arith.truncf %222 : vector<16x64xf32> to vector<16x64xbf16>
    %c0_200 = arith.constant 0 : index
    %c0_201 = arith.constant 0 : index
    %224 = vector.load %arg10[%c0_200, %c0_201] : memref<64x8192xbf16, #tpu.memory_space<vmem>>, vector<64x8192xbf16>
    %cst_202 = arith.constant dense<0.000000e+00> : vector<16x8192xf32>
    %225 = tpu.matmul %223, %224, %cst_202 {dimension_numbers = #tpu.dot_dimension_numbers<[1], [0], [0], [1], [0, 0, 1, 1], [], []>} : vector<16x64xbf16>, vector<64x8192xbf16>, vector<16x8192xf32> -> vector<16x8192xf32>
    %c0_203 = arith.constant 0 : index
    %c0_204 = arith.constant 0 : index
    %226 = vector.load %arg11[%c0_203, %c0_204] : memref<1x512xf32, #tpu.memory_space<vmem>>, vector<1x512xf32>
    %227 = vector.extract_strided_slice %225 {offsets = [0, 0], sizes = [1, 512], strides = [1, 1]} : vector<16x8192xf32> to vector<1x512xf32>
    %228 = arith.addf %226, %227 : vector<1x512xf32>
    %229 = vector.extract_strided_slice %225 {offsets = [1, 512], sizes = [1, 512], strides = [1, 1]} : vector<16x8192xf32> to vector<1x512xf32>
    %230 = arith.addf %228, %229 : vector<1x512xf32>
    %231 = vector.extract_strided_slice %225 {offsets = [2, 1024], sizes = [1, 512], strides = [1, 1]} : vector<16x8192xf32> to vector<1x512xf32>
    %232 = arith.addf %230, %231 : vector<1x512xf32>
    %233 = vector.extract_strided_slice %225 {offsets = [3, 1536], sizes = [1, 512], strides = [1, 1]} : vector<16x8192xf32> to vector<1x512xf32>
    %234 = arith.addf %232, %233 : vector<1x512xf32>
    %235 = vector.extract_strided_slice %225 {offsets = [4, 2048], sizes = [1, 512], strides = [1, 1]} : vector<16x8192xf32> to vector<1x512xf32>
    %236 = arith.addf %234, %235 : vector<1x512xf32>
    %237 = vector.extract_strided_slice %225 {offsets = [5, 2560], sizes = [1, 512], strides = [1, 1]} : vector<16x8192xf32> to vector<1x512xf32>
    %238 = arith.addf %236, %237 : vector<1x512xf32>
    %239 = vector.extract_strided_slice %225 {offsets = [6, 3072], sizes = [1, 512], strides = [1, 1]} : vector<16x8192xf32> to vector<1x512xf32>
    %240 = arith.addf %238, %239 : vector<1x512xf32>
    %241 = vector.extract_strided_slice %225 {offsets = [7, 3584], sizes = [1, 512], strides = [1, 1]} : vector<16x8192xf32> to vector<1x512xf32>
    %242 = arith.addf %240, %241 : vector<1x512xf32>
    %243 = vector.extract_strided_slice %225 {offsets = [8, 4096], sizes = [1, 512], strides = [1, 1]} : vector<16x8192xf32> to vector<1x512xf32>
    %244 = arith.addf %242, %243 : vector<1x512xf32>
    %245 = vector.extract_strided_slice %225 {offsets = [9, 4608], sizes = [1, 512], strides = [1, 1]} : vector<16x8192xf32> to vector<1x512xf32>
    %246 = arith.addf %244, %245 : vector<1x512xf32>
    %247 = vector.extract_strided_slice %225 {offsets = [10, 5120], sizes = [1, 512], strides = [1, 1]} : vector<16x8192xf32> to vector<1x512xf32>
    %248 = arith.addf %246, %247 : vector<1x512xf32>
    %249 = vector.extract_strided_slice %225 {offsets = [11, 5632], sizes = [1, 512], strides = [1, 1]} : vector<16x8192xf32> to vector<1x512xf32>
    %250 = arith.addf %248, %249 : vector<1x512xf32>
    %251 = vector.extract_strided_slice %225 {offsets = [12, 6144], sizes = [1, 512], strides = [1, 1]} : vector<16x8192xf32> to vector<1x512xf32>
    %252 = arith.addf %250, %251 : vector<1x512xf32>
    %253 = vector.extract_strided_slice %225 {offsets = [13, 6656], sizes = [1, 512], strides = [1, 1]} : vector<16x8192xf32> to vector<1x512xf32>
    %254 = arith.addf %252, %253 : vector<1x512xf32>
    %255 = vector.extract_strided_slice %225 {offsets = [14, 7168], sizes = [1, 512], strides = [1, 1]} : vector<16x8192xf32> to vector<1x512xf32>
    %256 = arith.addf %254, %255 : vector<1x512xf32>
    %257 = vector.extract_strided_slice %225 {offsets = [15, 7680], sizes = [1, 512], strides = [1, 1]} : vector<16x8192xf32> to vector<1x512xf32>
    %258 = arith.addf %256, %257 : vector<1x512xf32>
    %259 = arith.truncf %258 : vector<1x512xf32> to vector<1x512xbf16>
    %c0_205 = arith.constant 0 : index
    %c0_206 = arith.constant 0 : index
    %260 = vector.load %arg12[%c0_205, %c0_206] : memref<512x7xbf16, #tpu.memory_space<vmem>>, vector<512x7xbf16>
    %cst_207 = arith.constant dense<0.000000e+00> : vector<1x7xf32>
    %261 = tpu.matmul %259, %260, %cst_207 {dimension_numbers = #tpu.dot_dimension_numbers<[1], [0], [0], [1], [0, 0, 1, 1], [], []>} : vector<1x512xbf16>, vector<512x7xbf16>, vector<1x7xf32> -> vector<1x7xf32>
    %c0_208 = arith.constant 0 : index
    %c0_209 = arith.constant 0 : index
    %262 = vector.load %arg13[%c0_208, %c0_209] : memref<1x7xf32, #tpu.memory_space<vmem>>, vector<1x7xf32>
    %263 = arith.addf %261, %262 : vector<1x7xf32>
    %264 = vector.extract_strided_slice %263 {offsets = [0, 0], sizes = [1, 6], strides = [1, 1]} : vector<1x7xf32> to vector<1x6xf32>
    %265 = vector.extract_strided_slice %263 {offsets = [0, 6], sizes = [1, 1], strides = [1, 1]} : vector<1x7xf32> to vector<1x1xf32>
    %266 = vector.broadcast %265 : vector<1x1xf32> to vector<1x6xf32>
    %267 = arith.addf %266, %264 : vector<1x6xf32>
    %cst_210 = arith.constant dense<0.000000e+00> : vector<1xf32>
    %268 = vector.multi_reduction <add>, %264, %cst_210 [1] : vector<1x6xf32> to vector<1xf32>
    %269 = vector.shape_cast %268 : vector<1xf32> to vector<1x1xf32>
    %cst_211 = arith.constant 6.000000e+00 : f32
    %270 = vector.broadcast %cst_211 : f32 to vector<1x1xf32>
    %271 = arith.divf %269, %270 : vector<1x1xf32>
    %272 = vector.broadcast %271 : vector<1x1xf32> to vector<1x6xf32>
    %273 = arith.subf %267, %272 : vector<1x6xf32>
    %274 = vector.shape_cast %273 : vector<1x6xf32> to vector<1x1x6xf32>
    %c0_212 = arith.constant 0 : index
    %c0_213 = arith.constant 0 : index
    %c0_214 = arith.constant 0 : index
    %275 = vector.load %arg14[%c0_212, %c0_213, %c0_214] : memref<1x1x6xf32, #tpu.memory_space<vmem>>, vector<1x1x6xf32>
    tpu.vector_store %arg14[%c0_212, %c0_213, %c0_214], %274 {strides = array<i32>} : memref<1x1x6xf32, #tpu.memory_space<vmem>>, vector<1x1x6xf32>,
    return
  }
  func.func @transform_0(%arg0: i32) -> (i32, i32, i32) {
    %c0_i32 = arith.constant 0 : i32
    %c0_i32_0 = arith.constant 0 : i32
    %c0_i32_1 = arith.constant 0 : i32
    return %arg0, %c0_i32, %c0_i32_0 : i32, i32, i32
  }
  func.func @transform_1(%arg0: i32) -> (i32, i32) {
    %c0_i32 = arith.constant 0 : i32
    %c0_i32_0 = arith.constant 0 : i32
    %c0_i32_1 = arith.constant 0 : i32
    return %c0_i32, %c0_i32_0 : i32, i32
  }
  func.func @transform_2(%arg0: i32) -> (i32, i32) {
    %c0_i32 = arith.constant 0 : i32
    %c0_i32_0 = arith.constant 0 : i32
    %c0_i32_1 = arith.constant 0 : i32
    return %c0_i32, %c0_i32_0 : i32, i32
  }
  func.func @transform_3(%arg0: i32) -> (i32, i32, i32) {
    %c0_i32 = arith.constant 0 : i32
    %c0_i32_0 = arith.constant 0 : i32
    %c0_i32_1 = arith.constant 0 : i32
    %c0_i32_2 = arith.constant 0 : i32
    return %c0_i32, %c0_i32_0, %c0_i32_1 : i32, i32, i32
  }
  func.func @transform_4(%arg0: i32) -> (i32, i32, i32) {
    %c0_i32 = arith.constant 0 : i32
    %c0_i32_0 = arith.constant 0 : i32
    %c0_i32_1 = arith.constant 0 : i32
    %c0_i32_2 = arith.constant 0 : i32
    return %c0_i32, %c0_i32_0, %c0_i32_1 : i32, i32, i32
  }
  func.func @transform_5(%arg0: i32) -> (i32, i32) {
    %c0_i32 = arith.constant 0 : i32
    %c0_i32_0 = arith.constant 0 : i32
    %c0_i32_1 = arith.constant 0 : i32
    return %c0_i32, %c0_i32_0 : i32, i32
  }
  func.func @transform_6(%arg0: i32) -> (i32, i32, i32) {
    %c0_i32 = arith.constant 0 : i32
    %c0_i32_0 = arith.constant 0 : i32
    %c0_i32_1 = arith.constant 0 : i32
    %c0_i32_2 = arith.constant 0 : i32
    return %c0_i32, %c0_i32_0, %c0_i32_1 : i32, i32, i32
  }
  func.func @transform_7(%arg0: i32) -> (i32, i32, i32) {
    %c0_i32 = arith.constant 0 : i32
    %c0_i32_0 = arith.constant 0 : i32
    %c0_i32_1 = arith.constant 0 : i32
    %c0_i32_2 = arith.constant 0 : i32
    return %c0_i32, %c0_i32_0, %c0_i32_1 : i32, i32, i32
  }
  func.func @transform_8(%arg0: i32) -> (i32, i32) {
    %c0_i32 = arith.constant 0 : i32
    %c0_i32_0 = arith.constant 0 : i32
    %c0_i32_1 = arith.constant 0 : i32
    return %c0_i32, %c0_i32_0 : i32, i32
  }
  func.func @transform_9(%arg0: i32) -> (i32, i32) {
    %c0_i32 = arith.constant 0 : i32
    %c0_i32_0 = arith.constant 0 : i32
    %c0_i32_1 = arith.constant 0 : i32
    return %c0_i32, %c0_i32_0 : i32, i32
  }
  func.func @transform_10(%arg0: i32) -> (i32, i32) {
    %c0_i32 = arith.constant 0 : i32
    %c0_i32_0 = arith.constant 0 : i32
    %c0_i32_1 = arith.constant 0 : i32
    return %c0_i32, %c0_i32_0 : i32, i32
  }
  func.func @transform_11(%arg0: i32) -> (i32, i32) {
    %c0_i32 = arith.constant 0 : i32
    %c0_i32_0 = arith.constant 0 : i32
    %c0_i32_1 = arith.constant 0 : i32
    return %c0_i32, %c0_i32_0 : i32, i32
  }
  func.func @transform_12(%arg0: i32) -> (i32, i32) {
    %c0_i32 = arith.constant 0 : i32
    %c0_i32_0 = arith.constant 0 : i32
    %c0_i32_1 = arith.constant 0 : i32
    return %c0_i32, %c0_i32_0 : i32, i32
  }
  func.func @transform_13(%arg0: i32) -> (i32, i32, i32) {
    %c0_i32 = arith.constant 0 : i32
    %c0_i32_0 = arith.constant 0 : i32
    %c0_i32_1 = arith.constant 0 : i32
    return %arg0, %c0_i32, %c0_i32_0 : i32, i32, i32
  }
}

</mosaic_0001>

<bundles_post_ra>
// kernel: network_forward.1
= control target key start
LH: loop header
LB: loop body
LE: loop exit
PB: predicated region body
PF: predicated region fallthrough
CT: control target
= control target key end

     0   :  { %18 = vsyncpa [#allocation3], 0  ;;  %s13241_s0 = inlined_call_operand.vmem [shape: bf16[2,225,256], index: 0, kind: input, shape index: {}]   ;;  %s13242_s1 = inlined_call_operand.vmem [shape: bf16[256,32], index: 1, kind: input, shape index: {}]   ;;  %s13243_s2 = inlined_call_operand.vmem [shape: f32[1,32], index: 2, kind: input, shape index: {}]   ;;  %s13244_s3 = inlined_call_operand.vmem [shape: bf16[16,36,225], index: 3, kind: input, shape index: {}]   ;;  %s13245_s4 = inlined_call_operand.vmem [shape: bf16[16,32,64], index: 4, kind: input, shape index: {}]   ;;  %s13246_s5 = inlined_call_operand.vmem [shape: f32[1,64], index: 5, kind: input, shape index: {}]   ;;  %s13247_s6 = inlined_call_operand.vmem [shape: bf16[9,16,36], index: 6, kind: input, shape index: {}]   ;;  %s13248_s7 = inlined_call_operand.vmem [shape: bf16[9,64,64], index: 7, kind: input, shape index: {}]   ;;  %s13249_s8 = inlined_call_operand.vmem [shape: f32[1,64], index: 8, kind: input, shape index: {}]   ;;  %s13250_s9 = inlined_call_operand.vmem [shape: bf16[64,8192], index: 9, kind: input, shape index: {}]   ;;  %s13251_s10 = inlined_call_operand.vmem [shape: f32[1,512], index: 10, kind: input, shape index: {}]   ;;  %s13252_s11 = inlined_call_operand.vmem [shape: bf16[512,7], index: 11, kind: input, shape index: {}]   ;;  %s13253_s12 = inlined_call_operand.vmem [shape: f32[1,7], index: 12, kind: input, shape index: {}]   ;;  %s13254_s13 = inlined_call_operand.hbm [shape: f32[2,1,6], index: 13, kind: output, shape index: {}]  }
   0x1   :  { %20 = vsyncpa [#allocation3 + $0x1], 0  ;;  %s9879_s25 = smov 0   ;;  %s9881_s26 = smov 0  }
   0x2   :  { %s9883_s27 = smov 0   ;;  %s9885_s28 = smov 0  }
   0x3 LB: > { %13260 = sst [smem:[#allocation5_spill]] %s9792_s25  ;;  %s9900_s29 = sadd.s32 4294967295, %s9804_s28   ;;  %s9804_s28 = sphi %s9885_s28, %s13269_s28   ;;  %s9800_s27 = sphi %s9883_s27, %s13271_s27   ;;  %s9796_s26 = sphi %s9881_s26, %s13273_s26   ;;  %s9792_s25 = sphi %s9879_s25, %s13272_s25  }
   0x4   : > { %13261 = sst [smem:[#allocation6_spill]] %s9800_s27  ;;  %s6928_s30 = sadd.s32 4294967294, %s9804_s28  }
   0x5   : > { %s9904_s14 = sadd.s32 1, %s9804_s28   ;;  %s311_s15 = sadd.s32 1, %s9800_s27 }
   0x6   : > { %13262 = sst [smem:[#allocation7_spill]] %s9904_s14  ;;  %s308_s16 = ssub.s32 %s9804_s28, %s9904_s14 }
   0x7   : > { %p321_p0 = scmp.ne.s32.totalorder %s9800_s27, %s9796_s26  ;;  %p309_p1 = scmp.eq.s32.totalorder %s308_s16, 0 }
   0x8   : > { %p322_p2 = scmp.eq.s32.totalorder %s9900_s29, 1  ;;  %p327_p3 = scmp.ne.s32.totalorder %s9796_s26, %s9792_s25 }
   0x9   : > { %p328_p4 = scmp.eq.s32.totalorder %s6928_s30, 1  ;;  %p6931_p7 = scmp.ge.s32.totalorder %s9804_s28, 1 }
   0xa   : > { %s9915_s17 = scalar_select %p309_p1, %s9800_s27, %s311_s15  }
   0xb   : > { %p9917_p5 = por %p322_p2, %p321_p0  ;;  %p9921_p6 = por %p328_p4, %p327_p3 }
   0xc   : > { %13263 = sst [smem:[#allocation8_spill]] %s9915_s17  ;;  %p390_p8 = scmp.lt.s32.totalorder %s9804_s28, 3 }
   0xd   : > { %s13265_s19 = scalar_select %p9921_p6, 1, 0 }
   0xe   : > { %p391_p9 = pnand %p6931_p7, %p390_p8 }
   0xf   : > { %13266 = sst [smem:[#allocation9_spill]] %s13265_s19  ;;  %p433_p10 = scmp.lt.s32.totalorder (!%p391_p9), %s9900_s29, 1 }
  0x10   : > { %394 = sbr.rel (%p391_p9) target bundleno = 3496 (0xda8), region = 72  ;;  %s431_s16 = sand.u32 (!%p391_p9), 1, %s9796_s26  }
  0x11   : > { %s432_s23 = scalar_lea.vmem (!%p391_p9), [#allocation2], %s431_s16  ;;  %s6861_s25 = scalar_lea.sflag (!%p391_p9), [#allocation3], %s431_s16 }
  0x15   : > { %v9255_v0 = vld [vmem:[%s13242_s1 + $0x38] sm:$0xff]  ;;  %v9254_v2 = vld [vmem:[%s13242_s1 + $0x30] sm:$0xff]  ;;  %v9253_v4 = vld [vmem:[%s13242_s1 + $0x28] sm:$0xff]  ;;  %s434_s21 = scalar_select %p433_p10, %s9900_s29, 1  ;;  %vm996_vm0 = vcmask 1040384   ;;  %vm986_vm1 = vcmask 793600  }
  0x16   : > { %v9263_v1 = vld [vmem:[%s13242_s1 + $0x78] sm:$0xff]  ;;  %747 = vmatpush.bf16.msra.mxu0 %v9255_v0  ;;  %v9262_v3 = vld [vmem:[%s13242_s1 + $0x70] sm:$0xff]  ;;  %v9261_v5 = vld [vmem:[%s13242_s1 + $0x68] sm:$0xff]  ;;  %vm1160_vm2 = vcmask 261120   ;;  %vm3253_vm3 = vcmask 1041408   ;;  %vm3249_vm4 = vcmask 293888  }
  0x17   : > { %830 = vmatpush.bf16.msra.mxu1 %v9263_v1  ;;  %v9252_v6 = vld [vmem:[%s13242_s1 + $0x20] sm:$0xff]  ;;  %v9251_v8 = vld [vmem:[%s13242_s1 + $0x18] sm:$0xff]  ;;  %v9250_v10 = vld [vmem:[%s13242_s1 + $0x10] sm:$0xff]  ;;  %s9693_s30 = smul.u32 232, %s434_s21  ;;  %vm3339_vm5 = vcmask 523264   ;;  %vm6333_vm6 = vcmask 1042434  }
  0x18   : > { %v9260_v7 = vld [vmem:[%s13242_s1 + $0x60] sm:$0xff]  ;;  %v9259_v9 = vld [vmem:[%s13242_s1 + $0x58] sm:$0xff]  ;;  %v9258_v11 = vld [vmem:[%s13242_s1 + $0x50] sm:$0xff]  ;;  %vm6846_vm7 = vcmask 40960   ;;  %s6871_s21 = sshll.u32 %s432_s23, 4  ;;  %s6872_s21 = int_to_ptr.vmem [resolvable:$true] %s6871_s21 }
  0x19   : > { %v9249_v12 = vld [vmem:[%s13242_s1 + $0x8] sm:$0xff]  ;;  %s9974_s22 = scalar_lea.vmem %s13241_s0, %s9693_s30  ;;  %v9248_v14 = vld [vmem:[%s13242_s1] sm:$0xff]  ;;  %s9762_s30 = scalar_lea.hbm %s13254_s13, 2 }
  0x1a   : > { %748 = vmatpush.bf16.msra.mxu0 %v9254_v2  ;;  %v9257_v13 = vld [vmem:[%s13242_s1 + $0x48] sm:$0xff]  ;;  %v9256_v15 = vld [vmem:[%s13242_s1 + $0x40] sm:$0xff]  ;;  %v6943_v22 = vld [vmem:[%s9974_s22 + $0x10] sm:$0xf] }
  0x1b   : > { %831 = vmatpush.bf16.msra.mxu1 %v9262_v3  ;;  %v6935_v16 = vld [vmem:[%s9974_s22] sm:$0xf]  ;;  %v9221_v17 = vld [vmem:[%s9974_s22 + $0x4] sm:$0xf0]  ;;  %v9220_v18 = vld [vmem:[%s9974_s22 + $0x4] sm:$0xf] }
  0x1c   : > { %v6937_v19 = vld [vmem:[%s9974_s22 + $0x8] sm:$0xf0]  ;;  %v6936_v20 = vor.u32 %v9221_v17, %v6935_v16  ;;  %v9223_v23 = vld [vmem:[%s9974_s22 + $0x14] sm:$0xf0]  ;;  %v9222_v24 = vld [vmem:[%s9974_s22 + $0x14] sm:$0xf] }
  0x1d   : > { %v6940_v21 = vor.u32 %v9220_v18, %v6937_v19  ;;  %v6945_v25 = vld [vmem:[%s9974_s22 + $0x18] sm:$0xf0]  ;;  %v6944_v26 = vor.u32 %v9223_v23, %v6943_v22  ;;  %v6951_v28 = vld [vmem:[%s9974_s22 + $0x20] sm:$0xf]  ;;  %v9225_v29 = vld [vmem:[%s9974_s22 + $0x24] sm:$0xf0] }
  0x1e   : > { %749 = vmatpush.bf16.msra.mxu0 %v9253_v4  ;;  %v6948_v27 = vor.u32 %v9222_v24, %v6945_v25  ;;  %v9224_v30 = vld [vmem:[%s9974_s22 + $0x24] sm:$0xf]  ;;  %v6953_v31 = vld [vmem:[%s9974_s22 + $0x28] sm:$0xf0]  ;;  %v6952_v32 = vor.u32 %v9225_v29, %v6951_v28  ;;  %v6959_v34 = vld [vmem:[%s9974_s22 + $0x30] sm:$0xf] }
  0x1f   : > { %832 = vmatpush.bf16.msra.mxu1 %v9261_v5  ;;  %v6956_v33 = vor.u32 %v9224_v30, %v6953_v31  ;;  %v9227_v35 = vld [vmem:[%s9974_s22 + $0x34] sm:$0xf0]  ;;  %v9226_v36 = vld [vmem:[%s9974_s22 + $0x34] sm:$0xf]  ;;  %v6961_v37 = vld [vmem:[%s9974_s22 + $0x38] sm:$0xf0] }
  0x20   : > { %v6960_v38 = vor.u32 %v9227_v35, %v6959_v34  ;;  %v6964_v39 = vor.u32 %v9226_v36, %v6961_v37  ;;  %v6967_v40 = vld [vmem:[%s9974_s22 + $0x40] sm:$0xf]  ;;  %v9229_v41 = vld [vmem:[%s9974_s22 + $0x44] sm:$0xf0]  ;;  %v9228_v42 = vld [vmem:[%s9974_s22 + $0x44] sm:$0xf] }
  0x21   : > { %v6969_v43 = vld [vmem:[%s9974_s22 + $0x48] sm:$0xf0]  ;;  %v6968_v44 = vor.u32 %v9229_v41, %v6967_v40  ;;  %v6975_v46 = vld [vmem:[%s9974_s22 + $0x50] sm:$0xf]  ;;  %v9231_v47 = vld [vmem:[%s9974_s22 + $0x54] sm:$0xf0] }
  0x22   : > { %750 = vmatpush.bf16.msra.mxu0 %v9252_v6  ;;  %v6972_v45 = vor.u32 %v9228_v42, %v6969_v43  ;;  %v9230_v48 = vld [vmem:[%s9974_s22 + $0x54] sm:$0xf]  ;;  %v6977_v49 = vld [vmem:[%s9974_s22 + $0x58] sm:$0xf0]  ;;  %v6976_v50 = vor.u32 %v9231_v47, %v6975_v46  ;;  %v6983_v52 = vld [vmem:[%s9974_s22 + $0x60] sm:$0xf] }
  0x23   : > { %833 = vmatpush.bf16.msra.mxu1 %v9260_v7  ;;  %v6980_v51 = vor.u32 %v9230_v48, %v6977_v49  ;;  %v9233_v53 = vld [vmem:[%s9974_s22 + $0x64] sm:$0xf0]  ;;  %v9232_v54 = vld [vmem:[%s9974_s22 + $0x64] sm:$0xf]  ;;  %v6985_v55 = vld [vmem:[%s9974_s22 + $0x68] sm:$0xf0] }
  0x24   : > { %v6984_v56 = vor.u32 %v9233_v53, %v6983_v52  ;;  %v6988_v57 = vor.u32 %v9232_v54, %v6985_v55  ;;  %v6991_v58 = vld [vmem:[%s9974_s22 + $0x70] sm:$0xf]  ;;  %v9235_v59 = vld [vmem:[%s9974_s22 + $0x74] sm:$0xf0]  ;;  %v9234_v60 = vld [vmem:[%s9974_s22 + $0x74] sm:$0xf] }
  0x25   : > { %v6993_v61 = vld [vmem:[%s9974_s22 + $0x78] sm:$0xf0]  ;;  %v6992_v62 = vor.u32 %v9235_v59, %v6991_v58  ;;  %v6999_v0 = vld [vmem:[%s9974_s22 + $0x80] sm:$0xf]  ;;  %v9237_v1 = vld [vmem:[%s9974_s22 + $0x84] sm:$0xf0] }
  0x26   : > { %751 = vmatpush.bf16.msra.mxu0 %v9251_v8  ;;  %v6996_v63 = vor.u32 %v9234_v60, %v6993_v61  ;;  %v9236_v2 = vld [vmem:[%s9974_s22 + $0x84] sm:$0xf]  ;;  %v7001_v3 = vld [vmem:[%s9974_s22 + $0x88] sm:$0xf0]  ;;  %v10021_v4 = vld [vmem:[%s13243_s2] ss:$0 sm:$0xff]  ;;  %v7000_v5 = vor.u32 %v9237_v1, %v6999_v0 }
  0x27   : > { %834 = vmatpush.bf16.msra.mxu1 %v9259_v9  ;;  %v7004_v6 = vor.u32 %v9236_v2, %v7001_v3  ;;  %v9239_v16 = vld [vmem:[%s9974_s22 + $0x94] sm:$0xf0]  ;;  %v9238_v17 = vld [vmem:[%s9974_s22 + $0x94] sm:$0xf]  ;;  %v7009_v18 = vld [vmem:[%s9974_s22 + $0x98] sm:$0xf0] }
  0x28   : > { %v7012_v23 = vor.u32 %v9238_v17, %v7009_v18  ;;  %v9240_v34 = vld [vmem:[%s9974_s22 + $0xa4] sm:$0xf]  ;;  %v7017_v35 = vld [vmem:[%s9974_s22 + $0xa8] sm:$0xf0]  ;;  %v7023_v49 = vld [vmem:[%s9974_s22 + $0xb0] sm:$0xf] }
  0x29   : > { %v7020_v40 = vor.u32 %v9240_v34, %v7017_v35  ;;  %v7025_v52 = vld [vmem:[%s9974_s22 + $0xb8] sm:$0xf0]  ;;  %v7031_v0 = vld [vmem:[%s9974_s22 + $0xc0] sm:$0xf]  ;;  %v9245_v1 = vld [vmem:[%s9974_s22 + $0xc4] sm:$0xf0] }
  0x2a   : > { %752 = vmatpush.bf16.msra.mxu0 %v9250_v10  ;;  %v9244_v2 = vld [vmem:[%s9974_s22 + $0xc4] sm:$0xf]  ;;  %v7033_v3 = vld [vmem:[%s9974_s22 + $0xc8] sm:$0xf0] }
  0x2b   : > { %835 = vmatpush.bf16.msra.mxu1 %v9258_v11 }
  0x2e   : > { %753 = vmatpush.bf16.msra.mxu0 %v9249_v12 }
  0x2f   : > { %836 = vmatpush.bf16.msra.mxu1 %v9257_v13 }
  0x32   : > { %754 = vmatpush.bf16.msra.mxu0 %v9248_v14 }
  0x33   : > { %837 = vmatpush.bf16.msra.mxu1 %v9256_v15  ;;  %v7007_v15 = vld [vmem:[%s9974_s22 + $0x90] sm:$0xf] }
  0x34   : > { %v7008_v22 = vor.u32 %v9239_v16, %v7007_v15  ;;  %v9246_v15 = vld [vmem:[%s9974_s22 + $0xd4] sm:$0xf]  ;;  %v7041_v16 = vld [vmem:[%s9974_s22 + $0xd8] sm:$0xf0] }
  0x35   : > { %755 = vmatmul.bf16.vlgmr.msra.gmra.mxu0 %v6936_v20  ;;  %v7044_v18 = vor.u32 %v9246_v15, %v7041_v16 }
  0x36   : > { %838 = vmatmul.bf16.vlgmr.msra.gmra.mxu1 %v6940_v21 }
  0x45   : > { %760 = vmatmul.bf16.gmra.mxu0 %v6944_v26 }
  0x46   : > { %843 = vmatmul.bf16.gmra.mxu1 %v6948_v27 }
  0x55   : > { %765 = vmatmul.bf16.gmra.mxu0 %v6952_v32  ;;  %v7015_v32 = vld [vmem:[%s9974_s22 + $0xa0] sm:$0xf] }
  0x56   : > { %848 = vmatmul.bf16.gmra.mxu1 %v6956_v33  ;;  %v9241_v33 = vld [vmem:[%s9974_s22 + $0xa4] sm:$0xf0] }
  0x65   : > { %770 = vmatmul.bf16.gmra.mxu0 %v6960_v38 }
  0x66   : > { %853 = vmatmul.bf16.gmra.mxu1 %v6964_v39  ;;  %v7016_v39 = vor.u32 %v9241_v33, %v7015_v32 }
  0x75   : > { %775 = vmatmul.bf16.gmra.mxu0 %v6968_v44 }
  0x76   : > { %858 = vmatmul.bf16.gmra.mxu1 %v6972_v45 }
  0x85   : > { %780 = vmatmul.bf16.gmra.mxu0 %v6976_v50  ;;  %v9243_v50 = vld [vmem:[%s9974_s22 + $0xb4] sm:$0xf0] }
  0x86   : > { %863 = vmatmul.bf16.gmra.mxu1 %v6980_v51  ;;  %v9242_v51 = vld [vmem:[%s9974_s22 + $0xb4] sm:$0xf] }
  0x95   : > { %785 = vmatmul.bf16.gmra.mxu0 %v6984_v56  ;;  %v7024_v56 = vor.u32 %v9243_v50, %v7023_v49 }
  0x96   : > { %868 = vmatmul.bf16.gmra.mxu1 %v6988_v57  ;;  %v7028_v57 = vor.u32 %v9242_v51, %v7025_v52 }
  0xa5   : > { %790 = vmatmul.bf16.gmra.mxu0 %v6992_v62 }
  0xa6   : > { %873 = vmatmul.bf16.gmra.mxu1 %v6996_v63 }
  0xb2   : > { %v756_v7 = vpop.f32.mrf.mxu0 }
  0xb3   : > { %v839_v8 = vpop.f32.mrf.mxu1  ;;  %v757_v9 = vadd.f32 %v10021_v4, %v756_v7 }
  0xb5   : > { %v840_v10 = vadd.f32 %v839_v8, %v757_v9  ;;  %795 = vmatmul.bf16.gmra.mxu0 %v7000_v5  ;;  %v7032_v5 = vor.u32 %v9245_v1, %v7031_v0 }
  0xb6   : > { %878 = vmatmul.bf16.gmra.mxu1 %v7004_v6  ;;  %v7036_v6 = vor.u32 %v9244_v2, %v7033_v3 }
  0xb7   : > { %v913_v19 = vmax.f32 %v840_v10, 0.0 }
  0xba   : > { %v758_v11 = vpop.f32.mrf.mxu0 }
  0xbb   : > { %v841_v12 = vpop.f32.mrf.mxu1  ;;  %v759_v13 = vadd.f32 %v10021_v4, %v758_v11 }
  0xbd   : > { %v842_v14 = vadd.f32 %v841_v12, %v759_v13  ;;  %v7039_v13 = vld [vmem:[%s9974_s22 + $0xd0] sm:$0xf] }
  0xbf   : > { %v914_v20 = vmax.f32 %v842_v14, 0.0  ;;  %v9247_v14 = vld [vmem:[%s9974_s22 + $0xd4] sm:$0xf0] }
  0xc0   : > { %v7040_v17 = vor.u32 %v9247_v14, %v7039_v13 }
  0xc1   : > { %v10029_v21 = vpack.c.bf16 %v914_v20, %v913_v19 }
  0xc2   : > { %v761_v24 = vpop.f32.mrf.mxu0 }
  0xc3   : > { %v844_v25 = vpop.f32.mrf.mxu1  ;;  %v762_v26 = vadd.f32 %v10021_v4, %v761_v24  ;;  %v467_v24 = vld [vmem:[%s9974_s22 + $0xe0] sm:$0x11]  ;;  %s6869_s22 = scalar_lea.hbm %s13254_s13, %s9900_s29 }
  0xc4   : > { %s6873_s27 = sshll.u32 %s6869_s22, 4  ;;  %s6874_s27 = int_to_ptr.hbm [resolvable:$true] %s6873_s27 }
  0xc5   : > { %v845_v27 = vadd.f32 %v844_v25, %v762_v26  ;;  %800 = vmatmul.bf16.gmra.mxu0 %v7008_v22  ;;  %v9287_v25 = vld [vmem:[%s13245_s4 + $0x38] sm:$0xff]  ;;  %v589_v26 = vunpack.c.l.b16 %v467_v24  ;;  %s9756_s14 = sshra.s32 %s6874_s27, 4  ;;  %s9757_s14 = int_to_ptr.hbm [resolvable:$true] %s9756_s14 }
  0xc6   : > { %883 = vmatmul.bf16.gmra.mxu1 %v7012_v23  ;;  %1499 = vmatpush.bf16.msrb.mxu0 %v9287_v25  ;;  %s9758_s19 = scalar_lea.hbm %s9757_s14, 1  ;;  %p9763_p0 = scmp.lt.s32.totalorder %s9757_s14, %s13254_s13 }
  0xc7   : > { %v915_v36 = vmax.f32 %v845_v27, 0.0  ;;  %v590_v27 = vunpack.c.h.b16 %v467_v24  ;;  %p9759_p11 = scmp.ne.s32.totalorder %s9757_s14, %s9758_s19  ;;  %p9764_p1 = scmp.lt.s32.totalorder %s9762_s30, %s9758_s19 }
  0xc9   : > { %p9760_p12 = pnand %p9759_p11, %p9917_p5  ;;  %p9765_p2 = por %p9764_p1, %p9763_p0 }
  0xca   : > { %v763_v28 = vpop.f32.mrf.mxu0 }
  0xcb   : > { %v846_v29 = vpop.f32.mrf.mxu1  ;;  %v764_v30 = vadd.f32 %v10021_v4, %v763_v28  ;;  %v9286_v28 = vld [vmem:[%s13245_s4 + $0x30] sm:$0xff]  ;;  %p9761_p13 = pneg %p9760_p12 }
  0xcc   : > { %1500 = vmatpush.bf16.msrb.mxu0 %v9286_v28 }
  0xcd   : > { %v847_v31 = vadd.f32 %v846_v29, %v764_v30  ;;  %v619_v29 = vpack.c.b16 %v589_v26, %v589_v26  ;;  %v620_v30 = vpack.c.b16 %v590_v27, %v590_v27  ;;  %p9766_p3 = pnand %p9765_p2, %p9761_p13 }
  0xcf   : > { %v916_v37 = vmax.f32 %v847_v31, 0.0 }
  0xd1   : > { %v10037_v38 = vpack.c.bf16 %v916_v37, %v915_v36 }
  0xd2   : > { %v766_v41 = vpop.f32.mrf.mxu0 }
  0xd3   : > { %v849_v42 = vpop.f32.mrf.mxu1  ;;  %v767_v43 = vadd.f32 %v10021_v4, %v766_v41 }
  0xd5   : > { %v850_v44 = vadd.f32 %v849_v42, %v767_v43  ;;  %805 = vmatmul.bf16.gmra.mxu0 %v7016_v39 }
  0xd6   : > { %888 = vmatmul.bf16.gmra.mxu1 %v7020_v40 }
  0xd7   : > { %v917_v53 = vmax.f32 %v850_v44, 0.0 }
  0xda   : > { %v768_v45 = vpop.f32.mrf.mxu0 }
  0xdb   : > { %v851_v46 = vpop.f32.mrf.mxu1  ;;  %v769_v47 = vadd.f32 %v10021_v4, %v768_v45 }
  0xdd   : > { %v852_v48 = vadd.f32 %v851_v46, %v769_v47 }
  0xdf   : > { %v918_v54 = vmax.f32 %v852_v48, 0.0 }
  0xe1   : > { %v10045_v55 = vpack.c.bf16 %v918_v54, %v917_v53 }
  0xe2   : > { %v771_v58 = vpop.f32.mrf.mxu0 }
  0xe3   : > { %v854_v59 = vpop.f32.mrf.mxu1  ;;  %v772_v60 = vadd.f32 %v10021_v4, %v771_v58 }
  0xe5   : > { %v10048_v61 = vadd.f32 %v854_v59, %v772_v60  ;;  %810 = vmatmul.bf16.gmra.mxu0 %v7024_v56 }
  0xe6   : > { %893 = vmatmul.bf16.gmra.mxu1 %v7028_v57 }
  0xea   : > { %v10050_v62 = vpop.f32.mrf.mxu0 }
  0xeb   : > { %v10052_v63 = vpop.f32.mrf.mxu1  ;;  %v774_v1 = vadd.f32 %v10021_v4, %v10050_v62 }
  0xf2   : > { %v776_v7 = vpop.f32.mrf.mxu0 }
  0xf3   : > { %v859_v8 = vpop.f32.mrf.mxu1  ;;  %v777_v9 = vadd.f32 %v10021_v4, %v776_v7 }
  0xf5   : > { %v10059_v10 = vadd.f32 %v859_v8, %v777_v9  ;;  %815 = vmatmul.bf16.gmra.mxu0 %v7032_v5  ;;  %v857_v8 = vadd.f32 %v10052_v63, %v774_v1  ;;  %v919_v63 = vmax.f32 %v10048_v61, 0.0 }
  0xf6   : > { %898 = vmatmul.bf16.gmra.mxu1 %v7036_v6 }
  0xf7   : > { %v921_v13 = vmax.f32 %v10059_v10, 0.0  ;;  %v920_v14 = vmax.f32 %v857_v8, 0.0 }
  0xf9   : > { %v10111_v16 = vpack.c.bf16 %v920_v14, %v919_v63  ;;  %v9806_v63 = vmov 0  }
  0xfa   : > { %v778_v11 = vpop.f32.mrf.mxu0 }
  0xfb   : > { %v861_v12 = vpop.f32.mrf.mxu1  ;;  %v779_v52 = vadd.f32 %v10021_v4, %v778_v11 }
  0xfd   : > { %v862_v2 = vadd.f32 %v861_v12, %v779_v52  ;;  %v10173_v52 = vld [vmem:[%s13244_s3 + $0xc0] sm:$0x33] }
  0xff   : > { %v922_v9 = vmax.f32 %v862_v2, 0.0 }
 0x101   : > { %v10105_v15 = vpack.c.bf16 %v922_v9, %v921_v13 }
 0x102   : > { %v781_v19 = vpop.f32.mrf.mxu0 }
 0x103   : > { %v864_v20 = vpop.f32.mrf.mxu1  ;;  %v782_v48 = vadd.f32 %v10021_v4, %v781_v19 }
 0x105   : > { %820 = vmatmul.bf16.gmra.mxu0 %v7040_v17  ;;  %v865_v59 = vadd.f32 %v864_v20, %v782_v48 }
 0x106   : > { %903 = vmatmul.bf16.gmra.mxu1 %v7044_v18 }
 0x107   : > { %v923_v7 = vmax.f32 %v865_v59, 0.0 }
 0x10a   : > { %v783_v22 = vpop.f32.mrf.mxu0 }
 0x10b   : > { %v866_v23 = vpop.f32.mrf.mxu1  ;;  %v784_v45 = vadd.f32 %v10021_v4, %v783_v22 }
 0x10d   : > { %v867_v53 = vadd.f32 %v866_v23, %v784_v45 }
 0x10f   : > { %v924_v3 = vmax.f32 %v867_v53, 0.0 }
 0x111   : > { %v10095_v11 = vpack.c.bf16 %v924_v3, %v923_v7 }
 0x112   : > { %v786_v31 = vpop.f32.mrf.mxu0 }
 0x113   : > { %v869_v32 = vpop.f32.mrf.mxu1  ;;  %v787_v42 = vadd.f32 %v10021_v4, %v786_v31  ;;  %v9265_v31 = vld [vmem:[%s13244_s3 + $0x4] sm:$0xf0] }
 0x115   : > { %825 = vmatmul.bf16.gmra.mxu0 %v619_v29  ;;  %v870_v49 = vadd.f32 %v869_v32, %v787_v42  ;;  %v7263_v32 = vld [vmem:[%s13244_s3 + $0xa0] sm:$0xf]  ;;  %v9267_v42 = vld [vmem:[%s13244_s3 + $0x14] sm:$0xf0] }
 0x116   : > { %908 = vmatmul.bf16.gmra.mxu1 %v620_v30  ;;  %v7111_v30 = vld [vmem:[%s13244_s3] sm:$0xf] }
 0x117   : > { %v925_v60 = vmax.f32 %v870_v49, 0.0 }
 0x11a   : > { %v788_v33 = vpop.f32.mrf.mxu0 }
 0x11b   : > { %v871_v34 = vpop.f32.mrf.mxu1  ;;  %v789_v39 = vadd.f32 %v10021_v4, %v788_v33 }
 0x11d   : > { %v872_v46 = vadd.f32 %v871_v34, %v789_v39 }
 0x11f   : > { %v926_v54 = vmax.f32 %v872_v46, 0.0  ;;  %v7271_v46 = vld [vmem:[%s13244_s3 + $0xb0] sm:$0xf] }
 0x121   : > { %v10087_v5 = vpack.c.bf16 %v926_v54, %v925_v60  ;;  %v1540_v54 = vunpack.c.l.b16 %v10173_v52 }
 0x122   : > { %v791_v35 = vpop.f32.mrf.mxu0 }
 0x123   : > { %v874_v36 = vpop.f32.mrf.mxu1  ;;  %v792_v37 = vadd.f32 %v10021_v4, %v791_v35  ;;  %v7112_v35 = vor.u32 %v9265_v31, %v7111_v30  ;;  %v1546_v60 = vpack.c.b16 %v1540_v54, %v1540_v54  ;;  %v9270_v54 = vld [vmem:[%s13244_s3 + $0x2c] sm:$0xf] }
 0x125   : > { %v875_v43 = vadd.f32 %v874_v36, %v792_v37  ;;  %v9289_v36 = vld [vmem:[%s13244_s3 + $0xa4] sm:$0xf0] }
 0x126   : > { %v7264_v37 = vor.u32 %v9289_v36, %v7263_v32 }
 0x127   : > { %v927_v50 = vmax.f32 %v875_v43, 0.0 }
 0x12a   : > { %v793_v40 = vpop.f32.mrf.mxu0 }
 0x12b   : > { %v876_v41 = vpop.f32.mrf.mxu1  ;;  %v794_v44 = vadd.f32 %v10021_v4, %v793_v40 }
 0x12d   : > { %v877_v47 = vadd.f32 %v876_v41, %v794_v44  ;;  %v7119_v41 = vld [vmem:[%s13244_s3 + $0x10] sm:$0xf] }
 0x12e   : > { %v7120_v45 = vor.u32 %v9267_v42, %v7119_v41 }
 0x12f   : > { %v928_v51 = vmax.f32 %v877_v47, 0.0  ;;  %v9291_v47 = vld [vmem:[%s13244_s3 + $0xb4] sm:$0xf0] }
 0x130   : > { %v7272_v48 = vor.u32 %v9291_v47, %v7271_v46 }
 0x131   : > { %v10079_v56 = vpack.c.bf16 %v928_v51, %v927_v50  ;;  %v10168_v51 = vld [vmem:[%s13244_s3 + $0x20] sm:$0x33] }
 0x132   : > { %v796_v57 = vpop.f32.mrf.mxu0  ;;  %v975_v53 = vunpack.c.l.b16 %v10168_v51 }
 0x133   : > { %v879_v58 = vpop.f32.mrf.mxu1  ;;  %v797_v0 = vadd.f32 %v10021_v4, %v796_v57  ;;  %1002 = vmatpush.bf16.msra.mxu2 %v10079_v56  ;;  %1560 = vmatpush.bf16.msrb.mxu1 %v10079_v56 }
 0x134   : > { %1702 = vmatpush.bf16.msra.mxu0 %v10079_v56  ;;  %v981_v59 = vpack.c.b16 %v975_v53, %v975_v53 }
 0x135   : > { %v10089_v6 = vadd.f32 %v879_v58, %v797_v0 }
 0x137   : > { %1003 = vmatpush.bf16.msra.mxu2 %v10087_v5  ;;  %1561 = vmatpush.bf16.msrb.mxu1 %v10087_v5 }
 0x138   : > { %1703 = vmatpush.bf16.msra.mxu0 %v10087_v5 }
 0x13a   : > { %v10097_v62 = vpop.f32.mrf.mxu0 }
 0x13b   : > { %v10099_v12 = vpop.f32.mrf.mxu1  ;;  %1004 = vmatpush.bf16.msra.mxu2 %v10095_v11  ;;  %1562 = vmatpush.bf16.msrb.mxu1 %v10095_v11 }
 0x13c   : > { %1704 = vmatpush.bf16.msra.mxu0 %v10095_v11 }
 0x13f   : > { %1005 = vmatpush.bf16.msra.mxu2 %v10105_v15  ;;  %1563 = vmatpush.bf16.msrb.mxu1 %v10105_v15 }
 0x140   : > { %1705 = vmatpush.bf16.msra.mxu0 %v10105_v15 }
 0x142   : > { %v801_v10 = vpop.f32.mrf.mxu0 }
 0x143   : > { %v884_v17 = vpop.f32.mrf.mxu1  ;;  %v802_v18 = vadd.f32 %v10021_v4, %v801_v10  ;;  %1006 = vmatpush.bf16.msra.mxu2 %v10111_v16  ;;  %1564 = vmatpush.bf16.msrb.mxu1 %v10111_v16  ;;  %v998_v10 = vsel %vm996_vm0, 65535, %v9806_v63  ;;  %v9272_v63 = vld [vmem:[%s13244_s3 + $0x3c] sm:$0xf] }
 0x144   : > { %1706 = vmatpush.bf16.msra.mxu0 %v10111_v16 }
 0x145   : > { %v10117_v19 = vadd.f32 %v884_v17, %v802_v18 }
 0x147   : > { %1007 = vmatpush.bf16.msra.mxu2 %v10045_v55  ;;  %1565 = vmatpush.bf16.msrb.mxu1 %v10045_v55 }
 0x148   : > { %1707 = vmatpush.bf16.msra.mxu0 %v10045_v55 }
 0x14a   : > { %v10122_v61 = vpop.f32.mrf.mxu0 }
 0x14b   : > { %v10124_v20 = vpop.f32.mrf.mxu1  ;;  %1008 = vmatpush.bf16.msra.mxu2 %v10037_v38  ;;  %1566 = vmatpush.bf16.msrb.mxu1 %v10037_v38 }
 0x14c   : > { %1708 = vmatpush.bf16.msra.mxu0 %v10037_v38 }
 0x14f   : > { %1009 = vmatpush.bf16.msra.mxu2 %v10029_v21  ;;  %1567 = vmatpush.bf16.msrb.mxu1 %v10029_v21 }
 0x150   : > { %1709 = vmatpush.bf16.msra.mxu0 %v10029_v21 }
 0x152   : > { %v806_v22 = vpop.f32.mrf.mxu0  ;;  %1010 = vmatmul.bf16.vlgmr.msra.gmra.mxu2 %v7112_v35  ;;  %1568 = vmatmul.bf16.vlgmr.msrb.gmra.mxu1 %v7264_v37 }
 0x153   : > { %v889_v23 = vpop.f32.mrf.mxu1  ;;  %v807_v24 = vadd.f32 %v10021_v4, %v806_v22 }
 0x155   : > { %v10133_v25 = vadd.f32 %v889_v23, %v807_v24 }
 0x15a   : > { %v10135_v26 = vpop.f32.mrf.mxu0 }
 0x15b   : > { %v10137_v27 = vpop.f32.mrf.mxu1 }
 0x162   : > { %v811_v28 = vpop.f32.mrf.mxu0  ;;  %1015 = vmatmul.bf16.gmra.mxu2 %v7120_v45  ;;  %1573 = vmatmul.bf16.gmra.mxu1 %v7272_v48 }
 0x163   : > { %v10139_v29 = vpop.f32.mrf.mxu1  ;;  %v812_v36 = vadd.f32 %v10021_v4, %v811_v28  ;;  %v804_v28 = vadd.f32 %v10021_v4, %v10122_v61  ;;  %v933_v61 = vmax.f32 %v10133_v25, 0.0  ;;  %v929_v25 = vmax.f32 %v10089_v6, 0.0  ;;  %v7137_v6 = vld [vmem:[%s13244_s3 + $0x30] sm:$0xf0] }
 0x165   : > { %v887_v47 = vadd.f32 %v10124_v20, %v804_v28 }
 0x16a   : > { %v813_v33 = vpop.f32.mrf.mxu0 }
 0x16b   : > { %v896_v34 = vpop.f32.mrf.mxu1  ;;  %v814_v30 = vadd.f32 %v10021_v4, %v813_v33 }
 0x16d   : > { %v897_v42 = vadd.f32 %v896_v34, %v814_v30  ;;  %v9271_v30 = vld [vmem:[%s13244_s3 + $0x2c] sm:$0xf0] }
 0x16f   : > { %v936_v46 = vmax.f32 %v897_v42, 0.0 }
 0x172   : > { %v816_v39 = vpop.f32.mrf.mxu0  ;;  %1020 = vmatmul.bf16.gmra.mxu2 %v981_v59  ;;  %1578 = vmatmul.bf16.gmra.mxu1 %v1546_v60  ;;  %v9269_v60 = vld [vmem:[%s13245_s4 + $0x8] sm:$0xff] }
 0x173   : > { %v899_v40 = vpop.f32.mrf.mxu1  ;;  %v817_v17 = vadd.f32 %v10021_v4, %v816_v39  ;;  %v809_v39 = vadd.f32 %v10021_v4, %v10135_v26 }
 0x175   : > { %v900_v37 = vadd.f32 %v899_v40, %v817_v17  ;;  %v892_v40 = vadd.f32 %v10137_v27, %v809_v39  ;;  %v9275_v17 = vld [vmem:[%s13245_s4 + $0x18] sm:$0xff]  ;;  %v9273_v39 = vld [vmem:[%s13244_s3 + $0x3c] sm:$0xf0] }
 0x177   : > { %v937_v45 = vmax.f32 %v900_v37, 0.0  ;;  %v934_v48 = vmax.f32 %v892_v40, 0.0 }
 0x179   : > { %v10216_v53 = vpack.c.bf16 %v934_v48, %v933_v61 }
 0x17a   : > { %v818_v43 = vpop.f32.mrf.mxu0 }
 0x17b   : > { %v901_v44 = vpop.f32.mrf.mxu1  ;;  %v819_v9 = vadd.f32 %v10021_v4, %v818_v43 }
 0x17d   : > { %v902_v31 = vadd.f32 %v901_v44, %v819_v9  ;;  %v895_v44 = vadd.f32 %v10139_v29, %v812_v36  ;;  %v799_v29 = vadd.f32 %v10021_v4, %v10097_v62  ;;  %v9266_v9 = vld [vmem:[%s13244_s3 + $0x14] sm:$0xf] }
 0x17f   : > { %v938_v43 = vmax.f32 %v902_v31, 0.0  ;;  %v935_v34 = vmax.f32 %v895_v44, 0.0  ;;  %v882_v27 = vadd.f32 %v10099_v12, %v799_v29  ;;  %v9264_v12 = vld [vmem:[%s13244_s3 + $0x4] sm:$0xf] }
 0x181   : > { %v10201_v26 = vpack.c.bf16 %v938_v43, %v937_v45  ;;  %v930_v62 = vmax.f32 %v882_v27, 0.0 }
 0x182   : > { %v821_v49 = vpop.f32.mrf.mxu0 }
 0x183   : > { %v904_v50 = vpop.f32.mrf.mxu1  ;;  %v822_v7 = vadd.f32 %v10021_v4, %v821_v49  ;;  %v10209_v49 = vpack.c.bf16 %v936_v46, %v935_v34  ;;  %v10246_v59 = vpack.c.bf16 %v930_v62, %v929_v25 }
 0x185   : > { %v905_v18 = vadd.f32 %v904_v50, %v822_v7  ;;  %v932_v50 = vmax.f32 %v887_v47, 0.0  ;;  %v9268_v7 = vld [vmem:[%s13245_s4] sm:$0xff] }
 0x187   : > { %v939_v41 = vmax.f32 %v905_v18, 0.0 }
 0x18a   : > { %v823_v57 = vpop.f32.mrf.mxu0 }
 0x18b   : > { %v906_v58 = vpop.f32.mrf.mxu1  ;;  %v824_v2 = vadd.f32 %v10021_v4, %v823_v57  ;;  %v9294_v57 = vld [vmem:[%s13244_s3 + $0xcc] sm:$0xf] }
 0x18d   : > { %v907_v13 = vadd.f32 %v906_v58, %v824_v2  ;;  %v7304_v58 = vld [vmem:[%s13244_s3 + $0xd0] sm:$0xf0]  ;;  %v7140_v2 = vor.u32 %v9270_v54, %v7137_v6 }
 0x18f   : > { %v940_v32 = vmax.f32 %v907_v13, 0.0  ;;  %v7121_v13 = vld [vmem:[%s13244_s3 + $0x18] sm:$0xf0] }
 0x191   : > { %v10192_v33 = vpack.c.bf16 %v940_v32, %v939_v41  ;;  %v7132_v32 = vld [vmem:[%s13244_s3 + $0x48] sm:$0x33]  ;;  %v7143_v41 = vld [vmem:[%s13244_s3 + $0x38] sm:$0xf] }
 0x192   : > { %v826_v0 = vpop.f32.mrf.mxu0  ;;  %v1075_v36 = vunpack.c.h.b16 %v7132_v32  ;;  %v7144_v42 = vor.u32 %v9273_v39, %v7143_v41  ;;  %v1074_v43 = vunpack.c.l.b16 %v7132_v32 }
 0x193   : > { %v909_v1 = vpop.f32.mrf.mxu1  ;;  %v827_v3 = vadd.f32 %v10021_v4, %v826_v0  ;;  %v931_v4 = vmax.f32 %v10117_v19, 0.0  ;;  %v7113_v19 = vld [vmem:[%s13244_s3 + $0x8] sm:$0xf0] }
 0x194   : > { %v9305_v0 = vld [vmem:[%s13245_s4 + $0x68] sm:$0xff]  ;;  %v1081_v37 = vpack.c.b16 %v1075_v36, %v1075_v36  ;;  %v1080_v44 = vpack.c.b16 %v1074_v43, %v1074_v43 }
 0x195   : > { %v910_v8 = vadd.f32 %v909_v1, %v827_v3  ;;  %v10222_v20 = vpack.c.bf16 %v932_v50, %v931_v4  ;;  %v7116_v1 = vor.u32 %v9264_v12, %v7113_v19  ;;  %v7307_v3 = vor.u32 %v9294_v57, %v7304_v58 }
 0x197   : > { %v941_v14 = vmax.f32 %v910_v8, 0.0  ;;  %v9304_v8 = vld [vmem:[%s13245_s4 + $0x60] sm:$0xff] }
 0x199   : > { %v956_v22 = vpack.c.bf16 %v941_v14, %v941_v14  ;;  %v7124_v14 = vor.u32 %v9266_v9, %v7121_v13  ;;  %v7187_v9 = vld [vmem:[%s13244_s3 + $0x58] sm:$0xf0] }
 0x19a   : > { %v828_v23 = vpop.f32.mrf.mxu0 }
 0x19b   : > { %v911_v24 = vpop.f32.mrf.mxu1  ;;  %v10184_v35 = vand.u32 %v998_v10, %v956_v22  ;;  %v7145_v10 = vld [vmem:[%s13244_s3 + $0x40] sm:$0xf0]  ;;  %v976_v22 = vunpack.c.h.b16 %v10168_v51  ;;  %v9274_v23 = vld [vmem:[%s13245_s4 + $0x10] sm:$0xff]  ;;  %v7135_v51 = vld [vmem:[%s13244_s3 + $0x28] sm:$0xf] }
 0x19c   : > { %v7148_v18 = vor.u32 %v9272_v63, %v7145_v10  ;;  %v7136_v31 = vor.u32 %v9271_v30, %v7135_v51  ;;  %v9278_v51 = vld [vmem:[%s13244_s3 + $0x64] sm:$0xf]  ;;  %v7195_v30 = vld [vmem:[%s13244_s3 + $0x68] sm:$0xf0] }
 0x19d   : > { %1026 = vmatpush.bf16.msra.mxu3 %v10184_v35  ;;  %1118 = vmatpush.bf16.msrb.mxu2 %v10184_v35  ;;  %v982_v24 = vpack.c.b16 %v976_v22, %v976_v22  ;;  %v9281_v22 = vld [vmem:[%s13245_s4 + $0x28] sm:$0xff] }
 0x19e   : > { %1726 = vmatpush.bf16.msra.mxu1 %v10184_v35 }
 0x1a1   : > { %1027 = vmatpush.bf16.msra.mxu3 %v10192_v33  ;;  %1119 = vmatpush.bf16.msrb.mxu2 %v10192_v33 }
 0x1a2   : > { %1727 = vmatpush.bf16.msra.mxu1 %v10192_v33 }
 0x1a5   : > { %1028 = vmatpush.bf16.msra.mxu3 %v10201_v26  ;;  %1120 = vmatpush.bf16.msrb.mxu2 %v10201_v26 }
 0x1a6   : > { %1728 = vmatpush.bf16.msra.mxu1 %v10201_v26 }
 0x1a9   : > { %1029 = vmatpush.bf16.msra.mxu3 %v10209_v49  ;;  %1121 = vmatpush.bf16.msrb.mxu2 %v10209_v49 }
 0x1aa   : > { %1729 = vmatpush.bf16.msra.mxu1 %v10209_v49 }
 0x1ad   : > { %1030 = vmatpush.bf16.msra.mxu3 %v10216_v53  ;;  %1122 = vmatpush.bf16.msrb.mxu2 %v10216_v53 }
 0x1ae   : > { %1730 = vmatpush.bf16.msra.mxu1 %v10216_v53 }
 0x1b1   : > { %1031 = vmatpush.bf16.msra.mxu3 %v10222_v20  ;;  %1123 = vmatpush.bf16.msrb.mxu2 %v10222_v20 }
 0x1b2   : > { %1731 = vmatpush.bf16.msra.mxu1 %v10222_v20 }
 0x1b5   : > { %1032 = vmatpush.bf16.msra.mxu3 %v10246_v59  ;;  %1124 = vmatpush.bf16.msrb.mxu2 %v10246_v59 }
 0x1b6   : > { %1732 = vmatpush.bf16.msra.mxu1 %v10246_v59 }
 0x1b8   : > { %7125 = vmatmul.msk.bf16.vlgmr.msra.gmra.mxu3 %vm986_vm1, %v7116_v1  ;;  %7149 = vmatmul.msk.bf16.vlgmr.msrb.gmra.mxu2 %vm986_vm1, %v7140_v2 }
 0x1b9   : > { %1094 = vmatpush.bf16.msrb.mxu3 %v10079_v56  ;;  %1220 = vmatpush.bf16.msra.mxu2 %v9269_v60 }
 0x1ba   : > { %1925 = vmatpush.bf16.msrb.mxu1 %v9305_v0 }
 0x1bb   : > { %7316 = vmatmul.msk.bf16.vlgmr.msra.gmra.mxu1 %vm986_vm1, %v7307_v3 }
 0x1bd   : > { %1095 = vmatpush.bf16.msrb.mxu3 %v10087_v5  ;;  %1221 = vmatpush.bf16.msra.mxu2 %v9268_v7 }
 0x1be   : > { %1926 = vmatpush.bf16.msrb.mxu1 %v9304_v8  ;;  %v9276_v8 = vld [vmem:[%s13244_s3 + $0x54] sm:$0xf] }
 0x1bf   : > { %v7190_v10 = vor.u32 %v9276_v8, %v7187_v9 }
 0x1c1   : > { %1300 = vmatpush.bf16.msrb.mxu2 %v10184_v35  ;;  %1096 = vmatpush.bf16.msrb.mxu3 %v10095_v11 }
 0x1c2   : > { %2128 = vmatpush.bf16.msra.mxu1 %v10079_v56 }
 0x1c5   : > { %1301 = vmatpush.bf16.msrb.mxu2 %v10192_v33  ;;  %1097 = vmatpush.bf16.msrb.mxu3 %v10105_v15 }
 0x1c6   : > { %2129 = vmatpush.bf16.msra.mxu1 %v10087_v5 }
 0x1c8   : > { %7126 = vmatmul.msk.bf16.gmra.mxu3 %vm986_vm1, %v7124_v14  ;;  %7150 = vmatmul.msk.bf16.gmra.mxu2 %vm986_vm1, %v7148_v18 }
 0x1c9   : > { %1302 = vmatpush.bf16.msrb.mxu2 %v10201_v26  ;;  %1098 = vmatpush.bf16.msrb.mxu3 %v10111_v16 }
 0x1ca   : > { %2130 = vmatpush.bf16.msra.mxu1 %v10095_v11 }
 0x1cd   : > { %1303 = vmatpush.bf16.msrb.mxu2 %v10209_v49  ;;  %1099 = vmatpush.bf16.msrb.mxu3 %v10045_v55 }
 0x1ce   : > { %2131 = vmatpush.bf16.msra.mxu1 %v10105_v15 }
 0x1d1   : > { %1304 = vmatpush.bf16.msrb.mxu2 %v10216_v53  ;;  %1100 = vmatpush.bf16.msrb.mxu3 %v10037_v38 }
 0x1d2   : > { %2132 = vmatpush.bf16.msra.mxu1 %v10111_v16 }
 0x1d5   : > { %1305 = vmatpush.bf16.msrb.mxu2 %v10222_v20  ;;  %1101 = vmatpush.bf16.msrb.mxu3 %v10029_v21  ;;  %v1011_v45 = vpop.f32.mrf.mxu2 }
 0x1d6   : > { %2133 = vmatpush.bf16.msra.mxu1 %v10045_v55 }
 0x1d8   : > { %7127 = vmatmul.msk.bf16.gmra.mxu3 %vm986_vm1, %v982_v24  ;;  %7151 = vmatmul.msk.bf16.gmra.mxu2 %vm986_vm1, %v1081_v37  ;;  %v7198_v37 = vor.u32 %v9278_v51, %v7195_v30 }
 0x1d9   : > { %1176 = vmatpush.bf16.msra.mxu3 %v9275_v17  ;;  %1306 = vmatpush.bf16.msrb.mxu2 %v10246_v59 }
 0x1da   : > { %2134 = vmatpush.bf16.msra.mxu1 %v10037_v38 }
 0x1dd   : > { %1177 = vmatpush.bf16.msra.mxu3 %v9274_v23  ;;  %v1013_v28 = vpop.f32.mrf.mxu2  ;;  %v9280_v23 = vld [vmem:[%s13245_s4 + $0x20] sm:$0xff] }
 0x1de   : > { %2135 = vmatpush.bf16.msra.mxu1 %v10029_v21 }
 0x1e5   : > { %v1016_v40 = vpop.f32.mrf.mxu2 }
 0x1e8   : > { %1102 = vmatmul.bf16.vlgmr.msrb.gmra.mxu3 %v7136_v31 }
 0x1e9   : > { %1276 = vmatpush.bf16.msrb.mxu3 %v10079_v56 }
 0x1ed   : > { %1277 = vmatpush.bf16.msrb.mxu3 %v10087_v5  ;;  %v1018_v46 = vpop.f32.mrf.mxu2 }
 0x1f1   : > { %1278 = vmatpush.bf16.msrb.mxu3 %v10095_v11 }
 0x1f5   : > { %1279 = vmatpush.bf16.msrb.mxu3 %v10105_v15  ;;  %v1021_v34 = vpop.f32.mrf.mxu2 }
 0x1f8   : > { %1107 = vmatmul.bf16.gmra.mxu3 %v7144_v42  ;;  %v7182_v42 = vld [vmem:[%s13244_s3 + $0x70] sm:$0x33] }
 0x1f9   : > { %1280 = vmatpush.bf16.msrb.mxu3 %v10111_v16 }
 0x1fd   : > { %1281 = vmatpush.bf16.msrb.mxu3 %v10045_v55  ;;  %v1023_v29 = vpop.f32.mrf.mxu2 }
 0x1fe   : > { %v7224_v29 = vld [vmem:[%s13244_s3 + $0x78] sm:$0xf] }
 0x201   : > { %1282 = vmatpush.bf16.msrb.mxu3 %v10037_v38 }
 0x205   : > { %1283 = vmatpush.bf16.msrb.mxu3 %v10029_v21 }
 0x208   : > { %1112 = vmatmul.bf16.gmra.mxu3 %v1080_v44  ;;  %v1257_v44 = vunpack.c.h.b16 %v7182_v42 }
 0x23b   : > { %v1034_v47 = vpop.f32.mrf.mxu3  ;;  %v1126_v4 = vpop.f32.mrf.mxu2 }
 0x23c   : > { %v1035_v61 = vadd.f32 %v1034_v47, %v1011_v45  ;;  %v9283_v47 = vld [vmem:[%s13244_s3 + $0x7c] sm:$0xf0] }
 0x243   : > { %v1036_v48 = vpop.f32.mrf.mxu3  ;;  %v1128_v25 = vpop.f32.mrf.mxu2 }
 0x244   : > { %v1037_v27 = vadd.f32 %v1036_v48, %v1013_v28 }
 0x246   : > { %v1048_v50 = vpack.c.bf16 %v1037_v27, %v1035_v61  ;;  %v7225_v61 = vor.u32 %v9283_v47, %v7224_v29  ;;  %v7193_v27 = vld [vmem:[%s13244_s3 + $0x60] sm:$0xf] }
 0x248   : > { %7175 = vmatmul.msk.bf16.vlgmr.msra.gmra.mxu2 %vm1160_vm2, %v1048_v50  ;;  %v9279_v50 = vld [vmem:[%s13244_s3 + $0x64] sm:$0xf0] }
 0x249   : > { %1418 = vmatpush.bf16.msra.mxu2 %v10079_v56 }
 0x24b   : > { %v1039_v62 = vpop.f32.mrf.mxu3  ;;  %v1131_v57 = vpop.f32.mrf.mxu2 }
 0x24c   : > { %v1040_v19 = vadd.f32 %v1039_v62, %v1016_v40  ;;  %v1263_v40 = vpack.c.b16 %v1257_v44, %v1257_v44  ;;  %v9285_v62 = vld [vmem:[%s13244_s3 + $0x8c] sm:$0xf0] }
 0x24d   : > { %1419 = vmatpush.bf16.msra.mxu2 %v10087_v5 }
 0x251   : > { %1420 = vmatpush.bf16.msra.mxu2 %v10095_v11 }
 0x253   : > { %v1041_v12 = vpop.f32.mrf.mxu3  ;;  %v1133_v1 = vpop.f32.mrf.mxu2 }
 0x254   : > { %v1042_v54 = vadd.f32 %v1041_v12, %v1018_v46  ;;  %v7185_v46 = vld [vmem:[%s13244_s3 + $0x50] sm:$0xf]  ;;  %v7194_v12 = vor.u32 %v9279_v50, %v7193_v27 }
 0x255   : > { %1421 = vmatpush.bf16.msra.mxu2 %v10105_v15 }
 0x256   : > { %v1049_v6 = vpack.c.bf16 %v1042_v54, %v1040_v19  ;;  %v9298_v54 = vld [vmem:[%s13245_s4 + $0x50] sm:$0xff] }
 0x258   : > { %7176 = vmatmul.msk.bf16.gmra.mxu2 %vm1160_vm2, %v1049_v6  ;;  %v10419_v6 = vld [vmem:[%s13244_s3 + $0x98] sm:$0x33] }
 0x259   : > { %1422 = vmatpush.bf16.msra.mxu2 %v10111_v16 }
 0x25b   : > { %v1044_v58 = vpop.f32.mrf.mxu3  ;;  %v1136_v7 = vpop.f32.mrf.mxu2 }
 0x25c   : > { %v1045_v60 = vadd.f32 %v1044_v58, %v1021_v34  ;;  %v9277_v34 = vld [vmem:[%s13244_s3 + $0x54] sm:$0xf0]  ;;  %v1398_v58 = vunpack.c.l.b16 %v10419_v6 }
 0x25d   : > { %1423 = vmatpush.bf16.msra.mxu2 %v10045_v55  ;;  %v7186_v48 = vor.u32 %v9277_v34, %v7185_v46 }
 0x25e   : > { %v1050_v2 = vpack.c.bf16 %v1045_v60, %v1045_v60 }
 0x261   : > { %1424 = vmatpush.bf16.msra.mxu2 %v10037_v38 }
 0x263   : > { %v1046_v0 = vpop.f32.mrf.mxu3  ;;  %v1138_v17 = vpop.f32.mrf.mxu2 }
 0x264   : > { %v1404_v0 = vpack.c.b16 %v1398_v58, %v1398_v58  ;;  %v7273_v17 = vld [vmem:[%s13244_s3 + $0xb8] sm:$0xf0] }
 0x265   : > { %1425 = vmatpush.bf16.msra.mxu2 %v10029_v21 }
 0x268   : > { %7177 = vmatmul.msk.bf16.gmra.mxu2 %vm1160_vm2, %v1050_v2  ;;  %v9288_v2 = vld [vmem:[%s13244_s3 + $0xa4] sm:$0xf] }
 0x26b   : > { %v1103_v3 = vpop.f32.mrf.mxu3 }
 0x26c   : > { %v1127_v14 = vadd.f32 %v1126_v4, %v1103_v3  ;;  %v7232_v4 = vld [vmem:[%s13244_s3 + $0x88] sm:$0xf]  ;;  %v7265_v3 = vld [vmem:[%s13244_s3 + $0xa8] sm:$0xf0] }
 0x26d   : > { %v7233_v19 = vor.u32 %v9285_v62, %v7232_v4  ;;  %v7268_v8 = vor.u32 %v9288_v2, %v7265_v3  ;;  %v9282_v3 = vld [vmem:[%s13244_s3 + $0x7c] sm:$0xf] }
 0x273   : > { %v1105_v13 = vpop.f32.mrf.mxu3 }
 0x274   : > { %v1129_v63 = vadd.f32 %v1128_v25, %v1105_v13  ;;  %v9299_v25 = vld [vmem:[%s13245_s4 + $0x58] sm:$0xff] }
 0x276   : > { %v1140_v18 = vpack.c.bf16 %v1129_v63, %v1127_v14 }
 0x278   : > { %7164 = vmatmul.msk.bf16.vlgmr.msra.gmra.mxu3 %vm1160_vm2, %v1140_v18  ;;  %7199 = vmatmul.msk.bf16.vlgmr.msrb.gmra.mxu2 %vm986_vm1, %v7190_v10  ;;  %v9290_v10 = vld [vmem:[%s13244_s3 + $0xb4] sm:$0xf] }
 0x279   : > { %1584 = vmatpush.bf16.msrb.mxu2 %v10184_v35  ;;  %1357 = vmatpush.bf16.msra.mxu3 %v9281_v22  ;;  %v7276_v18 = vor.u32 %v9290_v10, %v7273_v17  ;;  %v9284_v17 = vld [vmem:[%s13244_s3 + $0x8c] sm:$0xf] }
 0x27b   : > { %v1108_v24 = vpop.f32.mrf.mxu3 }
 0x27c   : > { %v1132_v32 = vadd.f32 %v1131_v57, %v1108_v24  ;;  %v1256_v57 = vunpack.c.l.b16 %v7182_v42  ;;  %v1541_v24 = vunpack.c.h.b16 %v10173_v52 }
 0x27d   : > { %1585 = vmatpush.bf16.msrb.mxu2 %v10192_v33  ;;  %1358 = vmatpush.bf16.msra.mxu3 %v9280_v23 }
 0x27e   : > { %v1262_v60 = vpack.c.b16 %v1256_v57, %v1256_v57  ;;  %v1547_v51 = vpack.c.b16 %v1541_v24, %v1541_v24 }
 0x281   : > { %1586 = vmatpush.bf16.msrb.mxu2 %v10201_v26 }
 0x283   : > { %v1110_v31 = vpop.f32.mrf.mxu3 }
 0x284   : > { %v1134_v36 = vadd.f32 %v1133_v1, %v1110_v31 }
 0x285   : > { %1587 = vmatpush.bf16.msrb.mxu2 %v10209_v49 }
 0x286   : > { %v1141_v41 = vpack.c.bf16 %v1134_v36, %v1132_v32 }
 0x288   : > { %7165 = vmatmul.msk.bf16.gmra.mxu3 %vm1160_vm2, %v1141_v41  ;;  %7200 = vmatmul.msk.bf16.gmra.mxu2 %vm986_vm1, %v7198_v37 }
 0x289   : > { %1588 = vmatpush.bf16.msrb.mxu2 %v10216_v53 }
 0x28b   : > { %v1113_v39 = vpop.f32.mrf.mxu3 }
 0x28c   : > { %v1137_v43 = vadd.f32 %v1136_v7, %v1113_v39 }
 0x28d   : > { %1589 = vmatpush.bf16.msrb.mxu2 %v10222_v20 }
 0x28e   : > { %v1142_v28 = vpack.c.bf16 %v1137_v43, %v1137_v43 }
 0x291   : > { %1590 = vmatpush.bf16.msrb.mxu2 %v10246_v59 }
 0x293   : > { %v1115_v45 = vpop.f32.mrf.mxu3 }
 0x298   : > { %7166 = vmatmul.msk.bf16.gmra.mxu3 %vm1160_vm2, %v1142_v28  ;;  %7201 = vmatmul.msk.bf16.gmra.mxu2 %vm986_vm1, %v1263_v40 }
 0x2a8   : > { %1284 = vmatmul.bf16.vlgmr.msrb.gmra.mxu3 %v7186_v48  ;;  %1426 = vmatmul.bf16.vlgmr.msra.gmra.mxu2 %v7225_v61  ;;  %v9293_v48 = vld [vmem:[%s13245_s4 + $0x48] sm:$0xff]  ;;  %v9292_v61 = vld [vmem:[%s13245_s4 + $0x40] sm:$0xff] }
 0x2a9   : > { %1442 = vmatpush.bf16.msrb.mxu3 %v10184_v35  ;;  %1783 = vmatpush.bf16.msra.mxu2 %v9299_v25 }
 0x2ad   : > { %1443 = vmatpush.bf16.msrb.mxu3 %v10192_v33  ;;  %1784 = vmatpush.bf16.msra.mxu2 %v9298_v54 }
 0x2b1   : > { %1444 = vmatpush.bf16.msrb.mxu3 %v10201_v26 }
 0x2b5   : > { %1445 = vmatpush.bf16.msrb.mxu3 %v10209_v49 }
 0x2b8   : > { %1289 = vmatmul.bf16.gmra.mxu3 %v7194_v12  ;;  %1431 = vmatmul.bf16.gmra.mxu2 %v7233_v19 }
 0x2b9   : > { %1446 = vmatpush.bf16.msrb.mxu3 %v10216_v53 }
 0x2bd   : > { %1447 = vmatpush.bf16.msrb.mxu3 %v10222_v20 }
 0x2c1   : > { %1448 = vmatpush.bf16.msrb.mxu3 %v10246_v59 }
 0x2c8   : > { %1294 = vmatmul.bf16.gmra.mxu3 %v1262_v60  ;;  %1436 = vmatmul.bf16.gmra.mxu2 %v1404_v0 }
 0x2cb   : > { %v1223_v1 = vpop.f32.mrf.mxu2 }
 0x2d3   : > { %v10429_v7 = vpop.f32.mrf.mxu2 }
 0x2d8   : > { %7277 = vmatmul.msk.bf16.vlgmr.msrb.gmra.mxu2 %vm986_vm1, %v7268_v8  ;;  %v7226_v8 = vld [vmem:[%s13244_s3 + $0x80] sm:$0xf0] }
 0x2d9   : > { %1986 = vmatpush.bf16.msrb.mxu2 %v10079_v56 }
 0x2db   : > { %v1228_v9 = vpop.f32.mrf.mxu2 }
 0x2dd   : > { %1987 = vmatpush.bf16.msrb.mxu2 %v10087_v5 }
 0x2e1   : > { %1988 = vmatpush.bf16.msrb.mxu2 %v10095_v11 }
 0x2e3   : > { %v10435_v13 = vpop.f32.mrf.mxu2 }
 0x2e5   : > { %1989 = vmatpush.bf16.msrb.mxu2 %v10105_v15 }
 0x2e8   : > { %7278 = vmatmul.msk.bf16.gmra.mxu2 %vm986_vm1, %v7276_v18  ;;  %v7234_v18 = vld [vmem:[%s13244_s3 + $0x90] sm:$0xf0] }
 0x2e9   : > { %1990 = vmatpush.bf16.msrb.mxu2 %v10111_v16 }
 0x2eb   : > { %v1233_v14 = vpop.f32.mrf.mxu2 }
 0x2ed   : > { %1991 = vmatpush.bf16.msrb.mxu2 %v10045_v55 }
 0x2f1   : > { %1992 = vmatpush.bf16.msrb.mxu2 %v10037_v38 }
 0x2f3   : > { %v1235_v63 = vpop.f32.mrf.mxu2 }
 0x2f4   : > { %v1569_v63 = vpop.f32.mrf.mxu1 }
 0x2f5   : > { %1993 = vmatpush.bf16.msrb.mxu2 %v10029_v21 }
 0x2f8   : > { %7279 = vmatmul.msk.bf16.gmra.mxu2 %vm986_vm1, %v1547_v51 }
 0x2fb   : > { %v1179_v22 = vpop.f32.mrf.mxu3  ;;  %v1308_v31 = vpop.f32.mrf.mxu2 }
 0x2fc   : > { %v10449_v23 = vadd.f32 %v1223_v1, %v1179_v22  ;;  %v7237_v22 = vor.u32 %v9284_v17, %v7234_v18  ;;  %v1571_v24 = vpop.f32.mrf.mxu1  ;;  %v10548_v17 = vld [vmem:[%s13244_s3 + $0x110] sm:$0x33] }
 0x2fd   : > { %v1824_v18 = vunpack.c.l.b16 %v10548_v17 }
 0x303   : > { %v10452_v30 = vpop.f32.mrf.mxu3  ;;  %v1310_v37 = vpop.f32.mrf.mxu2 }
 0x30b   : > { %v1184_v32 = vpop.f32.mrf.mxu3  ;;  %v1313_v39 = vpop.f32.mrf.mxu2 }
 0x30c   : > { %v10455_v36 = vadd.f32 %v1228_v9, %v1184_v32 }
 0x313   : > { %v10457_v41 = vpop.f32.mrf.mxu3  ;;  %v1315_v45 = vpop.f32.mrf.mxu2 }
 0x31b   : > { %v1189_v42 = vpop.f32.mrf.mxu3  ;;  %v1318_v52 = vpop.f32.mrf.mxu2 }
 0x31c   : > { %v10459_v43 = vadd.f32 %v1233_v14, %v1189_v42  ;;  %v7229_v14 = vor.u32 %v9282_v3, %v7226_v8  ;;  %v9303_v3 = vld [vmem:[%s13244_s3 + $0x104] sm:$0xf0] }
 0x31d   : > { %v9317_v8 = vld [vmem:[%s13245_s4 + $0x88] sm:$0xff] }
 0x323   : > { %v1191_v44 = vpop.f32.mrf.mxu3  ;;  %v1320_v46 = vpop.f32.mrf.mxu2 }
 0x32b   : > { %v1285_v28 = vpop.f32.mrf.mxu3  ;;  %v10468_v50 = vpop.f32.mrf.mxu2 }
 0x32c   : > { %v1309_v34 = vadd.f32 %v1308_v31, %v1285_v28  ;;  %v1574_v31 = vpop.f32.mrf.mxu1 }
 0x333   : > { %v1287_v40 = vpop.f32.mrf.mxu3  ;;  %v10470_v62 = vpop.f32.mrf.mxu2 }
 0x334   : > { %v1311_v29 = vadd.f32 %v1310_v37, %v1287_v40  ;;  %v1399_v37 = vunpack.c.h.b16 %v10419_v6  ;;  %v1576_v42 = vpop.f32.mrf.mxu1 }
 0x336   : > { %v1322_v47 = vpack.c.bf16 %v1311_v29, %v1309_v34 }
 0x338   : > { %7214 = vmatmul.msk.bf16.vlgmr.msra.gmra.mxu3 %vm1160_vm2, %v1322_v47 }
 0x339   : > { %1641 = vmatpush.bf16.msra.mxu3 %v9293_v48 }
 0x33b   : > { %v1290_v27 = vpop.f32.mrf.mxu3  ;;  %v10473_v57 = vpop.f32.mrf.mxu2 }
 0x33c   : > { %v1314_v25 = vadd.f32 %v1313_v39, %v1290_v27  ;;  %v1405_v39 = vpack.c.b16 %v1399_v37, %v1399_v37 }
 0x33d   : > { %1642 = vmatpush.bf16.msra.mxu3 %v9292_v61 }
 0x343   : > { %v1292_v4 = vpop.f32.mrf.mxu3  ;;  %v10475_v0 = vpop.f32.mrf.mxu2 }
 0x344   : > { %v1316_v12 = vadd.f32 %v1315_v45, %v1292_v4 }
 0x346   : > { %v1323_v19 = vpack.c.bf16 %v1316_v12, %v1314_v25  ;;  %v7341_v12 = vld [vmem:[%s13244_s3 + $0xf0] sm:$0xf] }
 0x348   : > { %7215 = vmatmul.msk.bf16.gmra.mxu3 %vm1160_vm2, %v1323_v19  ;;  %v9301_v19 = vld [vmem:[%s13244_s3 + $0xf4] sm:$0xf0] }
 0x34b   : > { %v1295_v54 = vpop.f32.mrf.mxu3  ;;  %v10478_v2 = vpop.f32.mrf.mxu2 }
 0x34c   : > { %v1319_v58 = vadd.f32 %v1318_v52, %v1295_v54  ;;  %v1579_v52 = vpop.f32.mrf.mxu1 }
 0x34e   : > { %v1324_v1 = vpack.c.bf16 %v1319_v58, %v1319_v58  ;;  %v7342_v58 = vor.u32 %v9301_v19, %v7341_v12  ;;  %v9311_v12 = vld [vmem:[%s13245_s4 + $0x78] sm:$0xff]  ;;  %v9310_v19 = vld [vmem:[%s13245_s4 + $0x70] sm:$0xff] }
 0x353   : > { %v1297_v60 = vpop.f32.mrf.mxu3  ;;  %v1439_v9 = vpop.f32.mrf.mxu2 }
 0x354   : > { %v1581_v34 = vpop.f32.mrf.mxu1 }
 0x358   : > { %7216 = vmatmul.msk.bf16.gmra.mxu3 %vm1160_vm2, %v1324_v1 }
 0x35b   : > { %v1592_v10 = vpop.f32.mrf.mxu2 }
 0x35c   : > { %v1593_v45 = vadd.f32 %v1592_v10, %v1569_v63 }
 0x363   : > { %v1594_v51 = vpop.f32.mrf.mxu2 }
 0x364   : > { %v1595_v28 = vadd.f32 %v1594_v51, %v1571_v24  ;;  %v1830_v24 = vpack.c.b16 %v1824_v18, %v1824_v18 }
 0x366   : > { %v1606_v46 = vpack.c.bf16 %v1595_v28, %v1593_v45 }
 0x368   : > { %7238 = vmatmul.msk.bf16.vlgmr.msrb.gmra.mxu3 %vm986_vm1, %v7229_v14 }
 0x369   : > { %1844 = vmatpush.bf16.msrb.mxu3 %v10079_v56 }
 0x36b   : > { %v1597_v32 = vpop.f32.mrf.mxu2 }
 0x36c   : > { %v1598_v29 = vadd.f32 %v1597_v32, %v1574_v31  ;;  %v9306_v31 = vld [vmem:[%s13244_s3 + $0x11c] sm:$0xf] }
 0x36d   : > { %1845 = vmatpush.bf16.msrb.mxu3 %v10087_v5 }
 0x371   : > { %1846 = vmatpush.bf16.msrb.mxu3 %v10095_v11 }
 0x373   : > { %v1599_v44 = vpop.f32.mrf.mxu2 }
 0x374   : > { %v1600_v47 = vadd.f32 %v1599_v44, %v1576_v42 }
 0x375   : > { %1847 = vmatpush.bf16.msrb.mxu3 %v10105_v15 }
 0x376   : > { %v1607_v48 = vpack.c.bf16 %v1600_v47, %v1598_v29  ;;  %v7299_v47 = vld [vmem:[%s13244_s3 + $0xe8] sm:$0x33] }
 0x378   : > { %7239 = vmatmul.msk.bf16.gmra.mxu3 %vm986_vm1, %v7237_v22 }
 0x379   : > { %1848 = vmatpush.bf16.msrb.mxu3 %v10111_v16 }
 0x37b   : > { %v1602_v40 = vpop.f32.mrf.mxu2 }
 0x37c   : > { %v1603_v61 = vadd.f32 %v1602_v40, %v1579_v52  ;;  %v9296_v40 = vld [vmem:[%s13244_s3 + $0xdc] sm:$0xf] }
 0x37d   : > { %1849 = vmatpush.bf16.msrb.mxu3 %v10045_v55 }
 0x37e   : > { %v1608_v27 = vpack.c.bf16 %v1603_v61, %v1603_v61 }
 0x381   : > { %1850 = vmatpush.bf16.msrb.mxu3 %v10037_v38 }
 0x383   : > { %v1604_v6 = vpop.f32.mrf.mxu2 }
 0x385   : > { %1851 = vmatpush.bf16.msrb.mxu3 %v10029_v21 }
 0x388   : > { %7240 = vmatmul.msk.bf16.gmra.mxu3 %vm986_vm1, %v1405_v39 }
 0x398   : > { %7292 = vmatmul.msk.bf16.vlgmr.msra.gmra.mxu3 %vm1160_vm2, %v1606_v46  ;;  %v7312_v46 = vld [vmem:[%s13244_s3 + $0xe0] sm:$0xf0] }
 0x399   : > { %2010 = vmatpush.bf16.msra.mxu3 %v10184_v35 }
 0x39d   : > { %2011 = vmatpush.bf16.msra.mxu3 %v10192_v33 }
 0x3a1   : > { %2012 = vmatpush.bf16.msra.mxu3 %v10201_v26 }
 0x3a5   : > { %2013 = vmatpush.bf16.msra.mxu3 %v10209_v49 }
 0x3a8   : > { %7293 = vmatmul.msk.bf16.gmra.mxu3 %vm1160_vm2, %v1607_v48  ;;  %v1683_v48 = vunpack.c.h.b16 %v7299_v47 }
 0x3a9   : > { %2014 = vmatpush.bf16.msra.mxu3 %v10216_v53 }
 0x3aa   : > { %v1689_v61 = vpack.c.b16 %v1683_v48, %v1683_v48 }
 0x3ad   : > { %2015 = vmatpush.bf16.msra.mxu3 %v10222_v20 }
 0x3b1   : > { %2016 = vmatpush.bf16.msra.mxu3 %v10246_v59 }
 0x3b8   : > { %7294 = vmatmul.msk.bf16.gmra.mxu3 %vm1160_vm2, %v1608_v27  ;;  %v9295_v27 = vld [vmem:[%s13244_s3 + $0xcc] sm:$0xf0] }
 0x3bb   : > { %v1360_v4 = vpop.f32.mrf.mxu3 }
 0x3bc   : > { %v10515_v25 = vadd.f32 %v1360_v4, %v10449_v23  ;;  %v7349_v23 = vld [vmem:[%s13244_s3 + $0x100] sm:$0xf] }
 0x3bd   : > { %v7350_v14 = vor.u32 %v9303_v3, %v7349_v23  ;;  %v1682_v3 = vunpack.c.l.b16 %v7299_v47 }
 0x3c3   : > { %v10523_v54 = vpop.f32.mrf.mxu3 }
 0x3c8   : > { %1852 = vmatmul.bf16.vlgmr.msrb.gmra.mxu3 %v7342_v58  ;;  %v7310_v58 = vld [vmem:[%s13244_s3 + $0xd8] sm:$0xf] }
 0x3c9   : > { %2209 = vmatpush.bf16.msrb.mxu3 %v9317_v8  ;;  %v1688_v8 = vpack.c.b16 %v1682_v3, %v1682_v3 }
 0x3cb   : > { %v1365_v60 = vpop.f32.mrf.mxu3 }
 0x3cc   : > { %v10526_v1 = vadd.f32 %v1365_v60, %v10455_v36  ;;  %v9316_v36 = vld [vmem:[%s13245_s4 + $0x80] sm:$0xff] }
 0x3cd   : > { %2210 = vmatpush.bf16.msrb.mxu3 %v9316_v36  ;;  %v9297_v60 = vld [vmem:[%s13244_s3 + $0xdc] sm:$0xf0]  ;;  %v7343_v36 = vld [vmem:[%s13244_s3 + $0xf8] sm:$0xf0] }
 0x3ce   : > { %v7311_v23 = vor.u32 %v9297_v60, %v7310_v58 }
 0x3d3   : > { %v10537_v9 = vpop.f32.mrf.mxu3 }
 0x3d8   : > { %1857 = vmatmul.bf16.gmra.mxu3 %v7350_v14  ;;  %v9300_v14 = vld [vmem:[%s13244_s3 + $0xf4] sm:$0xf] }
 0x3db   : > { %v1370_v63 = vpop.f32.mrf.mxu3 }
 0x3dc   : > { %v10543_v10 = vadd.f32 %v1370_v63, %v10459_v43  ;;  %v7382_v43 = vld [vmem:[%s13244_s3 + $0x120] sm:$0xf0]  ;;  %v7346_v63 = vor.u32 %v9300_v14, %v7343_v36 }
 0x3dd   : > { %v7385_v42 = vor.u32 %v9306_v31, %v7382_v43 }
 0x3e3   : > { %v1372_v22 = vpop.f32.mrf.mxu3 }
 0x3e8   : > { %1862 = vmatmul.bf16.gmra.mxu3 %v1830_v24  ;;  %v9302_v24 = vld [vmem:[%s13244_s3 + $0x104] sm:$0xf] }
 0x3eb   : > { %v1450_v51 = vpop.f32.mrf.mxu3 }
 0x3ec   : > { %v1451_v37 = vadd.f32 %v1450_v51, %v10468_v50  ;;  %v7351_v51 = vld [vmem:[%s13244_s3 + $0x108] sm:$0xf0] }
 0x3ed   : > { %v7354_v31 = vor.u32 %v9302_v24, %v7351_v51 }
 0x3f3   : > { %v1452_v32 = vpop.f32.mrf.mxu3 }
 0x3f4   : > { %v1453_v39 = vadd.f32 %v1452_v32, %v10470_v62 }
 0x3f6   : > { %v1464_v44 = vpack.c.bf16 %v1453_v39, %v1451_v37  ;;  %v1825_v37 = vunpack.c.h.b16 %v10548_v17 }
 0x3f8   : > { %7253 = vmatmul.msk.bf16.vlgmr.msrb.gmra.mxu0 %vm1160_vm2, %v1464_v44  ;;  %7394 = vmatmul.msk.bf16.vlgmr.msra.gmra.mxu3 %vm986_vm1, %v7385_v42  ;;  %v1831_v39 = vpack.c.b16 %v1825_v37, %v1825_v37 }
 0x3f9   : > { %1868 = vmatpush.bf16.msrb.mxu0 %v10184_v35  ;;  %2412 = vmatpush.bf16.msra.mxu3 %v10079_v56 }
 0x3fb   : > { %v1455_v45 = vpop.f32.mrf.mxu3 }
 0x3fc   : > { %v1456_v62 = vadd.f32 %v1455_v45, %v10473_v57  ;;  %v7315_v57 = vor.u32 %v9296_v40, %v7312_v46 }
 0x3fd   : > { %1869 = vmatpush.bf16.msrb.mxu0 %v10192_v33  ;;  %2413 = vmatpush.bf16.msra.mxu3 %v10087_v5 }
 0x3fe   : > { %7317 = vmatmul.msk.bf16.gmra.mxu1 %vm986_vm1, %v7315_v57 }
 0x401   : > { %1870 = vmatpush.bf16.msrb.mxu0 %v10201_v26  ;;  %2414 = vmatpush.bf16.msra.mxu3 %v10095_v11 }
 0x403   : > { %v1457_v50 = vpop.f32.mrf.mxu3 }
 0x404   : > { %v1458_v28 = vadd.f32 %v1457_v50, %v10475_v0 }
 0x405   : > { %1871 = vmatpush.bf16.msrb.mxu0 %v10209_v49  ;;  %2415 = vmatpush.bf16.msra.mxu3 %v10105_v15 }
 0x406   : > { %v1465_v52 = vpack.c.bf16 %v1458_v28, %v1456_v62 }
 0x408   : > { %7254 = vmatmul.msk.bf16.gmra.mxu0 %vm1160_vm2, %v1465_v52  ;;  %v1734_v52 = vpop.f32.mrf.mxu1 }
 0x409   : > { %1872 = vmatpush.bf16.msrb.mxu0 %v10216_v53  ;;  %2416 = vmatpush.bf16.msra.mxu3 %v10111_v16 }
 0x40b   : > { %v1460_v0 = vpop.f32.mrf.mxu3 }
 0x40c   : > { %v1461_v34 = vadd.f32 %v1460_v0, %v10478_v2  ;;  %v7302_v2 = vld [vmem:[%s13244_s3 + $0xc8] sm:$0xf] }
 0x40d   : > { %1873 = vmatpush.bf16.msrb.mxu0 %v10222_v20  ;;  %2417 = vmatpush.bf16.msra.mxu3 %v10045_v55  ;;  %v7303_v4 = vor.u32 %v9295_v27, %v7302_v2 }
 0x40e   : > { %v1466_v29 = vpack.c.bf16 %v1461_v34, %v1461_v34  ;;  %7318 = vmatmul.msk.bf16.gmra.mxu1 %vm986_vm1, %v1689_v61 }
 0x410   : > { %v1736_v57 = vpop.f32.mrf.mxu1 }
 0x411   : > { %1874 = vmatpush.bf16.msrb.mxu0 %v10246_v59  ;;  %2418 = vmatpush.bf16.msra.mxu3 %v10037_v38 }
 0x413   : > { %v1462_v6 = vpop.f32.mrf.mxu3 }
 0x415   : > { %2419 = vmatpush.bf16.msra.mxu3 %v10029_v21 }
 0x418   : > { %7255 = vmatmul.msk.bf16.gmra.mxu0 %vm1160_vm2, %v1466_v29 }
 0x41b   : > { %v1644_v18 = vpop.f32.mrf.mxu3 }
 0x423   : > { %v10619_v22 = vpop.f32.mrf.mxu3 }
 0x428   : > { %1710 = vmatmul.bf16.vlgmr.msra.gmra.mxu0 %v7303_v4 }
 0x429   : > { %2067 = vmatpush.bf16.msra.mxu0 %v9311_v12 }
 0x42b   : > { %v1649_v43 = vpop.f32.mrf.mxu3 }
 0x42d   : > { %2068 = vmatpush.bf16.msra.mxu0 %v9310_v19 }
 0x433   : > { %v10632_v32 = vpop.f32.mrf.mxu3 }
 0x438   : > { %1715 = vmatmul.bf16.gmra.mxu0 %v7311_v23 }
 0x43b   : > { %v1654_v45 = vpop.f32.mrf.mxu3 }
 0x443   : > { %v1656_v28 = vpop.f32.mrf.mxu3 }
 0x448   : > { %1720 = vmatmul.bf16.gmra.mxu0 %v1688_v8 }
 0x44b   : > { %v1853_v60 = vpop.f32.mrf.mxu3 }
 0x453   : > { %v1855_v8 = vpop.f32.mrf.mxu3 }
 0x458   : > { %7355 = vmatmul.msk.bf16.vlgmr.msrb.gmra.mxu0 %vm986_vm1, %v7346_v63  ;;  %v9308_v63 = vld [vmem:[%s13244_s3 + $0x12c] sm:$0xf] }
 0x459   : > { %2270 = vmatpush.bf16.msrb.mxu0 %v10079_v56 }
 0x45b   : > { %v1858_v51 = vpop.f32.mrf.mxu3 }
 0x45d   : > { %2271 = vmatpush.bf16.msrb.mxu0 %v10087_v5 }
 0x461   : > { %2272 = vmatpush.bf16.msrb.mxu0 %v10095_v11 }
 0x465   : > { %2273 = vmatpush.bf16.msrb.mxu0 %v10105_v15 }
 0x468   : > { %7356 = vmatmul.msk.bf16.gmra.mxu0 %vm986_vm1, %v7354_v31 }
 0x469   : > { %2274 = vmatpush.bf16.msrb.mxu0 %v10111_v16 }
 0x46d   : > { %2275 = vmatpush.bf16.msrb.mxu0 %v10045_v55 }
 0x471   : > { %2276 = vmatpush.bf16.msrb.mxu0 %v10037_v38 }
 0x475   : > { %2277 = vmatpush.bf16.msrb.mxu0 %v10029_v21  ;;  %v1502_v42 = vpop.f32.mrf.mxu0 }
 0x476   : > { %v1516_v44 = vadd.f32 %v1502_v42, %v10515_v25 }
 0x478   : > { %v10638_v50 = vadd.f32 %v1644_v18, %v1516_v44  ;;  %7357 = vmatmul.msk.bf16.gmra.mxu0 %vm986_vm1, %v1831_v39  ;;  %v7390_v18 = vld [vmem:[%s13244_s3 + $0x130] sm:$0xf0]  ;;  %v1860_v39 = vpop.f32.mrf.mxu3  ;;  %v7380_v44 = vld [vmem:[%s13244_s3 + $0x118] sm:$0xf] }
 0x479   : > { %v7393_v24 = vor.u32 %v9308_v63, %v7390_v18  ;;  %v7419_v18 = vld [vmem:[%s13244_s3 + $0x140] sm:$0xf] }
 0x47b   : > { %v1739_v34 = vpop.f32.mrf.mxu1  ;;  %7395 = vmatmul.msk.bf16.gmra.mxu3 %vm986_vm1, %v7393_v24  ;;  %v9313_v24 = vld [vmem:[%s13244_s3 + $0x144] sm:$0xf0] }
 0x47d   : > { %v10641_v62 = vpop.f32.mrf.mxu0 }
 0x480   : > { %v1863_v28 = vpop.f32.mrf.mxu3 }
 0x483   : > { %v1741_v48 = vpop.f32.mrf.mxu1 }
 0x485   : > { %v1507_v40 = vpop.f32.mrf.mxu0 }
 0x486   : > { %v1518_v17 = vadd.f32 %v1507_v40, %v10526_v1 }
 0x488   : > { %v10644_v46 = vadd.f32 %v1649_v43, %v1518_v17 }
 0x48b   : > { %v1744_v2 = vpop.f32.mrf.mxu1 }
 0x48d   : > { %v10646_v0 = vpop.f32.mrf.mxu0 }
 0x493   : > { %v1746_v4 = vpop.f32.mrf.mxu1 }
 0x494   : > { %v7388_v4 = vld [vmem:[%s13244_s3 + $0x128] sm:$0xf] }
 0x495   : > { %v1512_v6 = vpop.f32.mrf.mxu0 }
 0x496   : > { %v1520_v25 = vadd.f32 %v1512_v6, %v10543_v10 }
 0x498   : > { %v10649_v29 = vadd.f32 %v1654_v45, %v1520_v25  ;;  %v9307_v45 = vld [vmem:[%s13244_s3 + $0x11c] sm:$0xf0] }
 0x49d   : > { %v1514_v47 = vpop.f32.mrf.mxu0 }
 0x4a5   : > { %v1711_v61 = vpop.f32.mrf.mxu0 }
 0x4a6   : > { %v1735_v12 = vadd.f32 %v1734_v52, %v1711_v61  ;;  %v1865_v61 = vpop.f32.mrf.mxu3 }
 0x4ad   : > { %v1713_v27 = vpop.f32.mrf.mxu0 }
 0x4ae   : > { %v1737_v19 = vadd.f32 %v1736_v57, %v1713_v27  ;;  %v7381_v57 = vor.u32 %v9307_v45, %v7380_v44  ;;  %v9314_v44 = vld [vmem:[%s13244_s3 + $0x154] sm:$0xf]  ;;  %v7429_v45 = vld [vmem:[%s13244_s3 + $0x158] sm:$0xf0] }
 0x4b0   : > { %v1748_v1 = vpack.c.bf16 %v1737_v19, %v1735_v12  ;;  %v9309_v12 = vld [vmem:[%s13244_s3 + $0x12c] sm:$0xf0] }
 0x4b2   : > { %7331 = vmatmul.msk.bf16.vlgmr.msra.gmra.mxu2 %vm1160_vm2, %v1748_v1 }
 0x4b3   : > { %2152 = vmatpush.bf16.msra.mxu2 %v10184_v35 }
 0x4b5   : > { %v1716_v58 = vpop.f32.mrf.mxu0 }
 0x4b6   : > { %v1740_v23 = vadd.f32 %v1739_v34, %v1716_v58  ;;  %v7377_v34 = vld [vmem:[%s13244_s3 + $0x138] sm:$0x33] }
 0x4b7   : > { %2153 = vmatpush.bf16.msra.mxu2 %v10192_v33  ;;  %v1967_v6 = vunpack.c.h.b16 %v7377_v34 }
 0x4b9   : > { %v1973_v47 = vpack.c.b16 %v1967_v6, %v1967_v6 }
 0x4bb   : > { %2154 = vmatpush.bf16.msra.mxu2 %v10201_v26  ;;  %7396 = vmatmul.msk.bf16.gmra.mxu3 %vm986_vm1, %v1973_v47 }
 0x4bd   : > { %v1718_v10 = vpop.f32.mrf.mxu0 }
 0x4be   : > { %v1742_v3 = vadd.f32 %v1741_v48, %v1718_v10  ;;  %v9323_v48 = vld [vmem:[%s13245_s4 + $0x98] sm:$0xff] }
 0x4bf   : > { %2155 = vmatpush.bf16.msra.mxu2 %v10209_v49 }
 0x4c0   : > { %v1749_v14 = vpack.c.bf16 %v1742_v3, %v1740_v23 }
 0x4c2   : > { %7332 = vmatmul.msk.bf16.gmra.mxu2 %vm1160_vm2, %v1749_v14 }
 0x4c3   : > { %2156 = vmatpush.bf16.msra.mxu2 %v10216_v53 }
 0x4c5   : > { %v1721_v36 = vpop.f32.mrf.mxu0 }
 0x4c6   : > { %v1745_v31 = vadd.f32 %v1744_v2, %v1721_v36  ;;  %v9322_v2 = vld [vmem:[%s13245_s4 + $0x90] sm:$0xff] }
 0x4c7   : > { %2157 = vmatpush.bf16.msra.mxu2 %v10222_v20 }
 0x4c8   : > { %v1750_v37 = vpack.c.bf16 %v1745_v31, %v1745_v31  ;;  %v7421_v31 = vld [vmem:[%s13244_s3 + $0x148] sm:$0xf0] }
 0x4cb   : > { %2158 = vmatpush.bf16.msra.mxu2 %v10246_v59 }
 0x4cd   : > { %v1723_v43 = vpop.f32.mrf.mxu0 }
 0x4ce   : > { %v7420_v43 = vor.u32 %v9313_v24, %v7419_v18 }
 0x4d2   : > { %7333 = vmatmul.msk.bf16.gmra.mxu2 %vm1160_vm2, %v1750_v37 }
 0x4d5   : > { %v1876_v42 = vpop.f32.mrf.mxu0 }
 0x4d6   : > { %v1877_v52 = vadd.f32 %v1876_v42, %v1853_v60  ;;  %v7389_v60 = vor.u32 %v9309_v12, %v7388_v4  ;;  %v9315_v42 = vld [vmem:[%s13244_s3 + $0x154] sm:$0xf0] }
 0x4dd   : > { %v1878_v40 = vpop.f32.mrf.mxu0 }
 0x4de   : > { %v1879_v17 = vadd.f32 %v1878_v40, %v1855_v8  ;;  %v1966_v8 = vunpack.c.l.b16 %v7377_v34  ;;  %v7432_v40 = vor.u32 %v9314_v44, %v7429_v45 }
 0x4e0   : > { %v1890_v25 = vpack.c.bf16 %v1879_v17, %v1877_v52  ;;  %v1972_v63 = vpack.c.b16 %v1966_v8, %v1966_v8  ;;  %v9328_v17 = vld [vmem:[%s13245_s4 + $0xa0] sm:$0xff] }
 0x4e2   : > { %7370 = vmatmul.msk.bf16.vlgmr.msrb.gmra.mxu1 %vm1160_vm2, %v1890_v25  ;;  %1994 = vmatmul.bf16.vlgmr.msrb.gmra.mxu2 %v7381_v57  ;;  %v7416_v57 = vld [vmem:[%s13244_s3 + $0x160] sm:$0x33] }
 0x4e3   : > { %2294 = vmatpush.bf16.msrb.mxu1 %v10184_v35  ;;  %2351 = vmatpush.bf16.msrb.mxu2 %v9323_v48  ;;  %v2108_v34 = vunpack.c.l.b16 %v7416_v57  ;;  %v2109_v6 = vunpack.c.h.b16 %v7416_v57 }
 0x4e5   : > { %v1881_v27 = vpop.f32.mrf.mxu0  ;;  %v2114_v25 = vpack.c.b16 %v2108_v34, %v2108_v34  ;;  %v2115_v47 = vpack.c.b16 %v2109_v6, %v2109_v6 }
 0x4e6   : > { %v1882_v19 = vadd.f32 %v1881_v27, %v1858_v51  ;;  %v9312_v51 = vld [vmem:[%s13244_s3 + $0x144] sm:$0xf]  ;;  %v7460_v27 = vld [vmem:[%s13244_s3 + $0x170] sm:$0xf0] }
 0x4e7   : > { %2295 = vmatpush.bf16.msrb.mxu1 %v10192_v33  ;;  %2352 = vmatpush.bf16.msrb.mxu2 %v9322_v2  ;;  %v7424_v37 = vor.u32 %v9312_v51, %v7421_v31  ;;  %v9318_v2 = vld [vmem:[%s13244_s3 + $0x16c] sm:$0xf] }
 0x4e8   : > { %v7463_v12 = vor.u32 %v9318_v2, %v7460_v27 }
 0x4eb   : > { %2296 = vmatpush.bf16.msrb.mxu1 %v10201_v26 }
 0x4ed   : > { %v1883_v1 = vpop.f32.mrf.mxu0 }
 0x4ee   : > { %v1884_v58 = vadd.f32 %v1883_v1, %v1860_v39  ;;  %v7427_v39 = vld [vmem:[%s13244_s3 + $0x150] sm:$0xf] }
 0x4ef   : > { %2297 = vmatpush.bf16.msrb.mxu1 %v10209_v49  ;;  %v7428_v52 = vor.u32 %v9315_v42, %v7427_v39 }
 0x4f0   : > { %v1891_v10 = vpack.c.bf16 %v1884_v58, %v1882_v19  ;;  %v2018_v19 = vpop.f32.mrf.mxu3 }
 0x4f2   : > { %7371 = vmatmul.msk.bf16.gmra.mxu1 %vm1160_vm2, %v1891_v10  ;;  %1999 = vmatmul.bf16.gmra.mxu2 %v7389_v60 }
 0x4f3   : > { %2298 = vmatpush.bf16.msrb.mxu1 %v10216_v53 }
 0x4f5   : > { %v1886_v23 = vpop.f32.mrf.mxu0 }
 0x4f6   : > { %v1887_v3 = vadd.f32 %v1886_v23, %v1863_v28  ;;  %v9329_v28 = vld [vmem:[%s13245_s4 + $0xa8] sm:$0xff] }
 0x4f7   : > { %2299 = vmatpush.bf16.msrb.mxu1 %v10222_v20 }
 0x4f8   : > { %v1892_v36 = vpack.c.bf16 %v1887_v3, %v1887_v3 }
 0x4fb   : > { %2300 = vmatpush.bf16.msrb.mxu1 %v10246_v59 }
 0x4fd   : > { %v1888_v14 = vpop.f32.mrf.mxu0 }
 0x502   : > { %7372 = vmatmul.msk.bf16.gmra.mxu1 %vm1160_vm2, %v1892_v36  ;;  %2004 = vmatmul.bf16.gmra.mxu2 %v1972_v63 }
 0x512   : > { %2136 = vmatmul.bf16.vlgmr.msra.gmra.mxu1 %v7420_v43  ;;  %7433 = vmatmul.msk.bf16.vlgmr.msra.gmra.mxu2 %vm986_vm1, %v7424_v37 }
 0x513   : > { %2554 = vmatpush.bf16.msra.mxu2 %v10079_v56  ;;  %2493 = vmatpush.bf16.msra.mxu1 %v9329_v28 }
 0x517   : > { %2555 = vmatpush.bf16.msra.mxu2 %v10087_v5  ;;  %2494 = vmatpush.bf16.msra.mxu1 %v9328_v17 }
 0x51b   : > { %2556 = vmatpush.bf16.msra.mxu2 %v10095_v11 }
 0x51f   : > { %2557 = vmatpush.bf16.msra.mxu2 %v10105_v15 }
 0x522   : > { %2141 = vmatmul.bf16.gmra.mxu1 %v7428_v52  ;;  %7434 = vmatmul.msk.bf16.gmra.mxu2 %vm986_vm1, %v7432_v40 }
 0x523   : > { %2558 = vmatpush.bf16.msra.mxu2 %v10111_v16 }
 0x527   : > { %2559 = vmatpush.bf16.msra.mxu2 %v10045_v55 }
 0x52b   : > { %2560 = vmatpush.bf16.msra.mxu2 %v10037_v38 }
 0x52f   : > { %2561 = vmatpush.bf16.msra.mxu2 %v10029_v21 }
 0x532   : > { %2146 = vmatmul.bf16.gmra.mxu1 %v2114_v25  ;;  %7435 = vmatmul.msk.bf16.gmra.mxu2 %vm986_vm1, %v2115_v47  ;;  %v9320_v47 = vld [vmem:[%s13244_s3 + $0x17c] sm:$0xf] }
 0x535   : > { %v1786_v48 = vpop.f32.mrf.mxu2 }
 0x536   : > { %v1800_v61 = vadd.f32 %v1786_v48, %v10638_v50  ;;  %v2020_v50 = vpop.f32.mrf.mxu3  ;;  %v7468_v48 = vld [vmem:[%s13244_s3 + $0x180] sm:$0xf0] }
 0x53d   : > { %v10751_v4 = vpop.f32.mrf.mxu2 }
 0x53e   : > { %v2023_v10 = vpop.f32.mrf.mxu3 }
 0x542   : > { %7472 = vmatmul.msk.bf16.vlgmr.msrb.gmra.mxu1 %vm986_vm1, %v7463_v12 }
 0x543   : > { %2696 = vmatpush.bf16.msrb.mxu1 %v10079_v56 }
 0x545   : > { %v1791_v1 = vpop.f32.mrf.mxu2 }
 0x546   : > { %v1802_v58 = vadd.f32 %v1791_v1, %v10644_v46  ;;  %v2025_v8 = vpop.f32.mrf.mxu3 }
 0x547   : > { %2697 = vmatpush.bf16.msrb.mxu1 %v10087_v5 }
 0x54b   : > { %2698 = vmatpush.bf16.msrb.mxu1 %v10095_v11 }
 0x54d   : > { %v10758_v60 = vpop.f32.mrf.mxu2 }
 0x54e   : > { %v2028_v18 = vpop.f32.mrf.mxu3 }
 0x54f   : > { %2699 = vmatpush.bf16.msrb.mxu1 %v10105_v15 }
 0x553   : > { %2700 = vmatpush.bf16.msrb.mxu1 %v10111_v16 }
 0x555   : > { %v1796_v23 = vpop.f32.mrf.mxu2 }
 0x556   : > { %v1804_v3 = vadd.f32 %v1796_v23, %v10649_v29  ;;  %v2030_v37 = vpop.f32.mrf.mxu3 }
 0x557   : > { %2701 = vmatpush.bf16.msrb.mxu1 %v10045_v55  ;;  %v9334_v37 = vld [vmem:[%s13245_s4 + $0xb0] sm:$0xff] }
 0x55b   : > { %2702 = vmatpush.bf16.msrb.mxu1 %v10037_v38 }
 0x55d   : > { %v1798_v46 = vpop.f32.mrf.mxu2 }
 0x55f   : > { %2703 = vmatpush.bf16.msrb.mxu1 %v10029_v21  ;;  %v1928_v14 = vpop.f32.mrf.mxu1 }
 0x560   : > { %v10766_v36 = vadd.f32 %v1928_v14, %v1800_v61  ;;  %v7471_v61 = vor.u32 %v9320_v47, %v7468_v48  ;;  %v7455_v14 = vld [vmem:[%s13244_s3 + $0x188] sm:$0x33] }
 0x562   : > { %7473 = vmatmul.msk.bf16.gmra.mxu1 %vm986_vm1, %v7471_v61 }
 0x565   : > { %v1995_v63 = vpop.f32.mrf.mxu2 }
 0x566   : > { %v2019_v31 = vadd.f32 %v2018_v19, %v1995_v63 }
 0x567   : > { %v10768_v24 = vpop.f32.mrf.mxu1 }
 0x56d   : > { %v1997_v51 = vpop.f32.mrf.mxu2 }
 0x56e   : > { %v2021_v43 = vadd.f32 %v2020_v50, %v1997_v51  ;;  %v7458_v50 = vld [vmem:[%s13244_s3 + $0x168] sm:$0xf] }
 0x56f   : > { %v1933_v29 = vpop.f32.mrf.mxu1 }
 0x570   : > { %v2032_v39 = vpack.c.bf16 %v2021_v43, %v2019_v31  ;;  %v10770_v42 = vadd.f32 %v1933_v29, %v1802_v58  ;;  %v9335_v43 = vld [vmem:[%s13245_s4 + $0xb8] sm:$0xff] }
 0x572   : > { %7409 = vmatmul.msk.bf16.vlgmr.msra.gmra.mxu0 %vm1160_vm2, %v2032_v39 }
 0x573   : > { %2436 = vmatpush.bf16.msra.mxu0 %v10184_v35 }
 0x575   : > { %v2000_v44 = vpop.f32.mrf.mxu2 }
 0x576   : > { %v2024_v52 = vadd.f32 %v2023_v10, %v2000_v44  ;;  %v9319_v10 = vld [vmem:[%s13244_s3 + $0x16c] sm:$0xf0]  ;;  %v7466_v44 = vld [vmem:[%s13244_s3 + $0x178] sm:$0xf] }
 0x577   : > { %2437 = vmatpush.bf16.msra.mxu0 %v10192_v33  ;;  %v10775_v45 = vpop.f32.mrf.mxu1 }
 0x57b   : > { %2438 = vmatpush.bf16.msra.mxu0 %v10201_v26 }
 0x57d   : > { %v2002_v28 = vpop.f32.mrf.mxu2 }
 0x57e   : > { %v2026_v40 = vadd.f32 %v2025_v8, %v2002_v28  ;;  %v7459_v8 = vor.u32 %v9319_v10, %v7458_v50  ;;  %v9321_v28 = vld [vmem:[%s13244_s3 + $0x17c] sm:$0xf0]  ;;  %v9324_v50 = vld [vmem:[%s13244_s3 + $0x194] sm:$0xf]  ;;  %v7499_v10 = vld [vmem:[%s13244_s3 + $0x198] sm:$0xf0] }
 0x57f   : > { %2439 = vmatpush.bf16.msra.mxu0 %v10209_v49  ;;  %v1938_v17 = vpop.f32.mrf.mxu1 }
 0x580   : > { %v2033_v57 = vpack.c.bf16 %v2026_v40, %v2024_v52  ;;  %v10779_v34 = vadd.f32 %v1938_v17, %v1804_v3 }
 0x582   : > { %7410 = vmatmul.msk.bf16.gmra.mxu0 %vm1160_vm2, %v2033_v57  ;;  %v7467_v57 = vor.u32 %v9321_v28, %v7466_v44 }
 0x583   : > { %2440 = vmatpush.bf16.msra.mxu0 %v10216_v53 }
 0x585   : > { %v2005_v6 = vpop.f32.mrf.mxu2 }
 0x586   : > { %v2029_v2 = vadd.f32 %v2028_v18, %v2005_v6  ;;  %v2251_v18 = vunpack.c.h.b16 %v7455_v14 }
 0x587   : > { %2441 = vmatpush.bf16.msra.mxu0 %v10222_v20  ;;  %v1940_v25 = vpop.f32.mrf.mxu1 }
 0x588   : > { %v2034_v12 = vpack.c.bf16 %v2029_v2, %v2029_v2  ;;  %v2257_v31 = vpack.c.b16 %v2251_v18, %v2251_v18  ;;  %v2250_v2 = vunpack.c.l.b16 %v7455_v14  ;;  %v9327_v14 = vld [vmem:[%s13244_s3 + $0x1a4] sm:$0xf0]  ;;  %v7507_v18 = vld [vmem:[%s13244_s3 + $0x1a8] sm:$0xf0] }
 0x58a   : > { %7474 = vmatmul.msk.bf16.gmra.mxu1 %vm986_vm1, %v2257_v31 }
 0x58b   : > { %2442 = vmatpush.bf16.msra.mxu0 %v10246_v59 }
 0x58d   : > { %v2007_v27 = vpop.f32.mrf.mxu2 }
 0x58f   : > { %v2137_v19 = vpop.f32.mrf.mxu1 }
 0x592   : > { %7411 = vmatmul.msk.bf16.gmra.mxu0 %vm1160_vm2, %v2034_v12 }
 0x595   : > { %v2160_v1 = vpop.f32.mrf.mxu2 }
 0x596   : > { %v2161_v23 = vadd.f32 %v2160_v1, %v2137_v19  ;;  %v2256_v19 = vpack.c.b16 %v2250_v2, %v2250_v2  ;;  %v7497_v1 = vld [vmem:[%s13244_s3 + $0x190] sm:$0xf] }
 0x597   : > { %v2139_v58 = vpop.f32.mrf.mxu1 }
 0x59d   : > { %v2162_v3 = vpop.f32.mrf.mxu2 }
 0x59e   : > { %v2163_v46 = vadd.f32 %v2162_v3, %v2139_v58  ;;  %v9325_v58 = vld [vmem:[%s13244_s3 + $0x194] sm:$0xf0]  ;;  %v7502_v3 = vor.u32 %v9324_v50, %v7499_v10 }
 0x59f   : > { %v2142_v63 = vpop.f32.mrf.mxu1 }
 0x5a0   : > { %v2174_v51 = vpack.c.bf16 %v2163_v46, %v2161_v23  ;;  %v7498_v23 = vor.u32 %v9325_v58, %v7497_v1  ;;  %v9341_v46 = vld [vmem:[%s13245_s4 + $0xc8] sm:$0xff] }
 0x5a2   : > { %7448 = vmatmul.msk.bf16.vlgmr.msrb.gmra.mxu3 %vm1160_vm2, %v2174_v51  ;;  %2278 = vmatmul.bf16.vlgmr.msrb.gmra.mxu0 %v7459_v8  ;;  %v7505_v8 = vld [vmem:[%s13244_s3 + $0x1a0] sm:$0xf] }
 0x5a3   : > { %2578 = vmatpush.bf16.msrb.mxu3 %v10184_v35  ;;  %2635 = vmatpush.bf16.msrb.mxu0 %v9335_v43  ;;  %v7506_v51 = vor.u32 %v9327_v14, %v7505_v8  ;;  %v9340_v43 = vld [vmem:[%s13245_s4 + $0xc0] sm:$0xff] }
 0x5a5   : > { %v2165_v29 = vpop.f32.mrf.mxu2 }
 0x5a6   : > { %v2166_v52 = vadd.f32 %v2165_v29, %v2142_v63  ;;  %v9326_v63 = vld [vmem:[%s13244_s3 + $0x1a4] sm:$0xf] }
 0x5a7   : > { %2579 = vmatpush.bf16.msrb.mxu3 %v10192_v33  ;;  %v2144_v39 = vpop.f32.mrf.mxu1  ;;  %2636 = vmatpush.bf16.msrb.mxu0 %v9334_v37  ;;  %v7510_v31 = vor.u32 %v9326_v63, %v7507_v18  ;;  %v7494_v37 = vld [vmem:[%s13244_s3 + $0x1b0] sm:$0x33] }
 0x5a8   : > { %v2392_v29 = vunpack.c.l.b16 %v7494_v37 }
 0x5aa   : > { %v2398_v44 = vpack.c.b16 %v2392_v29, %v2392_v29 }
 0x5ab   : > { %2580 = vmatpush.bf16.msrb.mxu3 %v10201_v26 }
 0x5ad   : > { %v2167_v40 = vpop.f32.mrf.mxu2 }
 0x5ae   : > { %v2168_v17 = vadd.f32 %v2167_v40, %v2144_v39  ;;  %v2393_v39 = vunpack.c.h.b16 %v7494_v37 }
 0x5af   : > { %2581 = vmatpush.bf16.msrb.mxu3 %v10209_v49  ;;  %v2147_v6 = vpop.f32.mrf.mxu1 }
 0x5b0   : > { %v2175_v25 = vpack.c.bf16 %v2168_v17, %v2166_v52  ;;  %v2399_v28 = vpack.c.b16 %v2393_v39, %v2393_v39 }
 0x5b2   : > { %7449 = vmatmul.msk.bf16.gmra.mxu3 %vm1160_vm2, %v2175_v25  ;;  %2283 = vmatmul.bf16.gmra.mxu0 %v7467_v57  ;;  %v7538_v25 = vld [vmem:[%s13244_s3 + $0x1c0] sm:$0xf0] }
 0x5b3   : > { %2582 = vmatpush.bf16.msrb.mxu3 %v10216_v53 }
 0x5b5   : > { %v2170_v47 = vpop.f32.mrf.mxu2 }
 0x5b6   : > { %v2171_v61 = vadd.f32 %v2170_v47, %v2147_v6  ;;  %v9330_v6 = vld [vmem:[%s13244_s3 + $0x1bc] sm:$0xf] }
 0x5b7   : > { %2583 = vmatpush.bf16.msrb.mxu3 %v10222_v20  ;;  %v2149_v48 = vpop.f32.mrf.mxu1  ;;  %v7541_v47 = vor.u32 %v9330_v6, %v7538_v25 }
 0x5b8   : > { %v2176_v12 = vpack.c.bf16 %v2171_v61, %v2171_v61 }
 0x5bb   : > { %2584 = vmatpush.bf16.msrb.mxu3 %v10246_v59 }
 0x5bd   : > { %v2172_v27 = vpop.f32.mrf.mxu2 }
 0x5bf   : > { %v2302_v57 = vpop.f32.mrf.mxu1 }
 0x5c2   : > { %7450 = vmatmul.msk.bf16.gmra.mxu3 %vm1160_vm2, %v2176_v12  ;;  %2288 = vmatmul.bf16.gmra.mxu0 %v2256_v19 }
 0x5d2   : > { %2420 = vmatmul.bf16.vlgmr.msra.gmra.mxu3 %v7498_v23  ;;  %7511 = vmatmul.msk.bf16.vlgmr.msra.gmra.mxu0 %vm986_vm1, %v7502_v3 }
 0x5d3   : > { %2838 = vmatpush.bf16.msra.mxu0 %v10079_v56  ;;  %2777 = vmatpush.bf16.msra.mxu3 %v9341_v46 }
 0x5d7   : > { %2839 = vmatpush.bf16.msra.mxu0 %v10087_v5  ;;  %2778 = vmatpush.bf16.msra.mxu3 %v9340_v43 }
 0x5db   : > { %2840 = vmatpush.bf16.msra.mxu0 %v10095_v11 }
 0x5df   : > { %2841 = vmatpush.bf16.msra.mxu0 %v10105_v15 }
 0x5e2   : > { %2425 = vmatmul.bf16.gmra.mxu3 %v7506_v51  ;;  %7512 = vmatmul.msk.bf16.gmra.mxu0 %vm986_vm1, %v7510_v31 }
 0x5e3   : > { %2842 = vmatpush.bf16.msra.mxu0 %v10111_v16 }
 0x5e7   : > { %2843 = vmatpush.bf16.msra.mxu0 %v10045_v55 }
 0x5eb   : > { %2844 = vmatpush.bf16.msra.mxu0 %v10037_v38 }
 0x5ef   : > { %2845 = vmatpush.bf16.msra.mxu0 %v10029_v21  ;;  %v2070_v52 = vpop.f32.mrf.mxu0 }
 0x5f0   : > { %v2084_v40 = vadd.f32 %v2070_v52, %v10766_v36  ;;  %v2304_v36 = vpop.f32.mrf.mxu1  ;;  %v9332_v52 = vld [vmem:[%s13244_s3 + $0x1cc] sm:$0xf] }
 0x5f2   : > { %2430 = vmatmul.bf16.gmra.mxu3 %v2398_v44  ;;  %7513 = vmatmul.msk.bf16.gmra.mxu0 %vm986_vm1, %v2399_v28 }
 0x5f7   : > { %v10870_v17 = vpop.f32.mrf.mxu0 }
 0x5f8   : > { %v2307_v27 = vpop.f32.mrf.mxu1 }
 0x5ff   : > { %v2075_v48 = vpop.f32.mrf.mxu0 }
 0x600   : > { %v2086_v61 = vadd.f32 %v2075_v48, %v10770_v42  ;;  %v2309_v1 = vpop.f32.mrf.mxu1 }
 0x602   : > { %7550 = vmatmul.msk.bf16.vlgmr.msrb.gmra.mxu3 %vm986_vm1, %v7541_v47 }
 0x603   : > { %2980 = vmatpush.bf16.msrb.mxu3 %v10079_v56 }
 0x607   : > { %2981 = vmatpush.bf16.msrb.mxu3 %v10087_v5  ;;  %v10882_v2 = vpop.f32.mrf.mxu0 }
 0x608   : > { %v2312_v50 = vpop.f32.mrf.mxu1 }
 0x60b   : > { %2982 = vmatpush.bf16.msrb.mxu3 %v10095_v11 }
 0x60f   : > { %2983 = vmatpush.bf16.msrb.mxu3 %v10105_v15  ;;  %v2080_v12 = vpop.f32.mrf.mxu0 }
 0x610   : > { %v2088_v19 = vadd.f32 %v2080_v12, %v10779_v34  ;;  %v2314_v14 = vpop.f32.mrf.mxu1 }
 0x613   : > { %2984 = vmatpush.bf16.msrb.mxu3 %v10111_v16 }
 0x617   : > { %2985 = vmatpush.bf16.msrb.mxu3 %v10045_v55  ;;  %v2082_v42 = vpop.f32.mrf.mxu0 }
 0x618   : > { %v7536_v42 = vld [vmem:[%s13244_s3 + $0x1b8] sm:$0xf] }
 0x61b   : > { %2986 = vmatpush.bf16.msrb.mxu3 %v10037_v38 }
 0x61f   : > { %2987 = vmatpush.bf16.msrb.mxu3 %v10029_v21  ;;  %v2279_v58 = vpop.f32.mrf.mxu0 }
 0x620   : > { %v2303_v46 = vadd.f32 %v2302_v57, %v2279_v58 }
 0x625   : > { %v2212_v10 = vpop.f32.mrf.mxu3 }
 0x626   : > { %v10891_v23 = vadd.f32 %v2212_v10, %v2084_v40  ;;  %v7546_v40 = vld [vmem:[%s13244_s3 + $0x1d0] sm:$0xf0] }
 0x627   : > { %v2281_v3 = vpop.f32.mrf.mxu0  ;;  %v7549_v57 = vor.u32 %v9332_v52, %v7546_v40 }
 0x628   : > { %v2305_v8 = vadd.f32 %v2304_v36, %v2281_v3 }
 0x629   : > { %7551 = vmatmul.msk.bf16.gmra.mxu3 %vm986_vm1, %v7549_v57 }
 0x62a   : > { %v2316_v34 = vpack.c.bf16 %v2305_v8, %v2303_v46 }
 0x62c   : > { %7487 = vmatmul.msk.bf16.vlgmr.msrb.gmra.mxu2 %vm1160_vm2, %v2316_v34 }
 0x62d   : > { %2720 = vmatpush.bf16.msrb.mxu2 %v10184_v35  ;;  %v10895_v63 = vpop.f32.mrf.mxu3 }
 0x62f   : > { %v2284_v18 = vpop.f32.mrf.mxu0 }
 0x630   : > { %v2308_v37 = vadd.f32 %v2307_v27, %v2284_v18 }
 0x631   : > { %2721 = vmatpush.bf16.msrb.mxu2 %v10192_v33 }
 0x635   : > { %2722 = vmatpush.bf16.msrb.mxu2 %v10201_v26  ;;  %v2217_v51 = vpop.f32.mrf.mxu3 }
 0x636   : > { %v10899_v31 = vadd.f32 %v2217_v51, %v2086_v61  ;;  %v9347_v51 = vld [vmem:[%s13245_s4 + $0xd8] sm:$0xff] }
 0x637   : > { %v2286_v43 = vpop.f32.mrf.mxu0 }
 0x638   : > { %v2310_v29 = vadd.f32 %v2309_v1, %v2286_v43  ;;  %v9331_v1 = vld [vmem:[%s13244_s3 + $0x1bc] sm:$0xf0]  ;;  %v9346_v43 = vld [vmem:[%s13245_s4 + $0xd0] sm:$0xff] }
 0x639   : > { %2723 = vmatpush.bf16.msrb.mxu2 %v10209_v49 }
 0x63a   : > { %v2317_v39 = vpack.c.bf16 %v2310_v29, %v2308_v37  ;;  %v7544_v29 = vld [vmem:[%s13244_s3 + $0x1c8] sm:$0xf] }
 0x63c   : > { %7488 = vmatmul.msk.bf16.gmra.mxu2 %vm1160_vm2, %v2317_v39  ;;  %v9333_v39 = vld [vmem:[%s13244_s3 + $0x1cc] sm:$0xf0] }
 0x63d   : > { %2724 = vmatpush.bf16.msrb.mxu2 %v10216_v53  ;;  %v10904_v44 = vpop.f32.mrf.mxu3  ;;  %v7545_v52 = vor.u32 %v9333_v39, %v7544_v29 }
 0x63f   : > { %v2289_v28 = vpop.f32.mrf.mxu0 }
 0x640   : > { %v2313_v6 = vadd.f32 %v2312_v50, %v2289_v28  ;;  %v7537_v50 = vor.u32 %v9331_v1, %v7536_v42 }
 0x641   : > { %2725 = vmatpush.bf16.msrb.mxu2 %v10222_v20 }
 0x642   : > { %v2318_v61 = vpack.c.bf16 %v2313_v6, %v2313_v6 }
 0x645   : > { %2726 = vmatpush.bf16.msrb.mxu2 %v10246_v59  ;;  %v2222_v25 = vpop.f32.mrf.mxu3 }
 0x646   : > { %v10915_v47 = vadd.f32 %v2222_v25, %v2088_v19  ;;  %v7533_v19 = vld [vmem:[%s13244_s3 + $0x1d8] sm:$0x33] }
 0x647   : > { %v2291_v48 = vpop.f32.mrf.mxu0  ;;  %v2535_v10 = vunpack.c.h.b16 %v7533_v19 }
 0x649   : > { %v2541_v3 = vpack.c.b16 %v2535_v10, %v2535_v10 }
 0x64b   : > { %7552 = vmatmul.msk.bf16.gmra.mxu3 %vm986_vm1, %v2541_v3  ;;  %v7575_v3 = vld [vmem:[%s13244_s3 + $0x1e0] sm:$0xf] }
 0x64c   : > { %7489 = vmatmul.msk.bf16.gmra.mxu2 %vm1160_vm2, %v2318_v61  ;;  %v2534_v61 = vunpack.c.l.b16 %v7533_v19  ;;  %v7577_v19 = vld [vmem:[%s13244_s3 + $0x1e8] sm:$0xf0] }
 0x64d   : > { %v2224_v36 = vpop.f32.mrf.mxu3 }
 0x64f   : > { %v2444_v27 = vpop.f32.mrf.mxu0 }
 0x655   : > { %v2421_v12 = vpop.f32.mrf.mxu3 }
 0x656   : > { %v2445_v46 = vadd.f32 %v2444_v27, %v2421_v12  ;;  %v2540_v12 = vpack.c.b16 %v2534_v61, %v2534_v61 }
 0x657   : > { %v2446_v58 = vpop.f32.mrf.mxu0 }
 0x65c   : > { %2562 = vmatmul.bf16.vlgmr.msra.gmra.mxu2 %v7537_v50  ;;  %v9336_v50 = vld [vmem:[%s13244_s3 + $0x1e4] sm:$0xf] }
 0x65d   : > { %v2423_v8 = vpop.f32.mrf.mxu3  ;;  %2919 = vmatpush.bf16.msra.mxu2 %v9347_v51  ;;  %v7580_v10 = vor.u32 %v9336_v50, %v7577_v19  ;;  %v7572_v51 = vld [vmem:[%s13244_s3 + $0x200] sm:$0x33] }
 0x65e   : > { %v2447_v14 = vadd.f32 %v2446_v58, %v2423_v8 }
 0x65f   : > { %v2449_v34 = vpop.f32.mrf.mxu0 }
 0x660   : > { %v2458_v18 = vpack.c.bf16 %v2447_v14, %v2445_v46  ;;  %v9337_v46 = vld [vmem:[%s13244_s3 + $0x1e4] sm:$0xf0]  ;;  %v9338_v14 = vld [vmem:[%s13244_s3 + $0x1f4] sm:$0xf] }
 0x661   : > { %2920 = vmatpush.bf16.msra.mxu2 %v9346_v43  ;;  %v7576_v8 = vor.u32 %v9337_v46, %v7575_v3  ;;  %v9342_v46 = vld [vmem:[%s13244_s3 + $0x20c] sm:$0xf] }
 0x662   : > { %7526 = vmatmul.msk.bf16.vlgmr.msra.gmra.mxu1 %vm1160_vm2, %v2458_v18 }
 0x663   : > { %2862 = vmatpush.bf16.msra.mxu1 %v10184_v35 }
 0x665   : > { %v2426_v37 = vpop.f32.mrf.mxu3 }
 0x666   : > { %v2450_v40 = vadd.f32 %v2449_v34, %v2426_v37  ;;  %v7585_v34 = vld [vmem:[%s13244_s3 + $0x1f8] sm:$0xf0]  ;;  %v2676_v37 = vunpack.c.l.b16 %v7572_v51 }
 0x667   : > { %2863 = vmatpush.bf16.msra.mxu1 %v10192_v33  ;;  %v2451_v28 = vpop.f32.mrf.mxu0  ;;  %v7588_v18 = vor.u32 %v9338_v14, %v7585_v34 }
 0x668   : > { %v2682_v29 = vpack.c.b16 %v2676_v37, %v2676_v37  ;;  %v9344_v37 = vld [vmem:[%s13244_s3 + $0x21c] sm:$0xf] }
 0x66b   : > { %2864 = vmatpush.bf16.msra.mxu1 %v10201_v26 }
 0x66c   : > { %2567 = vmatmul.bf16.gmra.mxu2 %v7545_v52 }
 0x66d   : > { %v2428_v57 = vpop.f32.mrf.mxu3 }
 0x66e   : > { %v2452_v6 = vadd.f32 %v2451_v28, %v2428_v57 }
 0x66f   : > { %2865 = vmatpush.bf16.msra.mxu1 %v10209_v49  ;;  %v2454_v25 = vpop.f32.mrf.mxu0 }
 0x670   : > { %v2459_v48 = vpack.c.bf16 %v2452_v6, %v2450_v40 }
 0x672   : > { %7527 = vmatmul.msk.bf16.gmra.mxu1 %vm1160_vm2, %v2459_v48 }
 0x673   : > { %2866 = vmatpush.bf16.msra.mxu1 %v10216_v53 }
 0x675   : > { %v2431_v36 = vpop.f32.mrf.mxu3 }
 0x676   : > { %v2455_v42 = vadd.f32 %v2454_v25, %v2431_v36 }
 0x677   : > { %2867 = vmatpush.bf16.msra.mxu1 %v10222_v20  ;;  %v2456_v27 = vpop.f32.mrf.mxu0 }
 0x678   : > { %v2460_v58 = vpack.c.bf16 %v2455_v42, %v2455_v42 }
 0x67b   : > { %2868 = vmatpush.bf16.msra.mxu1 %v10246_v59 }
 0x67c   : > { %2572 = vmatmul.bf16.gmra.mxu2 %v2540_v12 }
 0x67d   : > { %v2433_v1 = vpop.f32.mrf.mxu3 }
 0x682   : > { %7528 = vmatmul.msk.bf16.gmra.mxu1 %vm1160_vm2, %v2460_v58 }
 0x685   : > { %v2586_v28 = vpop.f32.mrf.mxu3 }
 0x68c   : > { %7589 = vmatmul.msk.bf16.vlgmr.msrb.gmra.mxu2 %vm986_vm1, %v7580_v10 }
 0x68d   : > { %3122 = vmatpush.bf16.msrb.mxu2 %v10079_v56  ;;  %v7583_v56 = vld [vmem:[%s13244_s3 + $0x1f0] sm:$0xf]  ;;  %v2588_v57 = vpop.f32.mrf.mxu3 }
 0x691   : > { %3123 = vmatpush.bf16.msrb.mxu2 %v10087_v5  ;;  %v9339_v5 = vld [vmem:[%s13244_s3 + $0x1f4] sm:$0xf0] }
 0x692   : > { %2704 = vmatmul.bf16.vlgmr.msrb.gmra.mxu1 %v7576_v8  ;;  %v7616_v8 = vld [vmem:[%s13244_s3 + $0x210] sm:$0xf0] }
 0x693   : > { %v7619_v14 = vor.u32 %v9342_v46, %v7616_v8  ;;  %v9345_v46 = vld [vmem:[%s13244_s3 + $0x21c] sm:$0xf0] }
 0x695   : > { %3124 = vmatpush.bf16.msrb.mxu2 %v10095_v11  ;;  %v7584_v11 = vor.u32 %v9339_v5, %v7583_v56 }
 0x699   : > { %3125 = vmatpush.bf16.msrb.mxu2 %v10105_v15  ;;  %v2677_v15 = vunpack.c.h.b16 %v7572_v51 }
 0x69b   : > { %v2683_v43 = vpack.c.b16 %v2677_v15, %v2677_v15 }
 0x69c   : > { %7590 = vmatmul.msk.bf16.gmra.mxu2 %vm986_vm1, %v7588_v18 }
 0x69d   : > { %3126 = vmatpush.bf16.msrb.mxu2 %v10111_v16 }
 0x6a1   : > { %3127 = vmatpush.bf16.msrb.mxu2 %v10045_v55 }
 0x6a2   : > { %2709 = vmatmul.bf16.gmra.mxu1 %v7584_v11 }
 0x6a5   : > { %3128 = vmatpush.bf16.msrb.mxu2 %v10037_v38 }
 0x6a9   : > { %3129 = vmatpush.bf16.msrb.mxu2 %v10029_v21 }
 0x6ac   : > { %7591 = vmatmul.msk.bf16.gmra.mxu2 %vm986_vm1, %v2683_v43  ;;  %v2591_v38 = vpop.f32.mrf.mxu3 }
 0x6af   : > { %v2354_v39 = vpop.f32.mrf.mxu2 }
 0x6b0   : > { %v2368_v16 = vadd.f32 %v2354_v39, %v10891_v23 }
 0x6b2   : > { %2714 = vmatmul.bf16.gmra.mxu1 %v2682_v29  ;;  %v7624_v29 = vld [vmem:[%s13244_s3 + $0x220] sm:$0xf0] }
 0x6b3   : > { %v7627_v39 = vor.u32 %v9344_v37, %v7624_v29 }
 0x6b4   : > { %v2593_v61 = vpop.f32.mrf.mxu3 }
 0x6b7   : > { %v10989_v55 = vpop.f32.mrf.mxu2 }
 0x6bf   : > { %v2359_v52 = vpop.f32.mrf.mxu2 }
 0x6c0   : > { %v2370_v40 = vadd.f32 %v2359_v52, %v10899_v31 }
 0x6c2   : > { %7628 = vmatmul.msk.bf16.vlgmr.msra.gmra.mxu1 %vm986_vm1, %v7619_v14 }
 0x6c7   : > { %v10992_v6 = vpop.f32.mrf.mxu2 }
 0x6ce   : > { %v2596_v23 = vpop.f32.mrf.mxu3 }
 0x6cf   : > { %v2364_v25 = vpop.f32.mrf.mxu2 }
 0x6d0   : > { %v2372_v21 = vadd.f32 %v2364_v25, %v10915_v47  ;;  %v7614_v25 = vld [vmem:[%s13244_s3 + $0x208] sm:$0xf] }
 0x6d2   : > { %7629 = vmatmul.msk.bf16.gmra.mxu1 %vm986_vm1, %v7627_v39 }
 0x6d6   : > { %v2598_v31 = vpop.f32.mrf.mxu3 }
 0x6d7   : > { %v2366_v48 = vpop.f32.mrf.mxu2 }
 0x6df   : > { %v2496_v36 = vpop.f32.mrf.mxu1  ;;  %v2563_v27 = vpop.f32.mrf.mxu2 }
 0x6e0   : > { %v10995_v12 = vadd.f32 %v2496_v36, %v2368_v16  ;;  %v2587_v58 = vadd.f32 %v2586_v28, %v2563_v27 }
 0x6e7   : > { %v10997_v42 = vpop.f32.mrf.mxu1  ;;  %v2565_v1 = vpop.f32.mrf.mxu2 }
 0x6e8   : > { %v2589_v50 = vadd.f32 %v2588_v57, %v2565_v1  ;;  %v7611_v1 = vld [vmem:[%s13244_s3 + $0x228] sm:$0x33] }
 0x6ea   : > { %v2600_v19 = vpack.c.bf16 %v2589_v50, %v2587_v58  ;;  %v2819_v58 = vunpack.c.h.b16 %v7611_v1 }
 0x6ec   : > { %7565 = vmatmul.msk.bf16.vlgmr.msrb.gmra.mxu0 %vm1160_vm2, %v2600_v19  ;;  %v2825_v31 = vpack.c.b16 %v2819_v58, %v2819_v58 }
 0x6ed   : > { %3004 = vmatpush.bf16.msrb.mxu0 %v10184_v35 }
 0x6ee   : > { %7630 = vmatmul.msk.bf16.gmra.mxu1 %vm986_vm1, %v2825_v31 }
 0x6ef   : > { %v2501_v10 = vpop.f32.mrf.mxu1  ;;  %v2568_v47 = vpop.f32.mrf.mxu2 }
 0x6f0   : > { %v11001_v3 = vadd.f32 %v2501_v10, %v2370_v40  ;;  %v2592_v56 = vadd.f32 %v2591_v38, %v2568_v47  ;;  %v7622_v47 = vld [vmem:[%s13244_s3 + $0x218] sm:$0xf] }
 0x6f1   : > { %3005 = vmatpush.bf16.msrb.mxu0 %v10192_v33 }
 0x6f5   : > { %3006 = vmatpush.bf16.msrb.mxu0 %v10201_v26 }
 0x6f7   : > { %v11012_v34 = vpop.f32.mrf.mxu1  ;;  %v2570_v18 = vpop.f32.mrf.mxu2 }
 0x6f8   : > { %v2594_v5 = vadd.f32 %v2593_v61, %v2570_v18 }
 0x6f9   : > { %3007 = vmatpush.bf16.msrb.mxu0 %v10209_v49 }
 0x6fa   : > { %v2601_v11 = vpack.c.bf16 %v2594_v5, %v2592_v56  ;;  %v7623_v56 = vor.u32 %v9345_v46, %v7622_v47 }
 0x6fc   : > { %7566 = vmatmul.msk.bf16.gmra.mxu0 %vm1160_vm2, %v2601_v11 }
 0x6fd   : > { %3008 = vmatpush.bf16.msrb.mxu0 %v10216_v53 }
 0x6ff   : > { %v2506_v51 = vpop.f32.mrf.mxu1  ;;  %v2573_v15 = vpop.f32.mrf.mxu2 }
 0x700   : > { %v11017_v43 = vadd.f32 %v2506_v51, %v2372_v21  ;;  %v2597_v16 = vadd.f32 %v2596_v23, %v2573_v15  ;;  %v9343_v21 = vld [vmem:[%s13244_s3 + $0x20c] sm:$0xf0]  ;;  %v2818_v51 = vunpack.c.l.b16 %v7611_v1 }
 0x701   : > { %3009 = vmatpush.bf16.msrb.mxu0 %v10222_v20  ;;  %v7615_v23 = vor.u32 %v9343_v21, %v7614_v25 }
 0x702   : > { %v2602_v40 = vpack.c.bf16 %v2597_v16, %v2597_v16  ;;  %v2824_v39 = vpack.c.b16 %v2818_v51, %v2818_v51 }
 0x705   : > { %3010 = vmatpush.bf16.msrb.mxu0 %v10246_v59 }
 0x707   : > { %v2508_v28 = vpop.f32.mrf.mxu1  ;;  %v2575_v52 = vpop.f32.mrf.mxu2 }
 0x708   : > { %v7661_v52 = vld [vmem:[%s13244_s3 + $0x240] sm:$0xf] }
 0x70c   : > { %7567 = vmatmul.msk.bf16.gmra.mxu0 %vm1160_vm2, %v2602_v40  ;;  %v9351_v40 = vld [vmem:[%s13244_s3 + $0x244] sm:$0xf0] }
 0x70d   : > { %v7662_v25 = vor.u32 %v9351_v40, %v7661_v52 }
 0x70f   : > { %v2705_v57 = vpop.f32.mrf.mxu1  ;;  %v2728_v38 = vpop.f32.mrf.mxu2 }
 0x710   : > { %v2729_v48 = vadd.f32 %v2728_v38, %v2705_v57  ;;  %v9350_v57 = vld [vmem:[%s13244_s3 + $0x244] sm:$0xf]  ;;  %v7663_v38 = vld [vmem:[%s13244_s3 + $0x248] sm:$0xf0] }
 0x711   : > { %v7666_v21 = vor.u32 %v9350_v57, %v7663_v38 }
 0x717   : > { %v2707_v61 = vpop.f32.mrf.mxu1  ;;  %v2730_v36 = vpop.f32.mrf.mxu2 }
 0x718   : > { %v2731_v27 = vadd.f32 %v2730_v36, %v2707_v61 }
 0x71a   : > { %v2742_v50 = vpack.c.bf16 %v2731_v27, %v2729_v48  ;;  %v7650_v48 = vld [vmem:[%s13244_s3 + $0x250] sm:$0x33] }
 0x71b   : > { %v2960_v61 = vunpack.c.l.b16 %v7650_v48  ;;  %v2961_v36 = vunpack.c.h.b16 %v7650_v48  ;;  %v9356_v48 = vld [vmem:[%s13244_s3 + $0x26c] sm:$0xf] }
 0x71c   : > { %7604 = vmatmul.msk.bf16.vlgmr.msra.gmra.mxu3 %vm1160_vm2, %v2742_v50  ;;  %2846 = vmatmul.bf16.vlgmr.msra.gmra.mxu0 %v7615_v23 }
 0x71d   : > { %3146 = vmatpush.bf16.msra.mxu3 %v10184_v35  ;;  %v2966_v27 = vpack.c.b16 %v2960_v61, %v2960_v61  ;;  %v2967_v23 = vpack.c.b16 %v2961_v36, %v2961_v36  ;;  %v7702_v61 = vld [vmem:[%s13244_s3 + $0x270] sm:$0xf0] }
 0x71e   : > { %v7705_v36 = vor.u32 %v9356_v48, %v7702_v61 }
 0x71f   : > { %v2710_v19 = vpop.f32.mrf.mxu1  ;;  %v2733_v10 = vpop.f32.mrf.mxu2 }
 0x720   : > { %v2734_v8 = vadd.f32 %v2733_v10, %v2710_v19 }
 0x721   : > { %3147 = vmatpush.bf16.msra.mxu3 %v10192_v33 }
 0x725   : > { %3148 = vmatpush.bf16.msra.mxu3 %v10201_v26 }
 0x727   : > { %v2712_v14 = vpop.f32.mrf.mxu1  ;;  %v2735_v18 = vpop.f32.mrf.mxu2 }
 0x728   : > { %v2736_v35 = vadd.f32 %v2735_v18, %v2712_v14 }
 0x729   : > { %3149 = vmatpush.bf16.msra.mxu3 %v10209_v49  ;;  %v7653_v49 = vld [vmem:[%s13244_s3 + $0x230] sm:$0xf] }
 0x72a   : > { %v2743_v5 = vpack.c.bf16 %v2736_v35, %v2734_v8 }
 0x72c   : > { %7605 = vmatmul.msk.bf16.gmra.mxu3 %vm1160_vm2, %v2743_v5  ;;  %2851 = vmatmul.bf16.gmra.mxu0 %v7623_v56 }
 0x72d   : > { %3150 = vmatpush.bf16.msra.mxu3 %v10216_v53  ;;  %v9349_v53 = vld [vmem:[%s13244_s3 + $0x234] sm:$0xf0] }
 0x72e   : > { %v7654_v16 = vor.u32 %v9349_v53, %v7653_v49 }
 0x72f   : > { %v2715_v33 = vpop.f32.mrf.mxu1  ;;  %v2738_v26 = vpop.f32.mrf.mxu2 }
 0x730   : > { %v2739_v11 = vadd.f32 %v2738_v26, %v2715_v33 }
 0x731   : > { %3151 = vmatpush.bf16.msra.mxu3 %v10222_v20  ;;  %v9348_v20 = vld [vmem:[%s13244_s3 + $0x234] sm:$0xf] }
 0x732   : > { %v2744_v29 = vpack.c.bf16 %v2739_v11, %v2739_v11 }
 0x735   : > { %3152 = vmatpush.bf16.msra.mxu3 %v10246_v59  ;;  %v7655_v59 = vld [vmem:[%s13244_s3 + $0x238] sm:$0xf0] }
 0x736   : > { %v7658_v28 = vor.u32 %v9348_v20, %v7655_v59 }
 0x737   : > { %v2717_v15 = vpop.f32.mrf.mxu1  ;;  %v2740_v37 = vpop.f32.mrf.mxu2 }
 0x73c   : > { %7606 = vmatmul.msk.bf16.gmra.mxu3 %vm1160_vm2, %v2744_v29  ;;  %2856 = vmatmul.bf16.gmra.mxu0 %v2824_v39  ;;  %v7694_v39 = vld [vmem:[%s13244_s3 + $0x260] sm:$0xf0] }
 0x73f   : > { %v2870_v31 = vpop.f32.mrf.mxu1 }
 0x747   : > { %v2872_v47 = vpop.f32.mrf.mxu1 }
 0x74c   : > { %2988 = vmatmul.bf16.vlgmr.msrb.gmra.mxu3 %v7654_v16  ;;  %7667 = vmatmul.msk.bf16.vlgmr.msrb.gmra.mxu0 %vm986_vm1, %v7658_v28  ;;  %v9353_v16 = vld [vmem:[%s13245_s4 + $0xe8] sm:$0xff] }
 0x74d   : > { %3061 = vmatpush.bf16.msrb.mxu1 %v9353_v16 }
 0x74f   : > { %v2875_v8 = vpop.f32.mrf.mxu1 }
 0x757   : > { %v2877_v56 = vpop.f32.mrf.mxu1 }
 0x75c   : > { %2993 = vmatmul.bf16.gmra.mxu3 %v7662_v25  ;;  %7668 = vmatmul.msk.bf16.gmra.mxu0 %vm986_vm1, %v7666_v21  ;;  %v9352_v25 = vld [vmem:[%s13245_s4 + $0xe0] sm:$0xff] }
 0x75d   : > { %3062 = vmatpush.bf16.msrb.mxu1 %v9352_v25 }
 0x769   : > { %v2638_v1 = vpop.f32.mrf.mxu0 }
 0x76a   : > { %v2652_v58 = vadd.f32 %v2638_v1, %v10995_v12 }
 0x76b   : > { %v2880_v12 = vpop.f32.mrf.mxu1 }
 0x76c   : > { %2998 = vmatmul.bf16.gmra.mxu3 %v2966_v27  ;;  %7669 = vmatmul.msk.bf16.gmra.mxu0 %vm986_vm1, %v2967_v23 }
 0x771   : > { %v11086_v50 = vpop.f32.mrf.mxu0 }
 0x773   : > { %v2882_v37 = vpop.f32.mrf.mxu1 }
 0x779   : > { %v2643_v19 = vpop.f32.mrf.mxu0 }
 0x77a   : > { %v2654_v10 = vadd.f32 %v2643_v19, %v11001_v3 }
 0x781   : > { %v11089_v46 = vpop.f32.mrf.mxu0 }
 0x789   : > { %v2648_v14 = vpop.f32.mrf.mxu0 }
 0x78a   : > { %v2656_v18 = vadd.f32 %v2648_v14, %v11017_v43  ;;  %v9354_v43 = vld [vmem:[%s13244_s3 + $0x25c] sm:$0xf] }
 0x78b   : > { %v7697_v49 = vor.u32 %v9354_v43, %v7694_v39  ;;  %v7700_v43 = vld [vmem:[%s13244_s3 + $0x268] sm:$0xf]  ;;  %v9357_v39 = vld [vmem:[%s13244_s3 + $0x26c] sm:$0xf0] }
 0x78d   : > { %7706 = vmatmul.msk.bf16.vlgmr.msra.gmra.mxu3 %vm986_vm1, %v7697_v49 }
 0x791   : > { %v2650_v35 = vpop.f32.mrf.mxu0 }
 0x792   : > { %v7692_v35 = vld [vmem:[%s13244_s3 + $0x258] sm:$0xf] }
 0x799   : > { %v2847_v5 = vpop.f32.mrf.mxu0 }
 0x79a   : > { %v2871_v51 = vadd.f32 %v2870_v31, %v2847_v5 }
 0x79d   : > { %7707 = vmatmul.msk.bf16.gmra.mxu3 %vm986_vm1, %v7705_v36 }
 0x79f   : > { %v2780_v33 = vpop.f32.mrf.mxu3 }
 0x7a0   : > { %v11092_v26 = vadd.f32 %v2780_v33, %v2652_v58 }
 0x7a1   : > { %v2849_v11 = vpop.f32.mrf.mxu0 }
 0x7a2   : > { %v2873_v15 = vadd.f32 %v2872_v47, %v2849_v11  ;;  %v7689_v47 = vld [vmem:[%s13244_s3 + $0x278] sm:$0x33] }
 0x7a4   : > { %v2884_v29 = vpack.c.bf16 %v2873_v15, %v2871_v51 }
 0x7a6   : > { %7643 = vmatmul.msk.bf16.vlgmr.msra.gmra.mxu2 %vm1160_vm2, %v2884_v29 }
 0x7a7   : > { %v11095_v3 = vpop.f32.mrf.mxu3 }
 0x7a9   : > { %v2852_v53 = vpop.f32.mrf.mxu0 }
 0x7aa   : > { %v2876_v52 = vadd.f32 %v2875_v8, %v2852_v53  ;;  %v3103_v8 = vunpack.c.h.b16 %v7689_v47  ;;  %v7701_v53 = vor.u32 %v9357_v39, %v7700_v43 }
 0x7af   : > { %v2785_v20 = vpop.f32.mrf.mxu3 }
 0x7b0   : > { %v11104_v59 = vadd.f32 %v2785_v20, %v2654_v10 }
 0x7b1   : > { %v2854_v28 = vpop.f32.mrf.mxu0 }
 0x7b2   : > { %v2878_v40 = vadd.f32 %v2877_v56, %v2854_v28  ;;  %v3109_v56 = vpack.c.b16 %v3103_v8, %v3103_v8 }
 0x7b4   : > { %v2885_v57 = vpack.c.bf16 %v2878_v40, %v2876_v52  ;;  %7708 = vmatmul.msk.bf16.gmra.mxu3 %vm986_vm1, %v3109_v56 }
 0x7b6   : > { %7644 = vmatmul.msk.bf16.gmra.mxu2 %vm1160_vm2, %v2885_v57  ;;  %v3102_v57 = vunpack.c.l.b16 %v7689_v47  ;;  %v9359_v47 = vld [vmem:[%s13245_s4 + $0xf8] sm:$0xff] }
 0x7b7   : > { %v11110_v38 = vpop.f32.mrf.mxu3  ;;  %3203 = vmatpush.bf16.msra.mxu0 %v9359_v47 }
 0x7b8   : > { %v3108_v48 = vpack.c.b16 %v3102_v57, %v3102_v57 }
 0x7b9   : > { %v2857_v21 = vpop.f32.mrf.mxu0 }
 0x7ba   : > { %v2881_v27 = vadd.f32 %v2880_v12, %v2857_v21 }
 0x7bc   : > { %v2886_v31 = vpack.c.bf16 %v2881_v27, %v2881_v27 }
 0x7bf   : > { %v2790_v23 = vpop.f32.mrf.mxu3 }
 0x7c0   : > { %v2798_v1 = vadd.f32 %v2790_v23, %v2656_v18  ;;  %v9355_v18 = vld [vmem:[%s13244_s3 + $0x25c] sm:$0xf0] }
 0x7c1   : > { %v2859_v58 = vpop.f32.mrf.mxu0  ;;  %v7693_v12 = vor.u32 %v9355_v18, %v7692_v35  ;;  %v9358_v18 = vld [vmem:[%s13245_s4 + $0xf0] sm:$0xff] }
 0x7c2   : > { %3204 = vmatpush.bf16.msra.mxu0 %v9358_v18 }
 0x7c6   : > { %7645 = vmatmul.msk.bf16.gmra.mxu2 %vm1160_vm2, %v2886_v31 }
 0x7c7   : > { %v2792_v19 = vpop.f32.mrf.mxu3 }
 0x7c9   : > { %v3012_v10 = vpop.f32.mrf.mxu0 }
 0x7cf   : > { %v2989_v14 = vpop.f32.mrf.mxu3 }
 0x7d0   : > { %v3013_v33 = vadd.f32 %v3012_v10, %v2989_v14 }
 0x7d1   : > { %v3014_v5 = vpop.f32.mrf.mxu0 }
 0x7d6   : > { %3130 = vmatmul.bf16.vlgmr.msrb.gmra.mxu2 %v7693_v12 }
 0x7d7   : > { %v2991_v11 = vpop.f32.mrf.mxu3 }
 0x7d8   : > { %v3015_v51 = vadd.f32 %v3014_v5, %v2991_v11 }
 0x7d9   : > { %v3017_v15 = vpop.f32.mrf.mxu0 }
 0x7da   : > { %v3026_v37 = vpack.c.bf16 %v3015_v51, %v3013_v33 }
 0x7dc   : > { %7682 = vmatmul.msk.bf16.vlgmr.msrb.gmra.mxu1 %vm1160_vm2, %v3026_v37 }
 0x7df   : > { %v2994_v29 = vpop.f32.mrf.mxu3 }
 0x7e0   : > { %v3018_v20 = vadd.f32 %v3017_v15, %v2994_v29 }
 0x7e1   : > { %v3019_v49 = vpop.f32.mrf.mxu0 }
 0x7e6   : > { %3135 = vmatmul.bf16.gmra.mxu2 %v7701_v53 }
 0x7e7   : > { %v2996_v16 = vpop.f32.mrf.mxu3 }
 0x7e8   : > { %v3020_v28 = vadd.f32 %v3019_v49, %v2996_v16 }
 0x7e9   : > { %v3022_v52 = vpop.f32.mrf.mxu0 }
 0x7ea   : > { %v3027_v40 = vpack.c.bf16 %v3020_v28, %v3018_v20 }
 0x7ec   : > { %7683 = vmatmul.msk.bf16.gmra.mxu1 %vm1160_vm2, %v3027_v40 }
 0x7ef   : > { %v2999_v25 = vpop.f32.mrf.mxu3 }
 0x7f0   : > { %v3023_v61 = vadd.f32 %v3022_v52, %v2999_v25 }
 0x7f1   : > { %v3024_v21 = vpop.f32.mrf.mxu0 }
 0x7f2   : > { %v3028_v27 = vpack.c.bf16 %v3023_v61, %v3023_v61 }
 0x7f6   : > { %3140 = vmatmul.bf16.gmra.mxu2 %v3108_v48 }
 0x7f7   : > { %v3001_v36 = vpop.f32.mrf.mxu3 }
 0x7fc   : > { %7684 = vmatmul.msk.bf16.gmra.mxu1 %vm1160_vm2, %v3028_v27 }
 0x810   : > { %v3154_v19 = vpop.f32.mrf.mxu3 }
 0x818   : > { %v3156_v14 = vpop.f32.mrf.mxu3 }
 0x820   : > { %v3159_v56 = vpop.f32.mrf.mxu3 }
 0x828   : > { %v3161_v33 = vpop.f32.mrf.mxu3 }
 0x829   : > { %v2922_v23 = vpop.f32.mrf.mxu2 }
 0x82a   : > { %v2936_v58 = vadd.f32 %v2922_v23, %v11092_v26 }
 0x831   : > { %v2924_v31 = vpop.f32.mrf.mxu2 }
 0x837   : > { %v3164_v15 = vpop.f32.mrf.mxu3 }
 0x839   : > { %v2927_v10 = vpop.f32.mrf.mxu2 }
 0x83a   : > { %v2938_v8 = vadd.f32 %v2927_v10, %v11104_v59 }
 0x83f   : > { %v3166_v49 = vpop.f32.mrf.mxu3 }
 0x841   : > { %v11147_v35 = vpop.f32.mrf.mxu2 }
 0x849   : > { %v2932_v26 = vpop.f32.mrf.mxu2 }
 0x84a   : > { %v2940_v5 = vadd.f32 %v2932_v26, %v2798_v1 }
 0x851   : > { %v2934_v12 = vpop.f32.mrf.mxu2 }
 0x859   : > { %v3064_v11 = vpop.f32.mrf.mxu1  ;;  %v3131_v59 = vpop.f32.mrf.mxu2 }
 0x85a   : > { %v3078_v51 = vadd.f32 %v3064_v11, %v2936_v58  ;;  %v3155_v43 = vadd.f32 %v3154_v19, %v3131_v59  ;;  %v1226_v19 = vadd.f32 %v10429_v7, %v10452_v30  ;;  %v1231_v30 = vadd.f32 %v10435_v13, %v10457_v41 }
 0x85c   : > { %v1375_v10 = vadd.f32 %v10523_v54, %v1226_v19  ;;  %v9361_v19 = vld [vmem:[%s13248_s7] sm:$0xff] }
 0x861   : > { %v3066_v37 = vpop.f32.mrf.mxu1  ;;  %v3133_v29 = vpop.f32.mrf.mxu2 }
 0x862   : > { %v3157_v39 = vadd.f32 %v3156_v14, %v3133_v29 }
 0x864   : > { %v3168_v53 = vpack.c.bf16 %v3157_v39, %v3155_v43 }
 0x866   : > { %7721 = vmatmul.msk.bf16.vlgmr.msra.gmra.mxu0 %vm1160_vm2, %v3168_v53 }
 0x869   : > { %v3069_v20 = vpop.f32.mrf.mxu1  ;;  %v3136_v16 = vpop.f32.mrf.mxu2 }
 0x86a   : > { %v3080_v28 = vadd.f32 %v3069_v20, %v2938_v8  ;;  %v3160_v1 = vadd.f32 %v3159_v56, %v3136_v16  ;;  %v1517_v8 = vadd.f32 %v10641_v62, %v1375_v10 }
 0x86c   : > { %v1659_v47 = vadd.f32 %v10619_v22, %v1517_v8  ;;  %v1377_v22 = vadd.f32 %v10537_v9, %v1231_v30  ;;  %v9400_v30 = vld [vmem:[%s13247_s6 + $0x40] sm:$0xff] }
 0x86e   : > { %v1801_v14 = vadd.f32 %v10751_v4, %v1659_v47 }
 0x870   : > { %v1943_v18 = vadd.f32 %v10768_v24, %v1801_v14  ;;  %v9738_v24 = vld [vmem:[%s13246_s5] ss:$0 sm:$0xff] }
 0x871   : > { %v3071_v52 = vpop.f32.mrf.mxu1  ;;  %v3138_v40 = vpop.f32.mrf.mxu2 }
 0x872   : > { %v3162_v57 = vadd.f32 %v3161_v33, %v3138_v40  ;;  %v2085_v56 = vadd.f32 %v10870_v17, %v1943_v18  ;;  %v1519_v17 = vadd.f32 %v10646_v0, %v1377_v22  ;;  %v9373_v22 = vld [vmem:[%s13248_s7 + $0x50] sm:$0xff] }
 0x874   : > { %v3169_v25 = vpack.c.bf16 %v3162_v57, %v3160_v1  ;;  %v2227_v26 = vadd.f32 %v10895_v63, %v2085_v56  ;;  %v9385_v56 = vld [vmem:[%s13247_s6 + $0x28] sm:$0xff] }
 0x876   : > { %7722 = vmatmul.msk.bf16.gmra.mxu0 %vm1160_vm2, %v3169_v25 }
 0x879   : > { %v3074_v21 = vpop.f32.mrf.mxu1  ;;  %v3141_v48 = vpop.f32.mrf.mxu2 }
 0x87a   : > { %v3082_v61 = vadd.f32 %v3074_v21, %v2940_v5  ;;  %v3165_v36 = vadd.f32 %v3164_v15, %v3141_v48  ;;  %v2369_v5 = vadd.f32 %v10989_v55, %v2227_v26  ;;  %v9375_v21 = vld [vmem:[%s13247_s6 + $0x18] sm:$0xff]  ;;  %v9368_v48 = vld [vmem:[%s13248_s7 + $0x30] sm:$0xff] }
 0x87c   : > { %v3170_v58 = vpack.c.bf16 %v3165_v36, %v3165_v36  ;;  %v2511_v12 = vadd.f32 %v10997_v42, %v2369_v5  ;;  %v9366_v36 = vld [vmem:[%s13248_s7 + $0x20] sm:$0xff]  ;;  %v9370_v5 = vld [vmem:[%s13247_s6 + $0x10] sm:$0xff] }
 0x87e   : > { %v2653_v7 = vadd.f32 %v11086_v50, %v2511_v12  ;;  %v1661_v50 = vadd.f32 %v10632_v32, %v1519_v17  ;;  %v9395_v12 = vld [vmem:[%s13247_s6 + $0x38] sm:$0xff] }
 0x880   : > { %v2795_v54 = vadd.f32 %v11095_v3, %v2653_v7  ;;  %v1803_v13 = vadd.f32 %v10758_v60, %v1661_v50  ;;  %v9390_v7 = vld [vmem:[%s13247_s6 + $0x30] sm:$0xff] }
 0x881   : > { %v3143_v27 = vpop.f32.mrf.mxu2  ;;  %v3076_v23 = vpop.f32.mrf.mxu1 }
 0x882   : > { %v2937_v62 = vadd.f32 %v2924_v31, %v2795_v54  ;;  %v1945_v9 = vadd.f32 %v10775_v45, %v1803_v13  ;;  %v9364_v27 = vld [vmem:[%s13248_s7 + $0x18] sm:$0xff]  ;;  %v9363_v23 = vld [vmem:[%s13248_s7 + $0x10] sm:$0xff] }
 0x883   : > { %v9374_v54 = vld [vmem:[%s13248_s7 + $0x58] sm:$0xff]  ;;  %v9383_v13 = vld [vmem:[%s13248_s7 + $0x90] sm:$0xff] }
 0x884   : > { %v3079_v63 = vadd.f32 %v3066_v37, %v2937_v62  ;;  %v9379_v62 = vld [vmem:[%s13248_s7 + $0x78] sm:$0xff] }
 0x885   : > { %3542 = vmatpush.bf16.msrb.mxu0 %v9379_v62  ;;  %v9598_v62 = vld [vmem:[%s13250_s9 + $0x60c] sm:$0xf] }
 0x886   : > { %7723 = vmatmul.msk.bf16.gmra.mxu0 %vm1160_vm2, %v3170_v58  ;;  %v9362_v58 = vld [vmem:[%s13248_s7 + $0x8] sm:$0xff] }
 0x8e3   : > { %v3206_v33 = vpop.f32.mrf.mxu0 }
 0x8e4   : > { %v3220_v4 = vadd.f32 %v3206_v33, %v3078_v51  ;;  %v2087_v51 = vadd.f32 %v10882_v2, %v1945_v9  ;;  %v9380_v33 = vld [vmem:[%s13247_s6 + $0x20] sm:$0xff]  ;;  %v9382_v9 = vld [vmem:[%s13248_s7 + $0x88] sm:$0xff] }
 0x8e6   : > { %v3229_v42 = vadd.f32 %v9738_v24, %v3220_v4  ;;  %v2229_v0 = vadd.f32 %v10904_v44, %v2087_v51  ;;  %v9372_v4 = vld [vmem:[%s13248_s7 + $0x48] sm:$0xff] }
 0x8e8   : > { %v3234_v41 = vmax.f32 %v3229_v42, 0.0  ;;  %v2371_v37 = vadd.f32 %v10992_v6, %v2229_v0  ;;  %v9384_v42 = vld [vmem:[%s13248_s7 + $0x98] sm:$0xff]  ;;  %v9387_v0 = vld [vmem:[%s13248_s7 + $0xa8] sm:$0xff] }
 0x8ea   : > { %v2513_v29 = vadd.f32 %v11012_v34, %v2371_v37 }
 0x8eb   : > { %v3208_v55 = vpop.f32.mrf.mxu0 }
 0x8ec   : > { %v3221_v11 = vadd.f32 %v3208_v55, %v3079_v63  ;;  %v2655_v32 = vadd.f32 %v11089_v46, %v2513_v29  ;;  %v9371_v63 = vld [vmem:[%s13248_s7 + $0x40] sm:$0xff]  ;;  %v9377_v55 = vld [vmem:[%s13248_s7 + $0x68] sm:$0xff] }
 0x8ed   : > { %v9386_v29 = vld [vmem:[%s13248_s7 + $0xa0] sm:$0xff] }
 0x8ee   : > { %v3230_v59 = vadd.f32 %v9738_v24, %v3221_v11  ;;  %v2797_v60 = vadd.f32 %v11110_v38, %v2655_v32  ;;  %v9376_v11 = vld [vmem:[%s13248_s7 + $0x60] sm:$0xff] }
 0x8f0   : > { %v3235_v3 = vmax.f32 %v3230_v59, 0.0  ;;  %v2939_v39 = vadd.f32 %v11147_v35, %v2797_v60  ;;  %v9369_v35 = vld [vmem:[%s13248_s7 + $0x38] sm:$0xff] }
 0x8f1   : > { %v9399_v60 = vld [vmem:[%s13248_s7 + $0xf8] sm:$0xff] }
 0x8f2   : > { %v11178_v31 = vpack.c.bf16 %v3235_v3, %v3234_v41  ;;  %v3081_v49 = vadd.f32 %v3071_v52, %v2939_v39  ;;  %v9360_v52 = vld [vmem:[%s13247_s6] sm:$0xff]  ;;  %v9389_v41 = vld [vmem:[%s13248_s7 + $0xb8] sm:$0xff] }
 0x8f3   : > { %v3211_v15 = vpop.f32.mrf.mxu0 }
 0x8f4   : > { %v3222_v16 = vadd.f32 %v3211_v15, %v3080_v28  ;;  %v9365_v28 = vld [vmem:[%s13247_s6 + $0x8] sm:$0xff]  ;;  %v9381_v15 = vld [vmem:[%s13248_s7 + $0x80] sm:$0xff] }
 0x8f6   : > { %v3231_v44 = vadd.f32 %v9738_v24, %v3222_v16  ;;  %v9394_v16 = vld [vmem:[%s13248_s7 + $0xd8] sm:$0xff] }
 0x8f8   : > { %v3236_v25 = vmax.f32 %v3231_v44, 0.0 }
 0x8fb   : > { %v3213_v43 = vpop.f32.mrf.mxu0 }
 0x8fc   : > { %v3223_v45 = vadd.f32 %v3213_v43, %v3081_v49  ;;  %v9398_v49 = vld [vmem:[%s13248_s7 + $0xf0] sm:$0xff] }
 0x8fe   : > { %v3232_v40 = vadd.f32 %v9738_v24, %v3223_v45 }
 0x900   : > { %v3237_v57 = vmax.f32 %v3232_v40, 0.0  ;;  %v9396_v40 = vld [vmem:[%s13248_s7 + $0xe0] sm:$0xff] }
 0x902   : > { %v3240_v38 = vpack.c.bf16 %v3237_v57, %v3236_v25 }
 0x903   : > { %v3216_v53 = vpop.f32.mrf.mxu0 }
 0x904   : > { %v3224_v20 = vadd.f32 %v3216_v53, %v3082_v61  ;;  %v9367_v61 = vld [vmem:[%s13248_s7 + $0x28] sm:$0xff] }
 0x905   : > { %v9397_v53 = vld [vmem:[%s13248_s7 + $0xe8] sm:$0xff] }
 0x906   : > { %v3233_v2 = vadd.f32 %v9738_v24, %v3224_v20  ;;  %v9378_v24 = vld [vmem:[%s13248_s7 + $0x70] sm:$0xff] }
 0x907   : > { %3543 = vmatpush.bf16.msrb.mxu0 %v9378_v24 }
 0x908   : > { %v3238_v1 = vmax.f32 %v3233_v2, 0.0 }
 0x90a   : > { %v3241_v6 = vpack.c.bf16 %v3238_v1, %v3238_v1  ;;  %v9393_v1 = vld [vmem:[%s13248_s7 + $0xd0] sm:$0xff] }
 0x90b   : > { %v3218_v34 = vpop.f32.mrf.mxu0  ;;  %3544 = vmatpush.bf16.msrb.mxu0 %v9377_v55  ;;  %v9565_v55 = vld [vmem:[%s13250_s9 + $0x4fc] sm:$0xf0] }
 0x90c   : > { %v11188_v46 = vsel %vm3253_vm3, %v3241_v6, 0  ;;  %v9392_v34 = vld [vmem:[%s13248_s7 + $0xc8] sm:$0xff] }
 0x90d   : > { %3262 = vmatpush.bf16.msra.mxu1 %v11188_v46  ;;  %3296 = vmatpush.bf16.msra.mxu2 %v11188_v46 }
 0x90e   : > { %3492 = vmatpush.bf16.msrb.mxu3 %v11188_v46 }
 0x90f   : > { %3545 = vmatpush.bf16.msrb.mxu0 %v9376_v11 }
 0x911   : > { %3263 = vmatpush.bf16.msra.mxu1 %v3240_v38  ;;  %3297 = vmatpush.bf16.msra.mxu2 %v3240_v38 }
 0x912   : > { %3493 = vmatpush.bf16.msrb.mxu3 %v3240_v38 }
 0x913   : > { %3698 = vmatpush.bf16.msra.mxu0 %v9389_v41 }
 0x915   : > { %3264 = vmatpush.bf16.msra.mxu1 %v11178_v31  ;;  %3298 = vmatpush.bf16.msra.mxu2 %v11178_v31 }
 0x916   : > { %3494 = vmatpush.bf16.msrb.mxu3 %v11178_v31 }
 0x918   : > { %7735 = vmatmul.msk.bf16.vlgmr.msra.gmra.mxu2 %vm3249_vm4, %v9365_v28  ;;  %7728 = vmatmul.msk.bf16.vlgmr.msra.gmra.mxu1 %vm3249_vm4, %v9360_v52  ;;  %v9403_v28 = vld [vmem:[%s13248_s7 + $0x110] sm:$0xff] }
 0x919   : > { %3347 = vmatpush.bf16.msrb.mxu1 %v9369_v35  ;;  %7816 = vmatmul.msk.bf16.vlgmr.msrb.gmra.mxu3 %vm3249_vm4, %v9375_v21  ;;  %v9402_v21 = vld [vmem:[%s13248_s7 + $0x108] sm:$0xff] }
 0x91a   : > { %3648 = vmatpush.bf16.msra.mxu3 %v11188_v46  ;;  %3388 = vmatpush.bf16.msrb.mxu2 %v9364_v27 }
 0x91d   : > { %3348 = vmatpush.bf16.msrb.mxu1 %v9368_v48  ;;  %v9401_v48 = vld [vmem:[%s13248_s7 + $0x100] sm:$0xff] }
 0x91e   : > { %3649 = vmatpush.bf16.msra.mxu3 %v3240_v38  ;;  %3389 = vmatpush.bf16.msrb.mxu2 %v9363_v23 }
 0x921   : > { %3349 = vmatpush.bf16.msrb.mxu1 %v9367_v61 }
 0x922   : > { %3650 = vmatpush.bf16.msra.mxu3 %v11178_v31  ;;  %3390 = vmatpush.bf16.msrb.mxu2 %v9362_v58 }
 0x925   : > { %3350 = vmatpush.bf16.msrb.mxu1 %v9366_v36 }
 0x926   : > { %3804 = vmatpush.bf16.msrb.mxu3 %v11188_v46  ;;  %3391 = vmatpush.bf16.msrb.mxu2 %v9361_v19 }
 0x929   : > { %3414 = vmatpush.bf16.msra.mxu1 %v11188_v46  ;;  %7880 = vmatmul.msk.bf16.vlgmr.msra.gmra.mxu3 %vm3249_vm4, %v9385_v56 }
 0x92a   : > { %3805 = vmatpush.bf16.msrb.mxu3 %v3240_v38  ;;  %3464 = vmatpush.bf16.msra.mxu2 %v9374_v54 }
 0x92d   : > { %3415 = vmatpush.bf16.msra.mxu1 %v3240_v38 }
 0x92e   : > { %3806 = vmatpush.bf16.msrb.mxu3 %v11178_v31  ;;  %3465 = vmatpush.bf16.msra.mxu2 %v9373_v22  ;;  %v9630_v22 = vld [vmem:[%s13250_s9 + $0x704] sm:$0xf0] }
 0x931   : > { %3416 = vmatpush.bf16.msra.mxu1 %v11178_v31 }
 0x932   : > { %3466 = vmatpush.bf16.msra.mxu2 %v9372_v4  ;;  %v8782_v4 = vld [vmem:[%s13250_s9 + $0x708] sm:$0xf0] }
 0x936   : > { %3467 = vmatpush.bf16.msra.mxu2 %v9371_v63  ;;  %v8516_v63 = vld [vmem:[%s13250_s9 + $0x400] sm:$0xf] }
 0x937   : > { %v8517_v11 = vor.u32 %v9565_v55, %v8516_v63  ;;  %v8534_v63 = vld [vmem:[%s13250_s9 + $0x510] sm:$0xf0] }
 0x939   : > { %7944 = vmatmul.msk.bf16.vlgmr.msrb.gmra.mxu3 %vm3249_vm4, %v9395_v12  ;;  %v9597_v12 = vld [vmem:[%s13250_s9 + $0x604] sm:$0xf] }
 0x995   : > { %v3266_v10 = vpop.f32.mrf.mxu1 }
 0x99b   : > { %v3300_v8 = vpop.f32.mrf.mxu2 }
 0x99c   : > { %v3496_v17 = vpop.f32.mrf.mxu3 }
 0x99d   : > { %v3268_v47 = vpop.f32.mrf.mxu1 }
 0x99e   : > { %v3271_v14 = vpack.c.bf16 %v3268_v47, %v3266_v10 }
 0x9a0   : > { %7777 = vmatmul.msk.bf16.vlgmr.msrb.gmra.mxu2 %vm3339_vm5, %v3271_v14 }
 0x9a1   : > { %3620 = vmatpush.bf16.msrb.mxu2 %v9384_v42  ;;  %v9533_v42 = vld [vmem:[%s13250_s9 + $0x404] sm:$0xf] }
 0x9a3   : > { %v3302_v18 = vpop.f32.mrf.mxu2 }
 0x9a4   : > { %v3305_v26 = vpack.c.bf16 %v3302_v18, %v3300_v8  ;;  %v3498_v50 = vpop.f32.mrf.mxu3 }
 0x9a5   : > { %v3501_v59 = vpack.c.bf16 %v3498_v50, %v3496_v17  ;;  %3621 = vmatpush.bf16.msrb.mxu2 %v9383_v13  ;;  %v8785_v17 = vor.u32 %v9598_v62, %v8782_v4  ;;  %v8518_v50 = vld [vmem:[%s13250_s9 + $0x500] sm:$0xf0]  ;;  %v9566_v13 = vld [vmem:[%s13250_s9 + $0x504] sm:$0xf0] }
 0x9a6   : > { %7760 = vmatmul.msk.bf16.vlgmr.msrb.gmra.mxu1 %vm3339_vm5, %v3305_v26  ;;  %v8772_v26 = vld [vmem:[%s13250_s9 + $0x600] sm:$0xf]  ;;  %v8521_v41 = vor.u32 %v9533_v42, %v8518_v50  ;;  %v9536_v50 = vld [vmem:[%s13250_s9 + $0x41c] sm:$0xf] }
 0x9a7   : > { %3570 = vmatpush.bf16.msrb.mxu1 %v11188_v46  ;;  %7841 = vmatmul.msk.bf16.vlgmr.msrb.gmra.mxu0 %vm3339_vm5, %v3501_v59  ;;  %v8524_v59 = vld [vmem:[%s13250_s9 + $0x408] sm:$0xf] }
 0x9a9   : > { %3622 = vmatpush.bf16.msrb.mxu2 %v9382_v9  ;;  %v8525_v9 = vor.u32 %v9566_v13, %v8524_v59 }
 0x9ab   : > { %3571 = vmatpush.bf16.msrb.mxu1 %v3240_v38 }
 0x9ac   : > { %v3652_v51 = vpop.f32.mrf.mxu3 }
 0x9ad   : > { %3623 = vmatpush.bf16.msrb.mxu2 %v9381_v15 }
 0x9af   : > { %3572 = vmatpush.bf16.msrb.mxu1 %v11178_v31 }
 0x9b4   : > { %v3654_v32 = vpop.f32.mrf.mxu3 }
 0x9b5   : > { %v3657_v43 = vpack.c.bf16 %v3654_v32, %v3652_v51  ;;  %v8526_v51 = vld [vmem:[%s13250_s9 + $0x508] sm:$0xf0]  ;;  %v8260_v32 = vld [vmem:[%s13250_s9 + $0x200] sm:$0xf] }
 0x9b6   : > { %7784 = vmatmul.msk.bf16.vlgmr.msra.gmra.mxu1 %vm3249_vm4, %v9370_v5  ;;  %v9629_v5 = vld [vmem:[%s13250_s9 + $0x6fc] sm:$0xf0] }
 0x9b7   : > { %3726 = vmatpush.bf16.msra.mxu1 %v11188_v46 }
 0x9bb   : > { %3727 = vmatpush.bf16.msra.mxu1 %v3240_v38 }
 0x9bc   : > { %v3808_v45 = vpop.f32.mrf.mxu3 }
 0x9bf   : > { %3728 = vmatpush.bf16.msra.mxu1 %v11178_v31 }
 0x9c4   : > { %v3810_v44 = vpop.f32.mrf.mxu3 }
 0x9c5   : > { %v3813_v6 = vpack.c.bf16 %v3810_v44, %v3808_v45  ;;  %v8268_v45 = vld [vmem:[%s13250_s9 + $0x208] sm:$0xf]  ;;  %v8004_v44 = vld [vmem:[%s13250_s9] sm:$0xf] }
 0x9c6   : > { %7848 = vmatmul.msk.bf16.vlgmr.msrb.gmra.mxu1 %vm3249_vm4, %v9380_v33  ;;  %v8773_v33 = vor.u32 %v9629_v5, %v8772_v26  ;;  %v8790_v5 = vld [vmem:[%s13250_s9 + $0x710] sm:$0xf0] }
 0x9c7   : > { %3882 = vmatpush.bf16.msrb.mxu1 %v11188_v46  ;;  %v9391_v46 = vld [vmem:[%s13248_s7 + $0xc0] sm:$0xff] }
 0x9c8   : > { %5496 = vmatpush.bf16.msra.mxu3 %v8773_v33  ;;  %v9632_v33 = vld [vmem:[%s13250_s9 + $0x714] sm:$0xf0] }
 0x9cb   : > { %3883 = vmatpush.bf16.msrb.mxu1 %v3240_v38  ;;  %v9404_v38 = vld [vmem:[%s13248_s7 + $0x118] sm:$0xff] }
 0x9cc   : > { %5497 = vmatpush.bf16.msra.mxu3 %v8517_v11  ;;  %v9568_v11 = vld [vmem:[%s13250_s9 + $0x514] sm:$0xf0] }
 0x9cf   : > { %3884 = vmatpush.bf16.msrb.mxu1 %v11178_v31  ;;  %v9388_v31 = vld [vmem:[%s13248_s7 + $0xb0] sm:$0xff] }
 0x9d0   : > { %3699 = vmatpush.bf16.msra.mxu0 %v9388_v31  ;;  %v9534_v31 = vld [vmem:[%s13250_s9 + $0x40c] sm:$0xf] }
 0x9d1   : > { %v8529_v15 = vor.u32 %v9534_v31, %v8526_v51  ;;  %v9503_v31 = vld [vmem:[%s13250_s9 + $0x30c] sm:$0xf0] }
 0x9d4   : > { %3700 = vmatpush.bf16.msra.mxu0 %v9387_v0 }
 0x9d6   : > { %7912 = vmatmul.msk.bf16.vlgmr.msra.gmra.mxu1 %vm3249_vm4, %v9390_v7  ;;  %v8774_v7 = vld [vmem:[%s13250_s9 + $0x700] sm:$0xf0] }
 0x9d7   : > { %v8777_v54 = vor.u32 %v9597_v12, %v8774_v7  ;;  %v8796_v12 = vld [vmem:[%s13250_s9 + $0x618] sm:$0xf] }
 0x9d8   : > { %3701 = vmatpush.bf16.msra.mxu0 %v9386_v29 }
 0x9db   : > { %7905 = vmatmul.msk.bf16.vlgmr.msra.gmra.mxu0 %vm3339_vm5, %v3657_v43  ;;  %v9501_v43 = vld [vmem:[%s13250_s9 + $0x2fc] sm:$0xf0] }
 0x9dc   : > { %3854 = vmatpush.bf16.msrb.mxu0 %v9399_v60  ;;  %v9469_v60 = vld [vmem:[%s13250_s9 + $0x204] sm:$0xf] }
 0x9e0   : > { %3855 = vmatpush.bf16.msrb.mxu0 %v9398_v49  ;;  %v8262_v49 = vld [vmem:[%s13250_s9 + $0x300] sm:$0xf0] }
 0x9e4   : > { %3856 = vmatpush.bf16.msrb.mxu0 %v9397_v53  ;;  %v9502_v53 = vld [vmem:[%s13250_s9 + $0x304] sm:$0xf0] }
 0x9e6   : > { %7976 = vmatmul.msk.bf16.vlgmr.msrb.gmra.mxu1 %vm3249_vm4, %v9400_v30  ;;  %v8780_v30 = vld [vmem:[%s13250_s9 + $0x608] sm:$0xf] }
 0x9e7   : > { %v8781_v24 = vor.u32 %v9630_v22, %v8780_v30  ;;  %v8532_v22 = vld [vmem:[%s13250_s9 + $0x410] sm:$0xf] }
 0x9e8   : > { %3857 = vmatpush.bf16.msrb.mxu0 %v9396_v40  ;;  %v8270_v40 = vld [vmem:[%s13250_s9 + $0x308] sm:$0xf0] }
 0x9e9   : > { %5522 = vmatpush.bf16.msra.mxu1 %v8781_v24  ;;  %v9567_v24 = vld [vmem:[%s13250_s9 + $0x50c] sm:$0xf0] }
 0x9ea   : > { %v8533_v55 = vor.u32 %v9567_v24, %v8532_v22  ;;  %v8812_v22 = vld [vmem:[%s13250_s9 + $0x628] sm:$0xf] }
 0x9eb   : > { %7969 = vmatmul.msk.bf16.vlgmr.msrb.gmra.mxu0 %vm3339_vm5, %v3813_v6  ;;  %v9437_v6 = vld [vmem:[%s13250_s9 + $0xfc] sm:$0xf0] }
 0x9ec   : > { %5509 = vmatpush.bf16.msra.mxu0 %v8777_v54  ;;  %v8797_v54 = vor.u32 %v9632_v33, %v8796_v12 }
 0x9ed   : > { %5523 = vmatpush.bf16.msra.mxu1 %v8525_v9  ;;  %v8276_v9 = vld [vmem:[%s13250_s9 + $0x210] sm:$0xf] }
 0x9f0   : > { %5510 = vmatpush.bf16.msra.mxu0 %v8521_v41  ;;  %v8542_v41 = vld [vmem:[%s13250_s9 + $0x518] sm:$0xf0] }
 0x9f1   : > { %v8545_v51 = vor.u32 %v9536_v50, %v8542_v41  ;;  %v9569_v50 = vld [vmem:[%s13250_s9 + $0x51c] sm:$0xf0]  ;;  %v9537_v41 = vld [vmem:[%s13250_s9 + $0x424] sm:$0xf] }
 0xa23   : > { %v11303_v3 = vpop.f32.mrf.mxu1  ;;  %v11365_v19 = vpop.f32.mrf.mxu2 }
 0xa24   : > { %v11371_v47 = vpop.f32.mrf.mxu0 }
 0xa2b   : > { %v11318_v37 = vpop.f32.mrf.mxu1  ;;  %v11367_v10 = vpop.f32.mrf.mxu2 }
 0xa2c   : > { %v11375_v18 = vpop.f32.mrf.mxu0  ;;  %v3396_v59 = vadd.f32 %v11367_v10, %v11318_v37  ;;  %v8278_v37 = vld [vmem:[%s13250_s9 + $0x310] sm:$0xf0]  ;;  %v8284_v10 = vld [vmem:[%s13250_s9 + $0x218] sm:$0xf] }
 0xa33   : > { %v3418_v39 = vpop.f32.mrf.mxu1 }
 0xa3b   : > { %v3420_v20 = vpop.f32.mrf.mxu1 }
 0xa3c   : > { %v3423_v2 = vpack.c.bf16 %v3420_v20, %v3418_v39  ;;  %v8261_v39 = vor.u32 %v9501_v43, %v8260_v32  ;;  %v8265_v20 = vor.u32 %v9469_v60, %v8262_v49  ;;  %v8277_v60 = vor.u32 %v9503_v31, %v8276_v9  ;;  %v9472_v49 = vld [vmem:[%s13250_s9 + $0x21c] sm:$0xf]  ;;  %v8550_v9 = vld [vmem:[%s13250_s9 + $0x520] sm:$0xf0]  ;;  %v8556_v31 = vld [vmem:[%s13250_s9 + $0x428] sm:$0xf] }
 0xa3e   : > { %7809 = vmatmul.msk.bf16.vlgmr.msra.gmra.mxu2 %vm3339_vm5, %v3423_v2  ;;  %v9470_v2 = vld [vmem:[%s13250_s9 + $0x20c] sm:$0xf]  ;;  %5498 = vmatpush.bf16.msra.mxu3 %v8261_v39  ;;  %v9504_v39 = vld [vmem:[%s13250_s9 + $0x314] sm:$0xf0] }
 0xa3f   : > { %3776 = vmatpush.bf16.msra.mxu2 %v9394_v16  ;;  %v8269_v16 = vor.u32 %v9502_v53, %v8268_v45  ;;  %5511 = vmatpush.bf16.msra.mxu0 %v8265_v20  ;;  %v8286_v45 = vld [vmem:[%s13250_s9 + $0x318] sm:$0xf0]  ;;  %v8285_v20 = vor.u32 %v9504_v39, %v8284_v10 }
 0xa41   : > { %5524 = vmatpush.bf16.msra.mxu1 %v8269_v16  ;;  %v9439_v16 = vld [vmem:[%s13250_s9 + $0x10c] sm:$0xf0] }
 0xa43   : > { %v3574_v57 = vpop.f32.mrf.mxu1  ;;  %3777 = vmatpush.bf16.msra.mxu2 %v9393_v1  ;;  %v8273_v1 = vor.u32 %v9470_v2, %v8270_v40  ;;  %v9407_v2 = vld [vmem:[%s13250_s9 + $0x14] sm:$0xf] }
 0xa47   : > { %3778 = vmatpush.bf16.msra.mxu2 %v9392_v34  ;;  %v8005_v34 = vor.u32 %v9437_v6, %v8004_v44  ;;  %v8022_v44 = vld [vmem:[%s13250_s9 + $0x110] sm:$0xf0]  ;;  %v8028_v6 = vld [vmem:[%s13250_s9 + $0x18] sm:$0xf] }
 0xa49   : > { %5499 = vmatpush.bf16.msra.mxu3 %v8005_v34  ;;  %v9408_v34 = vld [vmem:[%s13250_s9 + $0x1c] sm:$0xf] }
 0xa4b   : > { %v3576_v25 = vpop.f32.mrf.mxu1  ;;  %3779 = vmatpush.bf16.msra.mxu2 %v9391_v46  ;;  %v8006_v46 = vld [vmem:[%s13250_s9 + $0x100] sm:$0xf0] }
 0xa4c   : > { %v3579_v35 = vpack.c.bf16 %v3576_v25, %v3574_v57  ;;  %v9405_v57 = vld [vmem:[%s13250_s9 + $0x4] sm:$0xf]  ;;  %v8012_v25 = vld [vmem:[%s13250_s9 + $0x8] sm:$0xf] }
 0xa4e   : > { %7873 = vmatmul.msk.bf16.vlgmr.msrb.gmra.mxu2 %vm3339_vm5, %v3579_v35  ;;  %v8009_v35 = vor.u32 %v9405_v57, %v8006_v46  ;;  %v9440_v57 = vld [vmem:[%s13250_s9 + $0x114] sm:$0xf0] }
 0xa4f   : > { %3932 = vmatpush.bf16.msrb.mxu2 %v9404_v38  ;;  %v9438_v38 = vld [vmem:[%s13250_s9 + $0x104] sm:$0xf0] }
 0xa50   : > { %5512 = vmatpush.bf16.msra.mxu0 %v8009_v35  ;;  %v8025_v35 = vor.u32 %v9407_v2, %v8022_v44  ;;  %v9441_v44 = vld [vmem:[%s13250_s9 + $0x11c] sm:$0xf0] }
 0xa53   : > { %v3730_v52 = vpop.f32.mrf.mxu1  ;;  %3933 = vmatpush.bf16.msrb.mxu2 %v9403_v28  ;;  %v8013_v28 = vor.u32 %v9438_v38, %v8012_v25 }
 0xa55   : > { %5525 = vmatpush.bf16.msra.mxu1 %v8013_v28  ;;  %v8029_v28 = vor.u32 %v9440_v57, %v8028_v6 }
 0xa57   : > { %3934 = vmatpush.bf16.msrb.mxu2 %v9402_v21  ;;  %v8014_v21 = vld [vmem:[%s13250_s9 + $0x108] sm:$0xf0] }
 0xa58   : > { %v11427_v0 = vpop.f32.mrf.mxu0 }
 0xa59   : > { %5574 = vmatpush.bf16.msrb.mxu1 %v8797_v54  ;;  %v8804_v54 = vld [vmem:[%s13250_s9 + $0x620] sm:$0xf] }
 0xa5b   : > { %v3732_v61 = vpop.f32.mrf.mxu1  ;;  %3935 = vmatpush.bf16.msrb.mxu2 %v9401_v48 }
 0xa5c   : > { %v3735_v36 = vpack.c.bf16 %v3732_v61, %v3730_v52  ;;  %v9406_v52 = vld [vmem:[%s13250_s9 + $0xc] sm:$0xf] }
 0xa5d   : > { %v8017_v48 = vor.u32 %v9406_v52, %v8014_v21 }
 0xa5e   : > { %7937 = vmatmul.msk.bf16.vlgmr.msra.gmra.mxu2 %vm3339_vm5, %v3735_v36  ;;  %v8788_v36 = vld [vmem:[%s13250_s9 + $0x610] sm:$0xf] }
 0xa5f   : > { %5535 = vmatpush.bf16.msra.mxu2 %v8785_v17  ;;  %v9535_v17 = vld [vmem:[%s13250_s9 + $0x414] sm:$0xf] }
 0xa60   : > { %v11501_v7 = vpop.f32.mrf.mxu0  ;;  %v8537_v42 = vor.u32 %v9535_v17, %v8534_v63  ;;  %v9602_v17 = vld [vmem:[%s13250_s9 + $0x62c] sm:$0xf] }
 0xa61   : > { %v8814_v63 = vld [vmem:[%s13250_s9 + $0x728] sm:$0xf0] }
 0xa63   : > { %v3886_v27 = vpop.f32.mrf.mxu1  ;;  %5536 = vmatpush.bf16.msra.mxu2 %v8529_v15  ;;  %v9471_v15 = vld [vmem:[%s13250_s9 + $0x214] sm:$0xf] }
 0xa67   : > { %5537 = vmatpush.bf16.msra.mxu2 %v8273_v1  ;;  %v8289_v1 = vor.u32 %v9472_v49, %v8286_v45  ;;  %v9473_v45 = vld [vmem:[%s13250_s9 + $0x224] sm:$0xf] }
 0xa68   : > { %v3859_v38 = vpop.f32.mrf.mxu0 }
 0xa6b   : > { %v3888_v23 = vpop.f32.mrf.mxu1  ;;  %5538 = vmatpush.bf16.msra.mxu2 %v8017_v48 }
 0xa6c   : > { %v3891_v58 = vpack.c.bf16 %v3888_v23, %v3886_v27  ;;  %v9631_v27 = vld [vmem:[%s13250_s9 + $0x70c] sm:$0xf0]  ;;  %v9599_v23 = vld [vmem:[%s13250_s9 + $0x614] sm:$0xf] }
 0xa6d   : > { %v8789_v26 = vor.u32 %v9631_v27, %v8788_v36  ;;  %v8793_v30 = vor.u32 %v9599_v23, %v8790_v5 }
 0xa6e   : > { %8001 = vmatmul.msk.bf16.vlgmr.msrb.gmra.mxu2 %vm3339_vm5, %v3891_v58  ;;  %v3394_v58 = vadd.f32 %v11365_v19, %v11303_v3  ;;  %v9600_v3 = vld [vmem:[%s13250_s9 + $0x61c] sm:$0xf] }
 0xa6f   : > { %v8798_v19 = vld [vmem:[%s13250_s9 + $0x718] sm:$0xf0]  ;;  %5548 = vmatpush.bf16.msrb.mxu3 %v8789_v26  ;;  %5561 = vmatpush.bf16.msrb.mxu0 %v8793_v30 }
 0xa70   : > { %v8801_v4 = vor.u32 %v9600_v3, %v8798_v19  ;;  %v3861_v5 = vpop.f32.mrf.mxu0  ;;  %v9601_v3 = vld [vmem:[%s13250_s9 + $0x624] sm:$0xf] }
 0xa71   : > { %v8806_v19 = vld [vmem:[%s13250_s9 + $0x720] sm:$0xf0] }
 0xa72   : > { %5587 = vmatpush.bf16.msrb.mxu2 %v8801_v4 }
 0xa73   : > { %5549 = vmatpush.bf16.msrb.mxu3 %v8533_v55  ;;  %5562 = vmatpush.bf16.msrb.mxu0 %v8537_v42 }
 0xa76   : > { %5588 = vmatpush.bf16.msrb.mxu2 %v8545_v51  ;;  %v9570_v51 = vld [vmem:[%s13250_s9 + $0x524] sm:$0xf0] }
 0xa77   : > { %5550 = vmatpush.bf16.msrb.mxu3 %v8277_v60  ;;  %v9505_v60 = vld [vmem:[%s13250_s9 + $0x31c] sm:$0xf0]  ;;  %v8557_v39 = vor.u32 %v9570_v51, %v8556_v31  ;;  %v8318_v31 = vld [vmem:[%s13250_s9 + $0x338] sm:$0xf0] }
 0xa7a   : > { %5589 = vmatpush.bf16.msrb.mxu2 %v8289_v1  ;;  %v8036_v1 = vld [vmem:[%s13250_s9 + $0x20] sm:$0xf] }
 0xac1   : > { %v11369_v8 = vpop.f32.mrf.mxu2 }
 0xac2   : > { %v3474_v62 = vadd.f32 %v11369_v8, %v3394_v58  ;;  %v8540_v8 = vld [vmem:[%s13250_s9 + $0x418] sm:$0xf] }
 0xac3   : > { %v8541_v13 = vor.u32 %v9568_v11, %v8540_v8  ;;  %v8809_v8 = vor.u32 %v9601_v3, %v8806_v19  ;;  %v8548_v11 = vld [vmem:[%s13250_s9 + $0x420] sm:$0xf]  ;;  %v8566_v3 = vld [vmem:[%s13250_s9 + $0x530] sm:$0xf0]  ;;  %v8572_v19 = vld [vmem:[%s13250_s9 + $0x438] sm:$0xf] }
 0xac4   : > { %v3552_v32 = vadd.f32 %v11371_v47, %v3474_v62  ;;  %v8281_v47 = vor.u32 %v9471_v15, %v8278_v37  ;;  %v9634_v62 = vld [vmem:[%s13250_s9 + $0x724] sm:$0xf0]  ;;  %v9538_v15 = vld [vmem:[%s13250_s9 + $0x42c] sm:$0xf]  ;;  %v8549_v10 = vor.u32 %v9569_v50, %v8548_v11  ;;  %v9475_v50 = vld [vmem:[%s13250_s9 + $0x234] sm:$0xf] }
 0xac5   : > { %5575 = vmatpush.bf16.msrb.mxu1 %v8541_v13  ;;  %v8817_v13 = vor.u32 %v9602_v17, %v8814_v63  ;;  %v8558_v37 = vld [vmem:[%s13250_s9 + $0x528] sm:$0xf0]  ;;  %v8308_v63 = vld [vmem:[%s13250_s9 + $0x230] sm:$0xf] }
 0xac6   : > { %5563 = vmatpush.bf16.msrb.mxu0 %v8281_v47  ;;  %v8561_v49 = vor.u32 %v9538_v15, %v8558_v37  ;;  %v8300_v47 = vld [vmem:[%s13250_s9 + $0x228] sm:$0xf]  ;;  %v8052_v37 = vld [vmem:[%s13250_s9 + $0x30] sm:$0xf] }
 0xac9   : > { %v11373_v14 = vpop.f32.mrf.mxu2  ;;  %5576 = vmatpush.bf16.msrb.mxu1 %v8285_v20  ;;  %v9506_v20 = vld [vmem:[%s13250_s9 + $0x324] sm:$0xf0] }
 0xaca   : > { %v3475_v43 = vadd.f32 %v11373_v14, %v3396_v59  ;;  %v8020_v14 = vld [vmem:[%s13250_s9 + $0x10] sm:$0xf]  ;;  %5564 = vmatpush.bf16.msrb.mxu0 %v8025_v35  ;;  %v8813_v59 = vor.u32 %v9634_v62, %v8812_v22  ;;  %v8301_v6 = vor.u32 %v9506_v20, %v8300_v47  ;;  %v8046_v35 = vld [vmem:[%s13250_s9 + $0x128] sm:$0xf0]  ;;  %v9572_v22 = vld [vmem:[%s13250_s9 + $0x534] sm:$0xf0] }
 0xacb   : > { %v8021_v25 = vor.u32 %v9439_v16, %v8020_v14  ;;  %v9474_v14 = vld [vmem:[%s13250_s9 + $0x22c] sm:$0xf]  ;;  %v9540_v62 = vld [vmem:[%s13250_s9 + $0x43c] sm:$0xf] }
 0xacc   : > { %v3553_v46 = vadd.f32 %v11375_v18, %v3475_v43  ;;  %v8292_v43 = vld [vmem:[%s13250_s9 + $0x220] sm:$0xf]  ;;  %v8302_v16 = vld [vmem:[%s13250_s9 + $0x328] sm:$0xf0]  ;;  %v8062_v47 = vld [vmem:[%s13250_s9 + $0x138] sm:$0xf0] }
 0xacd   : > { %5551 = vmatpush.bf16.msrb.mxu3 %v8021_v25  ;;  %5577 = vmatpush.bf16.msrb.mxu1 %v8029_v28  ;;  %v8293_v2 = vor.u32 %v9505_v60, %v8292_v43  ;;  %v8305_v57 = vor.u32 %v9474_v14, %v8302_v16  ;;  %v9442_v25 = vld [vmem:[%s13250_s9 + $0x124] sm:$0xf0]  ;;  %v8037_v28 = vor.u32 %v9441_v44, %v8036_v1  ;;  %v9411_v60 = vld [vmem:[%s13250_s9 + $0x34] sm:$0xf]  ;;  %v8836_v16 = vld [vmem:[%s13250_s9 + $0x640] sm:$0xf] }
 0xace   : > { %v9605_v44 = vld [vmem:[%s13250_s9 + $0x644] sm:$0xf] }
 0xad1   : > { %v11377_v56 = vpop.f32.mrf.mxu2 }
 0xad2   : > { %v3630_v40 = vadd.f32 %v11377_v56, %v3552_v32  ;;  %v8030_v56 = vld [vmem:[%s13250_s9 + $0x118] sm:$0xf0]  ;;  %v8553_v32 = vor.u32 %v9537_v41, %v8550_v9  ;;  %v9508_v41 = vld [vmem:[%s13250_s9 + $0x334] sm:$0xf0] }
 0xad3   : > { %v8033_v48 = vor.u32 %v9408_v34, %v8030_v56  ;;  %v9409_v34 = vld [vmem:[%s13250_s9 + $0x24] sm:$0xf]  ;;  %v9476_v9 = vld [vmem:[%s13250_s9 + $0x23c] sm:$0xf] }
 0xad4   : > { %v3708_v52 = vadd.f32 %v11427_v0, %v3630_v40  ;;  %v9739_v0 = vld [vmem:[%s13249_s8] ss:$0 sm:$0xff]  ;;  %v8038_v56 = vld [vmem:[%s13250_s9 + $0x120] sm:$0xf0]  ;;  %v8321_v43 = vor.u32 %v9476_v9, %v8318_v31  ;;  %v8852_v31 = vld [vmem:[%s13250_s9 + $0x650] sm:$0xf] }
 0xad5   : > { %5590 = vmatpush.bf16.msrb.mxu2 %v8033_v48  ;;  %v9635_v48 = vld [vmem:[%s13250_s9 + $0x72c] sm:$0xf0] }
 0xad9   : > { %v11429_v29 = vpop.f32.mrf.mxu2 }
 0xada   : > { %v3631_v21 = vadd.f32 %v11429_v29, %v3553_v46  ;;  %v8044_v46 = vld [vmem:[%s13250_s9 + $0x28] sm:$0xf] }
 0xadc   : > { %v3709_v18 = vadd.f32 %v11501_v7, %v3631_v21  ;;  %v9633_v7 = vld [vmem:[%s13250_s9 + $0x71c] sm:$0xf0]  ;;  %v8820_v21 = vld [vmem:[%s13250_s9 + $0x630] sm:$0xf] }
 0xadd   : > { %v8805_v42 = vor.u32 %v9633_v7, %v8804_v54  ;;  %v9539_v7 = vld [vmem:[%s13250_s9 + $0x434] sm:$0xf] }
 0xade   : > { %v8569_v17 = vor.u32 %v9539_v7, %v8566_v3  ;;  %v9510_v7 = vld [vmem:[%s13250_s9 + $0x344] sm:$0xf0]  ;;  %v9478_v3 = vld [vmem:[%s13250_s9 + $0x24c] sm:$0xf] }
 0xae1   : > { %v11479_v61 = vpop.f32.mrf.mxu2 }
 0xae2   : > { %v3786_v36 = vadd.f32 %v11479_v61, %v3708_v52  ;;  %v8041_v52 = vor.u32 %v9409_v34, %v8038_v56  ;;  %v9638_v34 = vld [vmem:[%s13250_s9 + $0x744] sm:$0xf0]  ;;  %v9606_v56 = vld [vmem:[%s13250_s9 + $0x64c] sm:$0xf] }
 0xae4   : > { %v3864_v23 = vadd.f32 %v3859_v38, %v3786_v36  ;;  %v9410_v38 = vld [vmem:[%s13250_s9 + $0x2c] sm:$0xf]  ;;  %v8045_v36 = vor.u32 %v9442_v25, %v8044_v46 }
 0xae5   : > { %v8846_v46 = vld [vmem:[%s13250_s9 + $0x748] sm:$0xf0] }
 0xae9   : > { %v3783_v53 = vpop.f32.mrf.mxu2 }
 0xaea   : > { %v3787_v58 = vadd.f32 %v3783_v53, %v3709_v18  ;;  %v8294_v53 = vld [vmem:[%s13250_s9 + $0x320] sm:$0xf0]  ;;  %v9603_v18 = vld [vmem:[%s13250_s9 + $0x634] sm:$0xf] }
 0xaeb   : > { %v8297_v40 = vor.u32 %v9473_v45, %v8294_v53  ;;  %v9444_v45 = vld [vmem:[%s13250_s9 + $0x134] sm:$0xf0]  ;;  %v9412_v53 = vld [vmem:[%s13250_s9 + $0x3c] sm:$0xf] }
 0xaec   : > { %v3865_v29 = vadd.f32 %v3861_v5, %v3787_v58  ;;  %v8828_v58 = vld [vmem:[%s13250_s9 + $0x638] sm:$0xf]  ;;  %v8830_v5 = vld [vmem:[%s13250_s9 + $0x738] sm:$0xf0]  ;;  %v8065_v1 = vor.u32 %v9412_v53, %v8062_v47  ;;  %v8596_v47 = vld [vmem:[%s13250_s9 + $0x450] sm:$0xf] }
 0xaf1   : > { %v3937_v27 = vpop.f32.mrf.mxu2 }
 0xaf2   : > { %v3942_v26 = vadd.f32 %v3937_v27, %v3864_v23  ;;  %v8049_v27 = vor.u32 %v9410_v38, %v8046_v35  ;;  %v8822_v23 = vld [vmem:[%s13250_s9 + $0x730] sm:$0xf0]  ;;  %v8580_v35 = vld [vmem:[%s13250_s9 + $0x440] sm:$0xf] }
 0xaf4   : > { %v3948_v33 = vadd.f32 %v9739_v0, %v3942_v26  ;;  %v9636_v26 = vld [vmem:[%s13250_s9 + $0x734] sm:$0xf0] }
 0xaf6   : > { %v3950_v4 = vmax.f32 %v3948_v33, 0.0  ;;  %v8564_v33 = vld [vmem:[%s13250_s9 + $0x430] sm:$0xf] }
 0xaf9   : > { %v3939_v12 = vpop.f32.mrf.mxu2 }
 0xafa   : > { %v3943_v30 = vadd.f32 %v3939_v12, %v3865_v29  ;;  %v8821_v29 = vor.u32 %v9635_v48, %v8820_v21  ;;  %v8825_v12 = vor.u32 %v9603_v18, %v8822_v23  ;;  %v8849_v21 = vor.u32 %v9606_v56, %v8846_v46  ;;  %v9541_v48 = vld [vmem:[%s13250_s9 + $0x444] sm:$0xf]  ;;  %v9574_v18 = vld [vmem:[%s13250_s9 + $0x544] sm:$0xf0]  ;;  %v9542_v23 = vld [vmem:[%s13250_s9 + $0x44c] sm:$0xf] }
 0xafb   : > { %v8340_v46 = vld [vmem:[%s13250_s9 + $0x250] sm:$0xf] }
 0xafc   : > { %v3949_v61 = vadd.f32 %v9739_v0, %v3943_v30  ;;  %v9604_v0 = vld [vmem:[%s13250_s9 + $0x63c] sm:$0xf]  ;;  %v9571_v30 = vld [vmem:[%s13250_s9 + $0x52c] sm:$0xf0] }
 0xafd   : > { %v8833_v54 = vor.u32 %v9604_v0, %v8830_v5  ;;  %v8324_v5 = vld [vmem:[%s13250_s9 + $0x240] sm:$0xf] }
 0xafe   : > { %v3951_v24 = vmax.f32 %v3949_v61, 0.0  ;;  %v8829_v61 = vor.u32 %v9636_v26, %v8828_v58  ;;  %v8590_v58 = vld [vmem:[%s13250_s9 + $0x548] sm:$0xf0] }
 0xb00   : > { %v11619_v55 = vpack.c.bf16 %v3951_v24, %v3950_v4  ;;  %v8574_v4 = vld [vmem:[%s13250_s9 + $0x538] sm:$0xf0]  ;;  %v8565_v24 = vor.u32 %v9571_v30, %v8564_v33  ;;  %v8593_v33 = vor.u32 %v9542_v23, %v8590_v58  ;;  %v9477_v30 = vld [vmem:[%s13250_s9 + $0x244] sm:$0xf]  ;;  %v8084_v58 = vld [vmem:[%s13250_s9 + $0x50] sm:$0xf] }
 0xb01   : > { %v8577_v11 = vor.u32 %v9540_v62, %v8574_v4  ;;  %v8068_v4 = vld [vmem:[%s13250_s9 + $0x40] sm:$0xf] }
 0xb02   : > { %9026 = vmatmul.msk.bf16.vlgmr.msra.gmra.mxu3 %vm3339_vm5, %v11619_v55  ;;  %9027 = vmatmul.msk.bf16.vlgmr.msra.gmra.mxu0 %vm3339_vm5, %v11619_v55 }
 0xb03   : > { %9028 = vmatmul.msk.bf16.vlgmr.msra.gmra.mxu1 %vm3339_vm5, %v11619_v55  ;;  %9029 = vmatmul.msk.bf16.vlgmr.msra.gmra.mxu2 %vm3339_vm5, %v11619_v55 }
 0xb04   : > { %5600 = vmatpush.bf16.msra.mxu3 %v8805_v42  ;;  %5613 = vmatpush.bf16.msra.mxu0 %v8809_v8  ;;  %v9507_v42 = vld [vmem:[%s13250_s9 + $0x32c] sm:$0xf0]  ;;  %v8573_v8 = vor.u32 %v9572_v22, %v8572_v19  ;;  %v8334_v19 = vld [vmem:[%s13250_s9 + $0x348] sm:$0xf0] }
 0xb05   : > { %5626 = vmatpush.bf16.msra.mxu1 %v8813_v59  ;;  %5639 = vmatpush.bf16.msra.mxu2 %v8817_v13  ;;  %v8310_v59 = vld [vmem:[%s13250_s9 + $0x330] sm:$0xf0]  ;;  %v8316_v13 = vld [vmem:[%s13250_s9 + $0x238] sm:$0xf]  ;;  %v8309_v51 = vor.u32 %v9507_v42, %v8308_v63  ;;  %v8337_v63 = vor.u32 %v9478_v3, %v8334_v19  ;;  %v9413_v42 = vld [vmem:[%s13250_s9 + $0x44] sm:$0xf] }
 0xb06   : > { %v8313_v15 = vor.u32 %v9475_v50, %v8310_v59  ;;  %v9446_v50 = vld [vmem:[%s13250_s9 + $0x144] sm:$0xf0]  ;;  %v9414_v59 = vld [vmem:[%s13250_s9 + $0x4c] sm:$0xf]  ;;  %v8868_v19 = vld [vmem:[%s13250_s9 + $0x660] sm:$0xf] }
 0xb08   : > { %5601 = vmatpush.bf16.msra.mxu3 %v8549_v10  ;;  %5614 = vmatpush.bf16.msra.mxu0 %v8553_v32  ;;  %v9443_v10 = vld [vmem:[%s13250_s9 + $0x12c] sm:$0xf0]  ;;  %v8317_v32 = vor.u32 %v9508_v41, %v8316_v13  ;;  %v8078_v13 = vld [vmem:[%s13250_s9 + $0x148] sm:$0xf0] }
 0xb09   : > { %5627 = vmatpush.bf16.msra.mxu1 %v8557_v39  ;;  %5640 = vmatpush.bf16.msra.mxu2 %v8561_v49  ;;  %v8054_v39 = vld [vmem:[%s13250_s9 + $0x130] sm:$0xf0]  ;;  %v8060_v49 = vld [vmem:[%s13250_s9 + $0x38] sm:$0xf]  ;;  %v8053_v20 = vor.u32 %v9443_v10, %v8052_v37  ;;  %v8081_v37 = vor.u32 %v9414_v59, %v8078_v13  ;;  %v8612_v13 = vld [vmem:[%s13250_s9 + $0x460] sm:$0xf] }
 0xb0a   : > { %v8057_v14 = vor.u32 %v9411_v60, %v8054_v39  ;;  %v9607_v10 = vld [vmem:[%s13250_s9 + $0x654] sm:$0xf]  ;;  %v9640_v60 = vld [vmem:[%s13250_s9 + $0x754] sm:$0xf0]  ;;  %v9608_v39 = vld [vmem:[%s13250_s9 + $0x65c] sm:$0xf] }
 0xb0c   : > { %5602 = vmatpush.bf16.msra.mxu3 %v8293_v2  ;;  %5615 = vmatpush.bf16.msra.mxu0 %v8297_v40  ;;  %v9637_v2 = vld [vmem:[%s13250_s9 + $0x73c] sm:$0xf0]  ;;  %v8061_v40 = vor.u32 %v9444_v45, %v8060_v49  ;;  %v8862_v49 = vld [vmem:[%s13250_s9 + $0x758] sm:$0xf0] }
 0xb0d   : > { %5628 = vmatpush.bf16.msra.mxu1 %v8301_v6  ;;  %5641 = vmatpush.bf16.msra.mxu2 %v8305_v57  ;;  %v8838_v6 = vld [vmem:[%s13250_s9 + $0x740] sm:$0xf0]  ;;  %v8844_v57 = vld [vmem:[%s13250_s9 + $0x648] sm:$0xf]  ;;  %v8837_v25 = vor.u32 %v9637_v2, %v8836_v16  ;;  %v8865_v16 = vor.u32 %v9608_v39, %v8862_v49  ;;  %v9543_v2 = vld [vmem:[%s13250_s9 + $0x454] sm:$0xf] }
 0xb0e   : > { %v8841_v38 = vor.u32 %v9605_v44, %v8838_v6  ;;  %v9576_v44 = vld [vmem:[%s13250_s9 + $0x554] sm:$0xf0]  ;;  %v9544_v6 = vld [vmem:[%s13250_s9 + $0x45c] sm:$0xf]  ;;  %v8356_v49 = vld [vmem:[%s13250_s9 + $0x260] sm:$0xf] }
 0xb10   : > { %5603 = vmatpush.bf16.msra.mxu3 %v8037_v28  ;;  %5616 = vmatpush.bf16.msra.mxu0 %v8041_v52  ;;  %v9573_v28 = vld [vmem:[%s13250_s9 + $0x53c] sm:$0xf0]  ;;  %v8845_v52 = vor.u32 %v9638_v34, %v8844_v57  ;;  %v8606_v57 = vld [vmem:[%s13250_s9 + $0x558] sm:$0xf0] }
 0xb11   : > { %5629 = vmatpush.bf16.msra.mxu1 %v8045_v36  ;;  %5642 = vmatpush.bf16.msra.mxu2 %v8049_v27  ;;  %v8582_v36 = vld [vmem:[%s13250_s9 + $0x540] sm:$0xf0]  ;;  %v8588_v27 = vld [vmem:[%s13250_s9 + $0x448] sm:$0xf]  ;;  %v8581_v26 = vor.u32 %v9573_v28, %v8580_v35  ;;  %v8609_v35 = vor.u32 %v9544_v6, %v8606_v57  ;;  %v9479_v28 = vld [vmem:[%s13250_s9 + $0x254] sm:$0xf] }
 0xb12   : > { %9030 = vmatmul.msk.bf16.vlgmr.msrb.gmra.mxu3 %vm3339_vm5, %v11619_v55  ;;  %9031 = vmatmul.msk.bf16.vlgmr.msrb.gmra.mxu0 %vm3339_vm5, %v11619_v55  ;;  %v8585_v0 = vor.u32 %v9541_v48, %v8582_v36  ;;  %v9512_v48 = vld [vmem:[%s13250_s9 + $0x354] sm:$0xf0]  ;;  %v9480_v36 = vld [vmem:[%s13250_s9 + $0x25c] sm:$0xf]  ;;  %v8100_v57 = vld [vmem:[%s13250_s9 + $0x60] sm:$0xf] }
 0xb13   : > { %9032 = vmatmul.msk.bf16.vlgmr.msrb.gmra.mxu1 %vm3339_vm5, %v11619_v55  ;;  %9033 = vmatmul.msk.bf16.vlgmr.msrb.gmra.mxu2 %vm3339_vm5, %v11619_v55 }
 0xb14   : > { %5652 = vmatpush.bf16.msrb.mxu3 %v8821_v29  ;;  %5665 = vmatpush.bf16.msrb.mxu0 %v8825_v12  ;;  %v9509_v29 = vld [vmem:[%s13250_s9 + $0x33c] sm:$0xf0]  ;;  %v8589_v12 = vor.u32 %v9574_v18, %v8588_v27  ;;  %v8350_v27 = vld [vmem:[%s13250_s9 + $0x358] sm:$0xf0] }
 0xb15   : > { %5678 = vmatpush.bf16.msrb.mxu1 %v8829_v61  ;;  %5691 = vmatpush.bf16.msrb.mxu2 %v8833_v54  ;;  %v8326_v61 = vld [vmem:[%s13250_s9 + $0x340] sm:$0xf0]  ;;  %v8332_v54 = vld [vmem:[%s13250_s9 + $0x248] sm:$0xf]  ;;  %v8325_v22 = vor.u32 %v9509_v29, %v8324_v5  ;;  %v8353_v5 = vor.u32 %v9480_v36, %v8350_v27  ;;  %v9415_v29 = vld [vmem:[%s13250_s9 + $0x54] sm:$0xf] }
 0xb16   : > { %v8329_v62 = vor.u32 %v9477_v30, %v8326_v61  ;;  %v9448_v30 = vld [vmem:[%s13250_s9 + $0x154] sm:$0xf0]  ;;  %v9416_v61 = vld [vmem:[%s13250_s9 + $0x5c] sm:$0xf]  ;;  %v8884_v27 = vld [vmem:[%s13250_s9 + $0x670] sm:$0xf] }
 0xb18   : > { %5653 = vmatpush.bf16.msrb.mxu3 %v8565_v24  ;;  %5666 = vmatpush.bf16.msrb.mxu0 %v8569_v17  ;;  %v9445_v24 = vld [vmem:[%s13250_s9 + $0x13c] sm:$0xf0]  ;;  %v8333_v17 = vor.u32 %v9510_v7, %v8332_v54  ;;  %v8094_v54 = vld [vmem:[%s13250_s9 + $0x158] sm:$0xf0] }
 0xb19   : > { %5679 = vmatpush.bf16.msrb.mxu1 %v8573_v8  ;;  %5692 = vmatpush.bf16.msrb.mxu2 %v8577_v11  ;;  %v8070_v8 = vld [vmem:[%s13250_s9 + $0x140] sm:$0xf0]  ;;  %v8076_v11 = vld [vmem:[%s13250_s9 + $0x48] sm:$0xf]  ;;  %v8069_v41 = vor.u32 %v9445_v24, %v8068_v4  ;;  %v8097_v4 = vor.u32 %v9416_v61, %v8094_v54  ;;  %v8628_v54 = vld [vmem:[%s13250_s9 + $0x470] sm:$0xf] }
 0xb1a   : > { %v8073_v9 = vor.u32 %v9413_v42, %v8070_v8  ;;  %v9609_v24 = vld [vmem:[%s13250_s9 + $0x664] sm:$0xf]  ;;  %v9642_v42 = vld [vmem:[%s13250_s9 + $0x764] sm:$0xf0]  ;;  %v9610_v8 = vld [vmem:[%s13250_s9 + $0x66c] sm:$0xf] }
 0xb1c   : > { %5654 = vmatpush.bf16.msrb.mxu3 %v8309_v51  ;;  %5667 = vmatpush.bf16.msrb.mxu0 %v8313_v15  ;;  %v9639_v51 = vld [vmem:[%s13250_s9 + $0x74c] sm:$0xf0]  ;;  %v8077_v15 = vor.u32 %v9446_v50, %v8076_v11  ;;  %v8878_v11 = vld [vmem:[%s13250_s9 + $0x768] sm:$0xf0] }
 0xb1d   : > { %5680 = vmatpush.bf16.msrb.mxu1 %v8317_v32  ;;  %5693 = vmatpush.bf16.msrb.mxu2 %v8321_v43  ;;  %v8854_v32 = vld [vmem:[%s13250_s9 + $0x750] sm:$0xf0]  ;;  %v8860_v43 = vld [vmem:[%s13250_s9 + $0x658] sm:$0xf]  ;;  %v8853_v45 = vor.u32 %v9639_v51, %v8852_v31  ;;  %v8881_v31 = vor.u32 %v9610_v8, %v8878_v11  ;;  %v9545_v51 = vld [vmem:[%s13250_s9 + $0x464] sm:$0xf] }
 0xb1e   : > { %v8857_v53 = vor.u32 %v9607_v10, %v8854_v32  ;;  %v9578_v10 = vld [vmem:[%s13250_s9 + $0x564] sm:$0xf0]  ;;  %v9546_v32 = vld [vmem:[%s13250_s9 + $0x46c] sm:$0xf]  ;;  %v8372_v11 = vld [vmem:[%s13250_s9 + $0x270] sm:$0xf] }
 0xb20   : > { %5655 = vmatpush.bf16.msrb.mxu3 %v8053_v20  ;;  %5668 = vmatpush.bf16.msrb.mxu0 %v8057_v14  ;;  %v9575_v20 = vld [vmem:[%s13250_s9 + $0x54c] sm:$0xf0]  ;;  %v8861_v14 = vor.u32 %v9640_v60, %v8860_v43  ;;  %v8622_v43 = vld [vmem:[%s13250_s9 + $0x568] sm:$0xf0] }
 0xb21   : > { %5681 = vmatpush.bf16.msrb.mxu1 %v8061_v40  ;;  %5694 = vmatpush.bf16.msrb.mxu2 %v8065_v1  ;;  %v8598_v40 = vld [vmem:[%s13250_s9 + $0x550] sm:$0xf0]  ;;  %v8604_v1 = vld [vmem:[%s13250_s9 + $0x458] sm:$0xf]  ;;  %v8597_v34 = vor.u32 %v9575_v20, %v8596_v47  ;;  %v8625_v47 = vor.u32 %v9546_v32, %v8622_v43  ;;  %v9481_v20 = vld [vmem:[%s13250_s9 + $0x264] sm:$0xf] }
 0xb22   : > { %9034 = vmatmul.msk.bf16.vlgmr.msra.gmra.mxu3 %vm3339_vm5, %v11619_v55  ;;  %9035 = vmatmul.msk.bf16.vlgmr.msra.gmra.mxu0 %vm3339_vm5, %v11619_v55  ;;  %v8601_v56 = vor.u32 %v9543_v2, %v8598_v40  ;;  %v9514_v2 = vld [vmem:[%s13250_s9 + $0x364] sm:$0xf0]  ;;  %v9482_v40 = vld [vmem:[%s13250_s9 + $0x26c] sm:$0xf]  ;;  %v8116_v43 = vld [vmem:[%s13250_s9 + $0x70] sm:$0xf] }
 0xb23   : > { %9036 = vmatmul.msk.bf16.vlgmr.msra.gmra.mxu1 %vm3339_vm5, %v11619_v55  ;;  %9037 = vmatmul.msk.bf16.vlgmr.msra.gmra.mxu2 %vm3339_vm5, %v11619_v55 }
 0xb24   : > { %5704 = vmatpush.bf16.msra.mxu3 %v8837_v25  ;;  %5717 = vmatpush.bf16.msra.mxu0 %v8841_v38  ;;  %v9511_v25 = vld [vmem:[%s13250_s9 + $0x34c] sm:$0xf0]  ;;  %v8605_v38 = vor.u32 %v9576_v44, %v8604_v1  ;;  %v8366_v1 = vld [vmem:[%s13250_s9 + $0x368] sm:$0xf0] }
 0xb25   : > { %5730 = vmatpush.bf16.msra.mxu1 %v8845_v52  ;;  %5743 = vmatpush.bf16.msra.mxu2 %v8849_v21  ;;  %v8342_v52 = vld [vmem:[%s13250_s9 + $0x350] sm:$0xf0]  ;;  %v8348_v21 = vld [vmem:[%s13250_s9 + $0x258] sm:$0xf]  ;;  %v8341_v18 = vor.u32 %v9511_v25, %v8340_v46  ;;  %v8369_v46 = vor.u32 %v9482_v40, %v8366_v1  ;;  %v9417_v25 = vld [vmem:[%s13250_s9 + $0x64] sm:$0xf] }
 0xb26   : > { %v8345_v23 = vor.u32 %v9479_v28, %v8342_v52  ;;  %v9450_v28 = vld [vmem:[%s13250_s9 + $0x164] sm:$0xf0]  ;;  %v9418_v52 = vld [vmem:[%s13250_s9 + $0x6c] sm:$0xf]  ;;  %v8900_v1 = vld [vmem:[%s13250_s9 + $0x680] sm:$0xf] }
 0xb28   : > { %5705 = vmatpush.bf16.msra.mxu3 %v8581_v26  ;;  %5718 = vmatpush.bf16.msra.mxu0 %v8585_v0  ;;  %v9447_v26 = vld [vmem:[%s13250_s9 + $0x14c] sm:$0xf0]  ;;  %v8349_v0 = vor.u32 %v9512_v48, %v8348_v21  ;;  %v8110_v21 = vld [vmem:[%s13250_s9 + $0x168] sm:$0xf0] }
 0xb29   : > { %5731 = vmatpush.bf16.msra.mxu1 %v8589_v12  ;;  %5744 = vmatpush.bf16.msra.mxu2 %v8593_v33  ;;  %v8086_v12 = vld [vmem:[%s13250_s9 + $0x150] sm:$0xf0]  ;;  %v8092_v33 = vld [vmem:[%s13250_s9 + $0x58] sm:$0xf]  ;;  %v8085_v7 = vor.u32 %v9447_v26, %v8084_v58  ;;  %v8113_v58 = vor.u32 %v9418_v52, %v8110_v21  ;;  %v8644_v21 = vld [vmem:[%s13250_s9 + $0x480] sm:$0xf] }
 0xb2a   : > { %v8089_v3 = vor.u32 %v9415_v29, %v8086_v12  ;;  %v9611_v26 = vld [vmem:[%s13250_s9 + $0x674] sm:$0xf]  ;;  %v9644_v29 = vld [vmem:[%s13250_s9 + $0x774] sm:$0xf0]  ;;  %v9612_v12 = vld [vmem:[%s13250_s9 + $0x67c] sm:$0xf] }
 0xb2c   : > { %5706 = vmatpush.bf16.msra.mxu3 %v8325_v22  ;;  %5719 = vmatpush.bf16.msra.mxu0 %v8329_v62  ;;  %v9641_v22 = vld [vmem:[%s13250_s9 + $0x75c] sm:$0xf0]  ;;  %v8093_v62 = vor.u32 %v9448_v30, %v8092_v33  ;;  %v8894_v33 = vld [vmem:[%s13250_s9 + $0x778] sm:$0xf0] }
 0xb2d   : > { %5732 = vmatpush.bf16.msra.mxu1 %v8333_v17  ;;  %5745 = vmatpush.bf16.msra.mxu2 %v8337_v63  ;;  %v8870_v17 = vld [vmem:[%s13250_s9 + $0x760] sm:$0xf0]  ;;  %v8876_v63 = vld [vmem:[%s13250_s9 + $0x668] sm:$0xf]  ;;  %v8869_v50 = vor.u32 %v9641_v22, %v8868_v19  ;;  %v8897_v19 = vor.u32 %v9612_v12, %v8894_v33  ;;  %v9547_v22 = vld [vmem:[%s13250_s9 + $0x474] sm:$0xf] }
 0xb2e   : > { %v8873_v59 = vor.u32 %v9609_v24, %v8870_v17  ;;  %v9580_v24 = vld [vmem:[%s13250_s9 + $0x574] sm:$0xf0]  ;;  %v9548_v17 = vld [vmem:[%s13250_s9 + $0x47c] sm:$0xf]  ;;  %v8388_v33 = vld [vmem:[%s13250_s9 + $0x280] sm:$0xf] }
 0xb30   : > { %5707 = vmatpush.bf16.msra.mxu3 %v8069_v41  ;;  %5720 = vmatpush.bf16.msra.mxu0 %v8073_v9  ;;  %v9577_v41 = vld [vmem:[%s13250_s9 + $0x55c] sm:$0xf0]  ;;  %v8877_v9 = vor.u32 %v9642_v42, %v8876_v63  ;;  %v8638_v63 = vld [vmem:[%s13250_s9 + $0x578] sm:$0xf0] }
 0xb31   : > { %5733 = vmatpush.bf16.msra.mxu1 %v8077_v15  ;;  %5746 = vmatpush.bf16.msra.mxu2 %v8081_v37  ;;  %v8614_v15 = vld [vmem:[%s13250_s9 + $0x560] sm:$0xf0]  ;;  %v8620_v37 = vld [vmem:[%s13250_s9 + $0x468] sm:$0xf]  ;;  %v8613_v60 = vor.u32 %v9577_v41, %v8612_v13  ;;  %v8641_v13 = vor.u32 %v9548_v17, %v8638_v63  ;;  %v9483_v41 = vld [vmem:[%s13250_s9 + $0x274] sm:$0xf] }
 0xb32   : > { %9038 = vmatmul.msk.bf16.vlgmr.msrb.gmra.mxu3 %vm3339_vm5, %v11619_v55  ;;  %9039 = vmatmul.msk.bf16.vlgmr.msrb.gmra.mxu0 %vm3339_vm5, %v11619_v55  ;;  %v8617_v39 = vor.u32 %v9545_v51, %v8614_v15  ;;  %v9516_v51 = vld [vmem:[%s13250_s9 + $0x374] sm:$0xf0]  ;;  %v9484_v15 = vld [vmem:[%s13250_s9 + $0x27c] sm:$0xf]  ;;  %v8132_v63 = vld [vmem:[%s13250_s9 + $0x80] sm:$0xf] }
 0xb33   : > { %9040 = vmatmul.msk.bf16.vlgmr.msrb.gmra.mxu1 %vm3339_vm5, %v11619_v55  ;;  %9041 = vmatmul.msk.bf16.vlgmr.msrb.gmra.mxu2 %vm3339_vm5, %v11619_v55 }
 0xb34   : > { %5756 = vmatpush.bf16.msrb.mxu3 %v8853_v45  ;;  %5769 = vmatpush.bf16.msrb.mxu0 %v8857_v53  ;;  %v9513_v45 = vld [vmem:[%s13250_s9 + $0x35c] sm:$0xf0]  ;;  %v8621_v53 = vor.u32 %v9578_v10, %v8620_v37  ;;  %v8382_v37 = vld [vmem:[%s13250_s9 + $0x378] sm:$0xf0] }
 0xb35   : > { %5782 = vmatpush.bf16.msrb.mxu1 %v8861_v14  ;;  %5795 = vmatpush.bf16.msrb.mxu2 %v8865_v16  ;;  %v8358_v14 = vld [vmem:[%s13250_s9 + $0x360] sm:$0xf0]  ;;  %v8364_v16 = vld [vmem:[%s13250_s9 + $0x268] sm:$0xf]  ;;  %v8357_v44 = vor.u32 %v9513_v45, %v8356_v49  ;;  %v8385_v49 = vor.u32 %v9484_v15, %v8382_v37  ;;  %v9419_v45 = vld [vmem:[%s13250_s9 + $0x74] sm:$0xf] }
 0xb36   : > { %v8361_v6 = vor.u32 %v9481_v20, %v8358_v14  ;;  %v9452_v20 = vld [vmem:[%s13250_s9 + $0x174] sm:$0xf0]  ;;  %v9420_v14 = vld [vmem:[%s13250_s9 + $0x7c] sm:$0xf]  ;;  %v8916_v37 = vld [vmem:[%s13250_s9 + $0x690] sm:$0xf] }
 0xb38   : > { %5757 = vmatpush.bf16.msrb.mxu3 %v8597_v34  ;;  %5770 = vmatpush.bf16.msrb.mxu0 %v8601_v56  ;;  %v9449_v34 = vld [vmem:[%s13250_s9 + $0x15c] sm:$0xf0]  ;;  %v8365_v56 = vor.u32 %v9514_v2, %v8364_v16  ;;  %v8126_v16 = vld [vmem:[%s13250_s9 + $0x178] sm:$0xf0] }
 0xb39   : > { %5783 = vmatpush.bf16.msrb.mxu1 %v8605_v38  ;;  %5796 = vmatpush.bf16.msrb.mxu2 %v8609_v35  ;;  %v8102_v38 = vld [vmem:[%s13250_s9 + $0x160] sm:$0xf0]  ;;  %v8108_v35 = vld [vmem:[%s13250_s9 + $0x68] sm:$0xf]  ;;  %v8101_v48 = vor.u32 %v9449_v34, %v8100_v57  ;;  %v8129_v57 = vor.u32 %v9420_v14, %v8126_v16  ;;  %v8660_v16 = vld [vmem:[%s13250_s9 + $0x490] sm:$0xf] }
 0xb3a   : > { %v8105_v36 = vor.u32 %v9417_v25, %v8102_v38  ;;  %v9613_v34 = vld [vmem:[%s13250_s9 + $0x684] sm:$0xf]  ;;  %v9646_v25 = vld [vmem:[%s13250_s9 + $0x784] sm:$0xf0]  ;;  %v9614_v38 = vld [vmem:[%s13250_s9 + $0x68c] sm:$0xf] }
 0xb3c   : > { %5758 = vmatpush.bf16.msrb.mxu3 %v8341_v18  ;;  %5771 = vmatpush.bf16.msrb.mxu0 %v8345_v23  ;;  %v9643_v18 = vld [vmem:[%s13250_s9 + $0x76c] sm:$0xf0]  ;;  %v8109_v23 = vor.u32 %v9450_v28, %v8108_v35  ;;  %v8910_v35 = vld [vmem:[%s13250_s9 + $0x788] sm:$0xf0] }
 0xb3d   : > { %5784 = vmatpush.bf16.msrb.mxu1 %v8349_v0  ;;  %5797 = vmatpush.bf16.msrb.mxu2 %v8353_v5  ;;  %v8886_v0 = vld [vmem:[%s13250_s9 + $0x770] sm:$0xf0]  ;;  %v8892_v5 = vld [vmem:[%s13250_s9 + $0x678] sm:$0xf]  ;;  %v8885_v30 = vor.u32 %v9643_v18, %v8884_v27  ;;  %v8913_v27 = vor.u32 %v9614_v38, %v8910_v35  ;;  %v9549_v18 = vld [vmem:[%s13250_s9 + $0x484] sm:$0xf] }
 0xb3e   : > { %v8889_v61 = vor.u32 %v9611_v26, %v8886_v0  ;;  %v9582_v26 = vld [vmem:[%s13250_s9 + $0x584] sm:$0xf0]  ;;  %v9550_v0 = vld [vmem:[%s13250_s9 + $0x48c] sm:$0xf]  ;;  %v8404_v35 = vld [vmem:[%s13250_s9 + $0x290] sm:$0xf] }
 0xb40   : > { %5759 = vmatpush.bf16.msrb.mxu3 %v8085_v7  ;;  %5772 = vmatpush.bf16.msrb.mxu0 %v8089_v3  ;;  %v9579_v7 = vld [vmem:[%s13250_s9 + $0x56c] sm:$0xf0]  ;;  %v8893_v3 = vor.u32 %v9644_v29, %v8892_v5  ;;  %v8654_v5 = vld [vmem:[%s13250_s9 + $0x588] sm:$0xf0] }
 0xb41   : > { %5785 = vmatpush.bf16.msrb.mxu1 %v8093_v62  ;;  %5798 = vmatpush.bf16.msrb.mxu2 %v8097_v4  ;;  %v8630_v62 = vld [vmem:[%s13250_s9 + $0x570] sm:$0xf0]  ;;  %v8636_v4 = vld [vmem:[%s13250_s9 + $0x478] sm:$0xf]  ;;  %v8629_v42 = vor.u32 %v9579_v7, %v8628_v54  ;;  %v8657_v54 = vor.u32 %v9550_v0, %v8654_v5  ;;  %v9485_v7 = vld [vmem:[%s13250_s9 + $0x284] sm:$0xf] }
 0xb42   : > { %9042 = vmatmul.msk.bf16.vlgmr.msra.gmra.mxu3 %vm3339_vm5, %v11619_v55  ;;  %9043 = vmatmul.msk.bf16.vlgmr.msra.gmra.mxu0 %vm3339_vm5, %v11619_v55  ;;  %v8633_v8 = vor.u32 %v9547_v22, %v8630_v62  ;;  %v9518_v22 = vld [vmem:[%s13250_s9 + $0x384] sm:$0xf0]  ;;  %v9486_v62 = vld [vmem:[%s13250_s9 + $0x28c] sm:$0xf]  ;;  %v8148_v5 = vld [vmem:[%s13250_s9 + $0x90] sm:$0xf] }
 0xb43   : > { %9044 = vmatmul.msk.bf16.vlgmr.msra.gmra.mxu1 %vm3339_vm5, %v11619_v55  ;;  %9045 = vmatmul.msk.bf16.vlgmr.msra.gmra.mxu2 %vm3339_vm5, %v11619_v55 }
 0xb44   : > { %5808 = vmatpush.bf16.msra.mxu3 %v8869_v50  ;;  %5821 = vmatpush.bf16.msra.mxu0 %v8873_v59  ;;  %v9515_v50 = vld [vmem:[%s13250_s9 + $0x36c] sm:$0xf0]  ;;  %v8637_v59 = vor.u32 %v9580_v24, %v8636_v4  ;;  %v8398_v4 = vld [vmem:[%s13250_s9 + $0x388] sm:$0xf0] }
 0xb45   : > { %5834 = vmatpush.bf16.msra.mxu1 %v8877_v9  ;;  %5847 = vmatpush.bf16.msra.mxu2 %v8881_v31  ;;  %v8374_v9 = vld [vmem:[%s13250_s9 + $0x370] sm:$0xf0]  ;;  %v8380_v31 = vld [vmem:[%s13250_s9 + $0x278] sm:$0xf]  ;;  %v8373_v10 = vor.u32 %v9515_v50, %v8372_v11  ;;  %v8401_v11 = vor.u32 %v9486_v62, %v8398_v4  ;;  %v9421_v50 = vld [vmem:[%s13250_s9 + $0x84] sm:$0xf] }
 0xb46   : > { %v8377_v32 = vor.u32 %v9483_v41, %v8374_v9  ;;  %v9454_v41 = vld [vmem:[%s13250_s9 + $0x184] sm:$0xf0]  ;;  %v9422_v9 = vld [vmem:[%s13250_s9 + $0x8c] sm:$0xf]  ;;  %v8932_v4 = vld [vmem:[%s13250_s9 + $0x6a0] sm:$0xf] }
 0xb48   : > { %5809 = vmatpush.bf16.msra.mxu3 %v8613_v60  ;;  %5822 = vmatpush.bf16.msra.mxu0 %v8617_v39  ;;  %v9451_v60 = vld [vmem:[%s13250_s9 + $0x16c] sm:$0xf0]  ;;  %v8381_v39 = vor.u32 %v9516_v51, %v8380_v31  ;;  %v8142_v31 = vld [vmem:[%s13250_s9 + $0x188] sm:$0xf0] }
 0xb49   : > { %5835 = vmatpush.bf16.msra.mxu1 %v8621_v53  ;;  %5848 = vmatpush.bf16.msra.mxu2 %v8625_v47  ;;  %v8118_v53 = vld [vmem:[%s13250_s9 + $0x170] sm:$0xf0]  ;;  %v8124_v47 = vld [vmem:[%s13250_s9 + $0x78] sm:$0xf]  ;;  %v8117_v2 = vor.u32 %v9451_v60, %v8116_v43  ;;  %v8145_v43 = vor.u32 %v9422_v9, %v8142_v31 }
 0xb4a   : > { %v8121_v40 = vor.u32 %v9419_v45, %v8118_v53  ;;  %v9615_v60 = vld [vmem:[%s13250_s9 + $0x694] sm:$0xf]  ;;  %v9648_v45 = vld [vmem:[%s13250_s9 + $0x794] sm:$0xf0]  ;;  %v9616_v53 = vld [vmem:[%s13250_s9 + $0x69c] sm:$0xf] }
 0xb4c   : > { %5810 = vmatpush.bf16.msra.mxu3 %v8357_v44  ;;  %5823 = vmatpush.bf16.msra.mxu0 %v8361_v6  ;;  %v9645_v44 = vld [vmem:[%s13250_s9 + $0x77c] sm:$0xf0]  ;;  %v8125_v6 = vor.u32 %v9452_v20, %v8124_v47  ;;  %v8926_v47 = vld [vmem:[%s13250_s9 + $0x798] sm:$0xf0] }
 0xb4d   : > { %5836 = vmatpush.bf16.msra.mxu1 %v8365_v56  ;;  %5849 = vmatpush.bf16.msra.mxu2 %v8369_v46  ;;  %v8902_v56 = vld [vmem:[%s13250_s9 + $0x780] sm:$0xf0]  ;;  %v8908_v46 = vld [vmem:[%s13250_s9 + $0x688] sm:$0xf]  ;;  %v8901_v28 = vor.u32 %v9645_v44, %v8900_v1  ;;  %v8929_v1 = vor.u32 %v9616_v53, %v8926_v47  ;;  %v9551_v44 = vld [vmem:[%s13250_s9 + $0x494] sm:$0xf] }
 0xb4e   : > { %v8905_v52 = vor.u32 %v9613_v34, %v8902_v56  ;;  %v9584_v34 = vld [vmem:[%s13250_s9 + $0x594] sm:$0xf0]  ;;  %v9552_v56 = vld [vmem:[%s13250_s9 + $0x49c] sm:$0xf]  ;;  %v8686_v53 = vld [vmem:[%s13250_s9 + $0x5a8] sm:$0xf0] }
 0xb50   : > { %5811 = vmatpush.bf16.msra.mxu3 %v8101_v48  ;;  %5824 = vmatpush.bf16.msra.mxu0 %v8105_v36  ;;  %v9581_v48 = vld [vmem:[%s13250_s9 + $0x57c] sm:$0xf0]  ;;  %v8909_v36 = vor.u32 %v9646_v25, %v8908_v46  ;;  %v8670_v46 = vld [vmem:[%s13250_s9 + $0x598] sm:$0xf0] }
 0xb51   : > { %5837 = vmatpush.bf16.msra.mxu1 %v8109_v23  ;;  %5850 = vmatpush.bf16.msra.mxu2 %v8113_v58  ;;  %v8646_v23 = vld [vmem:[%s13250_s9 + $0x580] sm:$0xf0]  ;;  %v8652_v58 = vld [vmem:[%s13250_s9 + $0x488] sm:$0xf]  ;;  %v8645_v29 = vor.u32 %v9581_v48, %v8644_v21  ;;  %v8673_v21 = vor.u32 %v9552_v56, %v8670_v46  ;;  %v9487_v48 = vld [vmem:[%s13250_s9 + $0x294] sm:$0xf] }
 0xb52   : > { %9046 = vmatmul.msk.bf16.vlgmr.msrb.gmra.mxu3 %vm3339_vm5, %v11619_v55  ;;  %9047 = vmatmul.msk.bf16.vlgmr.msrb.gmra.mxu0 %vm3339_vm5, %v11619_v55  ;;  %v8649_v12 = vor.u32 %v9549_v18, %v8646_v23  ;;  %v9520_v18 = vld [vmem:[%s13250_s9 + $0x394] sm:$0xf0]  ;;  %v9488_v23 = vld [vmem:[%s13250_s9 + $0x29c] sm:$0xf] }
 0xb53   : > { %9048 = vmatmul.msk.bf16.vlgmr.msrb.gmra.mxu1 %vm3339_vm5, %v11619_v55  ;;  %9049 = vmatmul.msk.bf16.vlgmr.msrb.gmra.mxu2 %vm3339_vm5, %v11619_v55 }
 0xb54   : > { %5860 = vmatpush.bf16.msrb.mxu3 %v8885_v30  ;;  %5873 = vmatpush.bf16.msrb.mxu0 %v8889_v61  ;;  %v9517_v30 = vld [vmem:[%s13250_s9 + $0x37c] sm:$0xf0]  ;;  %v8653_v61 = vor.u32 %v9582_v26, %v8652_v58  ;;  %v8414_v58 = vld [vmem:[%s13250_s9 + $0x398] sm:$0xf0] }
 0xb55   : > { %5886 = vmatpush.bf16.msrb.mxu1 %v8893_v3  ;;  %5899 = vmatpush.bf16.msrb.mxu2 %v8897_v19  ;;  %v8390_v3 = vld [vmem:[%s13250_s9 + $0x380] sm:$0xf0]  ;;  %v8396_v19 = vld [vmem:[%s13250_s9 + $0x288] sm:$0xf]  ;;  %v8389_v24 = vor.u32 %v9517_v30, %v8388_v33  ;;  %v8417_v33 = vor.u32 %v9488_v23, %v8414_v58  ;;  %v9423_v30 = vld [vmem:[%s13250_s9 + $0x94] sm:$0xf] }
 0xb56   : > { %v8393_v17 = vor.u32 %v9485_v7, %v8390_v3  ;;  %v9456_v7 = vld [vmem:[%s13250_s9 + $0x194] sm:$0xf0]  ;;  %v9424_v3 = vld [vmem:[%s13250_s9 + $0x9c] sm:$0xf]  ;;  %v9457_v23 = vld [vmem:[%s13250_s9 + $0x19c] sm:$0xf0] }
 0xb58   : > { %5861 = vmatpush.bf16.msrb.mxu3 %v8629_v42  ;;  %5874 = vmatpush.bf16.msrb.mxu0 %v8633_v8  ;;  %v9453_v42 = vld [vmem:[%s13250_s9 + $0x17c] sm:$0xf0]  ;;  %v8397_v8 = vor.u32 %v9518_v22, %v8396_v19  ;;  %v8158_v19 = vld [vmem:[%s13250_s9 + $0x198] sm:$0xf0] }
 0xb59   : > { %5887 = vmatpush.bf16.msrb.mxu1 %v8637_v59  ;;  %5900 = vmatpush.bf16.msrb.mxu2 %v8641_v13  ;;  %v8134_v59 = vld [vmem:[%s13250_s9 + $0x180] sm:$0xf0]  ;;  %v8140_v13 = vld [vmem:[%s13250_s9 + $0x88] sm:$0xf]  ;;  %v8133_v51 = vor.u32 %v9453_v42, %v8132_v63  ;;  %v8161_v63 = vor.u32 %v9424_v3, %v8158_v19  ;;  %v8948_v19 = vld [vmem:[%s13250_s9 + $0x6b0] sm:$0xf] }
 0xb5a   : > { %v8137_v15 = vor.u32 %v9421_v50, %v8134_v59  ;;  %v9617_v42 = vld [vmem:[%s13250_s9 + $0x6a4] sm:$0xf]  ;;  %v9650_v50 = vld [vmem:[%s13250_s9 + $0x7a4] sm:$0xf0]  ;;  %v9618_v59 = vld [vmem:[%s13250_s9 + $0x6ac] sm:$0xf] }
 0xb5c   : > { %5862 = vmatpush.bf16.msrb.mxu3 %v8373_v10  ;;  %5875 = vmatpush.bf16.msrb.mxu0 %v8377_v32  ;;  %v9647_v10 = vld [vmem:[%s13250_s9 + $0x78c] sm:$0xf0]  ;;  %v8141_v32 = vor.u32 %v9454_v41, %v8140_v13  ;;  %v8942_v13 = vld [vmem:[%s13250_s9 + $0x7a8] sm:$0xf0] }
 0xb5d   : > { %5888 = vmatpush.bf16.msrb.mxu1 %v8381_v39  ;;  %5901 = vmatpush.bf16.msrb.mxu2 %v8385_v49  ;;  %v8918_v39 = vld [vmem:[%s13250_s9 + $0x790] sm:$0xf0]  ;;  %v8924_v49 = vld [vmem:[%s13250_s9 + $0x698] sm:$0xf]  ;;  %v8917_v20 = vor.u32 %v9647_v10, %v8916_v37  ;;  %v9585_v37 = vld [vmem:[%s13250_s9 + $0x59c] sm:$0xf0] }
 0xb5e   : > { %v8921_v14 = vor.u32 %v9615_v60, %v8918_v39  ;;  %v8678_v60 = vld [vmem:[%s13250_s9 + $0x5a0] sm:$0xf0]  ;;  %v8684_v39 = vld [vmem:[%s13250_s9 + $0x4a8] sm:$0xf] }
 0xb60   : > { %5863 = vmatpush.bf16.msrb.mxu3 %v8117_v2  ;;  %5876 = vmatpush.bf16.msrb.mxu0 %v8121_v40  ;;  %v9583_v2 = vld [vmem:[%s13250_s9 + $0x58c] sm:$0xf0]  ;;  %v8925_v40 = vor.u32 %v9648_v45, %v8924_v49  ;;  %v9586_v49 = vld [vmem:[%s13250_s9 + $0x5a4] sm:$0xf0]  ;;  %v9554_v45 = vld [vmem:[%s13250_s9 + $0x4ac] sm:$0xf] }
 0xb61   : > { %5889 = vmatpush.bf16.msrb.mxu1 %v8125_v6  ;;  %5902 = vmatpush.bf16.msrb.mxu2 %v8129_v57  ;;  %v8662_v6 = vld [vmem:[%s13250_s9 + $0x590] sm:$0xf0]  ;;  %v8668_v57 = vld [vmem:[%s13250_s9 + $0x498] sm:$0xf]  ;;  %v8661_v25 = vor.u32 %v9583_v2, %v8660_v16  ;;  %v8420_v16 = vld [vmem:[%s13250_s9 + $0x2a0] sm:$0xf] }
 0xb62   : > { %9050 = vmatmul.msk.bf16.vlgmr.msra.gmra.mxu3 %vm3339_vm5, %v11619_v55  ;;  %9051 = vmatmul.msk.bf16.vlgmr.msra.gmra.mxu0 %vm3339_vm5, %v11619_v55  ;;  %v8665_v38 = vor.u32 %v9551_v44, %v8662_v6  ;;  %v9521_v2 = vld [vmem:[%s13250_s9 + $0x39c] sm:$0xf0]  ;;  %v8689_v44 = vor.u32 %v9554_v45, %v8686_v53  ;;  %v9489_v6 = vld [vmem:[%s13250_s9 + $0x2a4] sm:$0xf]  ;;  %v8702_v45 = vld [vmem:[%s13250_s9 + $0x5b8] sm:$0xf0] }
 0xb63   : > { %9052 = vmatmul.msk.bf16.vlgmr.msra.gmra.mxu1 %vm3339_vm5, %v11619_v55  ;;  %9053 = vmatmul.msk.bf16.vlgmr.msra.gmra.mxu2 %vm3339_vm5, %v11619_v55 }
 0xb64   : > { %5912 = vmatpush.bf16.msra.mxu3 %v8901_v28  ;;  %5925 = vmatpush.bf16.msra.mxu0 %v8905_v52  ;;  %v9519_v28 = vld [vmem:[%s13250_s9 + $0x38c] sm:$0xf0]  ;;  %v8669_v52 = vor.u32 %v9584_v34, %v8668_v57  ;;  %v8422_v57 = vld [vmem:[%s13250_s9 + $0x3a0] sm:$0xf0]  ;;  %v8428_v34 = vld [vmem:[%s13250_s9 + $0x2a8] sm:$0xf] }
 0xb65   : > { %5938 = vmatpush.bf16.msra.mxu1 %v8909_v36  ;;  %5951 = vmatpush.bf16.msra.mxu2 %v8913_v27  ;;  %v8406_v36 = vld [vmem:[%s13250_s9 + $0x390] sm:$0xf0]  ;;  %v8412_v27 = vld [vmem:[%s13250_s9 + $0x298] sm:$0xf]  ;;  %v8405_v26 = vor.u32 %v9519_v28, %v8404_v35  ;;  %v8430_v35 = vld [vmem:[%s13250_s9 + $0x3a8] sm:$0xf0] }
 0xb66   : > { %v8409_v0 = vor.u32 %v9487_v48, %v8406_v36  ;;  %v8421_v36 = vor.u32 %v9521_v2, %v8420_v16  ;;  %v9491_v16 = vld [vmem:[%s13250_s9 + $0x2b4] sm:$0xf] }
 0xb68   : > { %5913 = vmatpush.bf16.msra.mxu3 %v8645_v29  ;;  %5926 = vmatpush.bf16.msra.mxu0 %v8649_v12  ;;  %v9455_v29 = vld [vmem:[%s13250_s9 + $0x18c] sm:$0xf0]  ;;  %v8413_v12 = vor.u32 %v9520_v18, %v8412_v27  ;;  %v8425_v27 = vor.u32 %v9489_v6, %v8422_v57  ;;  %v8164_v18 = vld [vmem:[%s13250_s9 + $0xa0] sm:$0xf]  ;;  %v8444_v6 = vld [vmem:[%s13250_s9 + $0x2b8] sm:$0xf] }
 0xb69   : > { %5939 = vmatpush.bf16.msra.mxu1 %v8653_v61  ;;  %5952 = vmatpush.bf16.msra.mxu2 %v8657_v54  ;;  %v8150_v61 = vld [vmem:[%s13250_s9 + $0x190] sm:$0xf0]  ;;  %v8156_v54 = vld [vmem:[%s13250_s9 + $0x98] sm:$0xf]  ;;  %v8149_v22 = vor.u32 %v9455_v29, %v8148_v5  ;;  %v9425_v5 = vld [vmem:[%s13250_s9 + $0xa4] sm:$0xf] }
 0xb6a   : > { %v8153_v62 = vor.u32 %v9423_v30, %v8150_v61  ;;  %v8166_v29 = vld [vmem:[%s13250_s9 + $0x1a0] sm:$0xf0]  ;;  %v9458_v30 = vld [vmem:[%s13250_s9 + $0x1a4] sm:$0xf0]  ;;  %v9426_v61 = vld [vmem:[%s13250_s9 + $0xac] sm:$0xf] }
 0xb6b   : > { %v8169_v3 = vor.u32 %v9425_v5, %v8166_v29  ;;  %v9524_v57 = vld [vmem:[%s13250_s9 + $0x3b4] sm:$0xf0] }
 0xb6c   : > { %5914 = vmatpush.bf16.msra.mxu3 %v8389_v24  ;;  %5927 = vmatpush.bf16.msra.mxu0 %v8393_v17  ;;  %v9649_v24 = vld [vmem:[%s13250_s9 + $0x79c] sm:$0xf0]  ;;  %v8157_v17 = vor.u32 %v9456_v7, %v8156_v54  ;;  %v8174_v54 = vld [vmem:[%s13250_s9 + $0x1a8] sm:$0xf0]  ;;  %v8165_v7 = vor.u32 %v9457_v23, %v8164_v18  ;;  %v8182_v18 = vld [vmem:[%s13250_s9 + $0x1b0] sm:$0xf0] }
 0xb6d   : > { %5940 = vmatpush.bf16.msra.mxu1 %v8397_v8  ;;  %5953 = vmatpush.bf16.msra.mxu2 %v8401_v11  ;;  %v8934_v8 = vld [vmem:[%s13250_s9 + $0x7a0] sm:$0xf0]  ;;  %v8940_v11 = vld [vmem:[%s13250_s9 + $0x6a8] sm:$0xf]  ;;  %v8933_v31 = vor.u32 %v9649_v24, %v8932_v4  ;;  %v8177_v24 = vor.u32 %v9426_v61, %v8174_v54  ;;  %v8188_v23 = vld [vmem:[%s13250_s9 + $0xb8] sm:$0xf] }
 0xb6e   : > { %v8941_v10 = vor.u32 %v9650_v50, %v8940_v11  ;;  %v9652_v11 = vld [vmem:[%s13250_s9 + $0x7b4] sm:$0xf0]  ;;  %v9620_v50 = vld [vmem:[%s13250_s9 + $0x6bc] sm:$0xf] }
 0xb70   : > { %5915 = vmatpush.bf16.msra.mxu3 %v8133_v51  ;;  %5928 = vmatpush.bf16.msra.mxu0 %v8137_v15  ;;  %v8937_v51 = vor.u32 %v9617_v42, %v8934_v8  ;;  %v8676_v15 = vld [vmem:[%s13250_s9 + $0x4a0] sm:$0xf]  ;;  %v8956_v42 = vld [vmem:[%s13250_s9 + $0x6b8] sm:$0xf] }
 0xb71   : > { %5941 = vmatpush.bf16.msra.mxu1 %v8141_v32  ;;  %5954 = vmatpush.bf16.msra.mxu2 %v8145_v43  ;;  %v8945_v32 = vor.u32 %v9618_v59, %v8942_v13  ;;  %v9553_v43 = vld [vmem:[%s13250_s9 + $0x4a4] sm:$0xf]  ;;  %v8958_v59 = vld [vmem:[%s13250_s9 + $0x7b8] sm:$0xf0] }
 0xb72   : > { %9054 = vmatmul.msk.bf16.vlgmr.msrb.gmra.mxu3 %vm3339_vm5, %v11619_v55  ;;  %9055 = vmatmul.msk.bf16.vlgmr.msrb.gmra.mxu0 %vm3339_vm5, %v11619_v55 }
 0xb73   : > { %9056 = vmatmul.msk.bf16.vlgmr.msrb.gmra.mxu1 %vm3339_vm5, %v11619_v55  ;;  %9057 = vmatmul.msk.bf16.vlgmr.msrb.gmra.mxu2 %vm3339_vm5, %v11619_v55 }
 0xb74   : > { %5964 = vmatpush.bf16.msrb.mxu3 %v8917_v20  ;;  %5977 = vmatpush.bf16.msrb.mxu0 %v8921_v14  ;;  %v8677_v20 = vor.u32 %v9585_v37, %v8676_v15  ;;  %v8681_v14 = vor.u32 %v9553_v43, %v8678_v60  ;;  %v9587_v15 = vld [vmem:[%s13250_s9 + $0x5ac] sm:$0xf0]  ;;  %v9555_v37 = vld [vmem:[%s13250_s9 + $0x4b4] sm:$0xf]  ;;  %v8700_v60 = vld [vmem:[%s13250_s9 + $0x4b8] sm:$0xf] }
 0xb75   : > { %5990 = vmatpush.bf16.msrb.mxu1 %v8925_v40  ;;  %6003 = vmatpush.bf16.msrb.mxu2 %v8929_v1  ;;  %v8685_v1 = vor.u32 %v9586_v49, %v8684_v39  ;;  %v8694_v43 = vld [vmem:[%s13250_s9 + $0x5b0] sm:$0xf0]  ;;  %v9588_v39 = vld [vmem:[%s13250_s9 + $0x5b4] sm:$0xf0]  ;;  %v9556_v49 = vld [vmem:[%s13250_s9 + $0x4bc] sm:$0xf] }
 0xb78   : > { %5965 = vmatpush.bf16.msrb.mxu3 %v8661_v25  ;;  %5978 = vmatpush.bf16.msrb.mxu0 %v8665_v38  ;;  %v9522_v25 = vld [vmem:[%s13250_s9 + $0x3a4] sm:$0xf0]  ;;  %v9490_v38 = vld [vmem:[%s13250_s9 + $0x2ac] sm:$0xf] }
 0xb79   : > { %5991 = vmatpush.bf16.msrb.mxu1 %v8669_v52  ;;  %6004 = vmatpush.bf16.msrb.mxu2 %v8673_v21 }
 0xb7c   : > { %5966 = vmatpush.bf16.msrb.mxu3 %v8405_v26  ;;  %5979 = vmatpush.bf16.msrb.mxu0 %v8409_v0  ;;  %v8429_v26 = vor.u32 %v9522_v25, %v8428_v34  ;;  %v8433_v0 = vor.u32 %v9490_v38, %v8430_v35 }
 0xb7d   : > { %5992 = vmatpush.bf16.msrb.mxu1 %v8413_v12  ;;  %6005 = vmatpush.bf16.msrb.mxu2 %v8417_v33  ;;  %v8172_v12 = vld [vmem:[%s13250_s9 + $0xa8] sm:$0xf] }
 0xb7e   : > { %v8173_v4 = vor.u32 %v9458_v30, %v8172_v12  ;;  %v8964_v12 = vld [vmem:[%s13250_s9 + $0x6c0] sm:$0xf] }
 0xb7f   : > { %v5514_v41 = vpop.f32.mrf.mxu0  ;;  %v9653_v30 = vld [vmem:[%s13250_s9 + $0x7bc] sm:$0xf0] }
 0xb80   : > { %v5527_v9 = vpop.f32.mrf.mxu1  ;;  %5967 = vmatpush.bf16.msrb.mxu3 %v8149_v22  ;;  %5980 = vmatpush.bf16.msrb.mxu0 %v8153_v62  ;;  %v6329_v47 = vrot.slane %v5514_v41, 7  ;;  %v9651_v22 = vld [vmem:[%s13250_s9 + $0x7ac] sm:$0xf0] }
 0xb81   : > { %5993 = vmatpush.bf16.msrb.mxu1 %v8157_v17  ;;  %6006 = vmatpush.bf16.msrb.mxu2 %v8161_v63  ;;  %v6330_v28 = vrot.slane %v5527_v9, 6  ;;  %v9619_v17 = vld [vmem:[%s13250_s9 + $0x6b4] sm:$0xf]  ;;  %v8692_v41 = vld [vmem:[%s13250_s9 + $0x4b0] sm:$0xf] }
 0xb82   : > { %9058 = vmatmul.msk.bf16.vlgmr.msra.gmra.mxu3 %vm3339_vm5, %v11619_v55  ;;  %9059 = vmatmul.msk.bf16.vlgmr.msra.gmra.mxu0 %vm3339_vm5, %v11619_v55  ;;  %v8950_v63 = vld [vmem:[%s13250_s9 + $0x7b0] sm:$0xf0]  ;;  %v8693_v53 = vor.u32 %v9587_v15, %v8692_v41  ;;  %v9557_v41 = vld [vmem:[%s13250_s9 + $0x4c4] sm:$0xf]  ;;  %v8716_v15 = vld [vmem:[%s13250_s9 + $0x4c8] sm:$0xf] }
 0xb83   : > { %9060 = vmatmul.msk.bf16.vlgmr.msra.gmra.mxu1 %vm3339_vm5, %v11619_v55  ;;  %9061 = vmatmul.msk.bf16.vlgmr.msra.gmra.mxu2 %vm3339_vm5, %v11619_v55 }
 0xb84   : > { %6016 = vmatpush.bf16.msra.mxu3 %v8933_v31  ;;  %6029 = vmatpush.bf16.msra.mxu0 %v8937_v51  ;;  %v8949_v31 = vor.u32 %v9651_v22, %v8948_v19  ;;  %v8953_v51 = vor.u32 %v9619_v17, %v8950_v63  ;;  %v8966_v19 = vld [vmem:[%s13250_s9 + $0x7c0] sm:$0xf0]  ;;  %v8972_v22 = vld [vmem:[%s13250_s9 + $0x6c8] sm:$0xf]  ;;  %v8974_v17 = vld [vmem:[%s13250_s9 + $0x7c8] sm:$0xf0] }
 0xb85   : > { %v5501_v40 = vpop.f32.mrf.mxu3  ;;  %6042 = vmatpush.bf16.msra.mxu1 %v8941_v10  ;;  %6055 = vmatpush.bf16.msra.mxu2 %v8945_v32  ;;  %v8957_v10 = vor.u32 %v9652_v11, %v8956_v42  ;;  %v8961_v32 = vor.u32 %v9620_v50, %v8958_v59  ;;  %v8965_v50 = vor.u32 %v9653_v30, %v8964_v12  ;;  %v9623_v12 = vld [vmem:[%s13250_s9 + $0x6d4] sm:$0xf] }
 0xb86   : > { %v6332_v56 = vsel %vm996_vm0, %v5501_v40, %v6329_v47  ;;  %v5540_v46 = vpop.f32.mrf.mxu2  ;;  %v8697_v47 = vor.u32 %v9555_v37, %v8694_v43  ;;  %v8701_v40 = vor.u32 %v9588_v39, %v8700_v60  ;;  %v9590_v37 = vld [vmem:[%s13250_s9 + $0x5c4] sm:$0xf0]  ;;  %v8452_v39 = vld [vmem:[%s13250_s9 + $0x2c0] sm:$0xf]  ;;  %v8982_v30 = vld [vmem:[%s13250_s9 + $0x7d0] sm:$0xf0] }
 0xb87   : > { %v6331_v52 = vrot.slane %v5540_v46, 5  ;;  %v5516_v21 = vpop.f32.mrf.mxu0  ;;  %v8446_v46 = vld [vmem:[%s13250_s9 + $0x3b8] sm:$0xf0] }
 0xb88   : > { %v5529_v48 = vpop.f32.mrf.mxu1  ;;  %6017 = vmatpush.bf16.msra.mxu3 %v8677_v20  ;;  %6030 = vmatpush.bf16.msra.mxu0 %v8681_v14  ;;  %v8436_v20 = vld [vmem:[%s13250_s9 + $0x2b0] sm:$0xf] }
 0xb89   : > { %v6334_v58 = vsel %vm6333_vm6, %v6330_v28, %v6331_v52  ;;  %6043 = vmatpush.bf16.msra.mxu1 %v8685_v1  ;;  %6056 = vmatpush.bf16.msra.mxu2 %v8689_v44  ;;  %v9523_v14 = vld [vmem:[%s13250_s9 + $0x3ac] sm:$0xf0]  ;;  %v8705_v1 = vor.u32 %v9556_v49, %v8702_v45  ;;  %v8438_v44 = vld [vmem:[%s13250_s9 + $0x3b0] sm:$0xf0]  ;;  %v8445_v48 = vor.u32 %v9524_v57, %v8444_v6  ;;  %v9525_v49 = vld [vmem:[%s13250_s9 + $0x3bc] sm:$0xf0] }
 0xb8a   : > { %v12527_v33 = vsel %vm3253_vm3, %v6332_v56, %v6334_v58  ;;  %v9492_v56 = vld [vmem:[%s13250_s9 + $0x2bc] sm:$0xf]  ;;  %v8437_v35 = vor.u32 %v9523_v14, %v8436_v20  ;;  %v8441_v28 = vor.u32 %v9491_v16, %v8438_v44  ;;  %v8180_v52 = vld [vmem:[%s13250_s9 + $0xb0] sm:$0xf]  ;;  %v9460_v58 = vld [vmem:[%s13250_s9 + $0x1b4] sm:$0xf0] }
 0xb8b   : > { %v9459_v21 = vld [vmem:[%s13250_s9 + $0x1ac] sm:$0xf0]  ;;  %v8189_v54 = vor.u32 %v9460_v58, %v8188_v23  ;;  %v9493_v45 = vld [vmem:[%s13250_s9 + $0x2c4] sm:$0xf]  ;;  %v8460_v16 = vld [vmem:[%s13250_s9 + $0x2c8] sm:$0xf] }
 0xb8c   : > { %6018 = vmatpush.bf16.msra.mxu3 %v8421_v36  ;;  %6031 = vmatpush.bf16.msra.mxu0 %v8425_v27  ;;  %v8449_v36 = vor.u32 %v9492_v56, %v8446_v46  ;;  %v9427_v27 = vld [vmem:[%s13250_s9 + $0xb4] sm:$0xf]  ;;  %v8181_v5 = vor.u32 %v9459_v21, %v8180_v52  ;;  %v8454_v14 = vld [vmem:[%s13250_s9 + $0x3c0] sm:$0xf0]  ;;  %v8462_v44 = vld [vmem:[%s13250_s9 + $0x3c8] sm:$0xf0] }
 0xb8d   : > { %v5503_v62 = vpop.f32.mrf.mxu3  ;;  %6044 = vmatpush.bf16.msra.mxu1 %v8429_v26  ;;  %6057 = vmatpush.bf16.msra.mxu2 %v8433_v0  ;;  %v9428_v26 = vld [vmem:[%s13250_s9 + $0xbc] sm:$0xf]  ;;  %v8185_v29 = vor.u32 %v9427_v27, %v8182_v18  ;;  %v8457_v56 = vor.u32 %v9493_v45, %v8454_v14  ;;  %v8196_v46 = vld [vmem:[%s13250_s9 + $0xc0] sm:$0xf]  ;;  %v8198_v52 = vld [vmem:[%s13250_s9 + $0x1c0] sm:$0xf0] }
 0xb8e   : > { %v5542_v8 = vpop.f32.mrf.mxu2  ;;  %v8190_v0 = vld [vmem:[%s13250_s9 + $0x1b8] sm:$0xf0]  ;;  %v8204_v21 = vld [vmem:[%s13250_s9 + $0xc8] sm:$0xf]  ;;  %v8206_v27 = vld [vmem:[%s13250_s9 + $0x1c8] sm:$0xf0] }
 0xb8f   : > { %v5566_v13 = vpop.f32.mrf.mxu0  ;;  %v8708_v8 = vld [vmem:[%s13250_s9 + $0x4c0] sm:$0xf]  ;;  %v8980_v58 = vld [vmem:[%s13250_s9 + $0x6d0] sm:$0xf]  ;;  %v8470_v45 = vld [vmem:[%s13250_s9 + $0x3d0] sm:$0xf0] }
 0xb90   : > { %6343 = vst [vmem:[#allocation1 + $0x9] sm:$0xff] %v5566_v13  ;;  %v5579_v9 = vpop.f32.mrf.mxu1  ;;  %6019 = vmatpush.bf16.msra.mxu3 %v8165_v7  ;;  %6032 = vmatpush.bf16.msra.mxu0 %v8169_v3  ;;  %v8193_v7 = vor.u32 %v9428_v26, %v8190_v0  ;;  %v9621_v3 = vld [vmem:[%s13250_s9 + $0x6c4] sm:$0xf]  ;;  %v9589_v13 = vld [vmem:[%s13250_s9 + $0x5bc] sm:$0xf0] }
 0xb91   : > { %6344 = vst [vmem:[#allocation1 + $0x12] sm:$0xff] %v5579_v9  ;;  %6045 = vmatpush.bf16.msra.mxu1 %v8173_v4  ;;  %6058 = vmatpush.bf16.msra.mxu2 %v8177_v24  ;;  %v9654_v4 = vld [vmem:[%s13250_s9 + $0x7c4] sm:$0xf0]  ;;  %v9622_v24 = vld [vmem:[%s13250_s9 + $0x6cc] sm:$0xf]  ;;  %v8969_v59 = vor.u32 %v9621_v3, %v8966_v19  ;;  %v8709_v43 = vor.u32 %v9589_v13, %v8708_v8 }
 0xb92   : > { %9062 = vmatmul.msk.bf16.vlgmr.msrb.gmra.mxu3 %vm3339_vm5, %v11619_v55  ;;  %9063 = vmatmul.msk.bf16.vlgmr.msrb.gmra.mxu0 %vm3339_vm5, %v11619_v55  ;;  %v8973_v9 = vor.u32 %v9654_v4, %v8972_v22  ;;  %v9655_v26 = vld [vmem:[%s13250_s9 + $0x7cc] sm:$0xf0]  ;;  %v9624_v3 = vld [vmem:[%s13250_s9 + $0x6dc] sm:$0xf]  ;;  %v8726_v13 = vld [vmem:[%s13250_s9 + $0x5d0] sm:$0xf0] }
 0xb93   : > { %9064 = vmatmul.msk.bf16.vlgmr.msrb.gmra.mxu1 %vm3339_vm5, %v11619_v55  ;;  %9065 = vmatmul.msk.bf16.vlgmr.msrb.gmra.mxu2 %vm3339_vm5, %v11619_v55  ;;  %v8990_v19 = vld [vmem:[%s13250_s9 + $0x7d8] sm:$0xf0]  ;;  %v8724_v4 = vld [vmem:[%s13250_s9 + $0x4d0] sm:$0xf] }
 0xb94   : > { %6068 = vmatpush.bf16.msrb.mxu3 %v8949_v31  ;;  %6081 = vmatpush.bf16.msrb.mxu0 %v8953_v51  ;;  %v8977_v31 = vor.u32 %v9622_v24, %v8974_v17  ;;  %v8710_v51 = vld [vmem:[%s13250_s9 + $0x5c0] sm:$0xf0]  ;;  %v8981_v17 = vor.u32 %v9655_v26, %v8980_v58  ;;  %v9591_v8 = vld [vmem:[%s13250_s9 + $0x5cc] sm:$0xf0]  ;;  %v9496_v14 = vld [vmem:[%s13250_s9 + $0x2dc] sm:$0xf] }
 0xb95   : > { %v5553_v2 = vpop.f32.mrf.mxu3  ;;  %6094 = vmatpush.bf16.msrb.mxu1 %v8957_v10  ;;  %6107 = vmatpush.bf16.msrb.mxu2 %v8961_v32  ;;  %v9558_v10 = vld [vmem:[%s13250_s9 + $0x4cc] sm:$0xf]  ;;  %v8713_v60 = vor.u32 %v9557_v41, %v8710_v51  ;;  %v8732_v41 = vld [vmem:[%s13250_s9 + $0x4d8] sm:$0xf]  ;;  %v8734_v51 = vld [vmem:[%s13250_s9 + $0x5d8] sm:$0xf0] }
 0xb96   : > { %6342 = vst [vmem:[#allocation1] sm:$0xff] %v5553_v2  ;;  %v5592_v34 = vpop.f32.mrf.mxu2  ;;  %v8718_v32 = vld [vmem:[%s13250_s9 + $0x5c8] sm:$0xf0]  ;;  %v9526_v2 = vld [vmem:[%s13250_s9 + $0x3c4] sm:$0xf0] }
 0xb97   : > { %6345 = vst [vmem:[#allocation1 + $0x1b] sm:$0xff] %v5592_v34  ;;  %v5568_v25 = vpop.f32.mrf.mxu0  ;;  %v8721_v20 = vor.u32 %v9558_v10, %v8718_v32  ;;  %v8453_v34 = vor.u32 %v9525_v49, %v8452_v39  ;;  %v8468_v10 = vld [vmem:[%s13250_s9 + $0x2d0] sm:$0xf]  ;;  %v9625_v26 = vld [vmem:[%s13250_s9 + $0x6e4] sm:$0xf] }
 0xb98   : > { %v5581_v38 = vpop.f32.mrf.mxu1  ;;  %6069 = vmatpush.bf16.msrb.mxu3 %v8693_v53  ;;  %6082 = vmatpush.bf16.msrb.mxu0 %v8697_v47  ;;  %v8717_v47 = vor.u32 %v9590_v37, %v8716_v15  ;;  %v9461_v25 = vld [vmem:[%s13250_s9 + $0x1bc] sm:$0xf0]  ;;  %v8725_v15 = vor.u32 %v9591_v8, %v8724_v4  ;;  %v9527_v32 = vld [vmem:[%s13250_s9 + $0x3cc] sm:$0xf0] }
 0xb99   : > { %6095 = vmatpush.bf16.msrb.mxu1 %v8701_v40  ;;  %6108 = vmatpush.bf16.msrb.mxu2 %v8705_v1  ;;  %v9494_v1 = vld [vmem:[%s13250_s9 + $0x2cc] sm:$0xf]  ;;  %v8461_v38 = vor.u32 %v9526_v2, %v8460_v16  ;;  %v8197_v18 = vor.u32 %v9461_v25, %v8196_v46  ;;  %v8478_v16 = vld [vmem:[%s13250_s9 + $0x3d8] sm:$0xf0]  ;;  %v9431_v46 = vld [vmem:[%s13250_s9 + $0xd4] sm:$0xf] }
 0xb9a   : > { %v8214_v25 = vld [vmem:[%s13250_s9 + $0x1d0] sm:$0xf0] }
 0xb9c   : > { %6070 = vmatpush.bf16.msrb.mxu3 %v8437_v35  ;;  %6083 = vmatpush.bf16.msrb.mxu0 %v8441_v28  ;;  %v8465_v35 = vor.u32 %v9494_v1, %v8462_v44  ;;  %v9429_v28 = vld [vmem:[%s13250_s9 + $0xc4] sm:$0xf]  ;;  %v8469_v1 = vor.u32 %v9527_v32, %v8468_v10 }
 0xb9d   : > { %v5555_v61 = vpop.f32.mrf.mxu3  ;;  %6096 = vmatpush.bf16.msrb.mxu1 %v8445_v48  ;;  %6109 = vmatpush.bf16.msrb.mxu2 %v8449_v36  ;;  %v9462_v48 = vld [vmem:[%s13250_s9 + $0x1c4] sm:$0xf0]  ;;  %v9430_v36 = vld [vmem:[%s13250_s9 + $0xcc] sm:$0xf]  ;;  %v8201_v23 = vor.u32 %v9429_v28, %v8198_v52  ;;  %v9432_v28 = vld [vmem:[%s13250_s9 + $0xdc] sm:$0xf] }
 0xb9e   : > { %v5594_v62 = vpop.f32.mrf.mxu2  ;;  %v12666_v63 = vld [vmem:[#allocation1 + $0x1] ss:$9 sm:$0xff]  ;;  %v8988_v61 = vld [vmem:[%s13250_s9 + $0x6d8] sm:$0xf] }
 0xb9f   : > { %v5618_v42 = vpop.f32.mrf.mxu0  ;;  %v8222_v52 = vld [vmem:[%s13250_s9 + $0x1d8] sm:$0xf0] }
 0xba0   : > { %6355 = vst [vmem:[#allocation1 + $0x9] sm:$0xff] %v5618_v42  ;;  %v5631_v11 = vpop.f32.mrf.mxu1  ;;  %6071 = vmatpush.bf16.msrb.mxu3 %v8181_v5  ;;  %6084 = vmatpush.bf16.msrb.mxu0 %v8185_v29  ;;  %v8205_v5 = vor.u32 %v9462_v48, %v8204_v21  ;;  %v8209_v29 = vor.u32 %v9430_v36, %v8206_v27  ;;  %v8996_v36 = vld [vmem:[%s13250_s9 + $0x6e0] sm:$0xf] }
 0xba1   : > { %6356 = vst [vmem:[#allocation1 + $0x12] sm:$0xff] %v5631_v11  ;;  %6097 = vmatpush.bf16.msrb.mxu1 %v8189_v54  ;;  %6110 = vmatpush.bf16.msrb.mxu2 %v8193_v7  ;;  %v9656_v7 = vld [vmem:[%s13250_s9 + $0x7d4] sm:$0xf0]  ;;  %v8985_v42 = vor.u32 %v9623_v12, %v8982_v30  ;;  %v9559_v11 = vld [vmem:[%s13250_s9 + $0x4d4] sm:$0xf]  ;;  %v8217_v48 = vor.u32 %v9431_v46, %v8214_v25 }
 0xba2   : > { %9066 = vmatmul.msk.bf16.vlgmr.msra.gmra.mxu3 %vm3339_vm5, %v11619_v55  ;;  %9067 = vmatmul.msk.bf16.vlgmr.msra.gmra.mxu0 %vm3339_vm5, %v11619_v55  ;;  %v8729_v37 = vor.u32 %v9559_v11, %v8726_v13  ;;  %v9657_v27 = vld [vmem:[%s13250_s9 + $0x7dc] sm:$0xf0]  ;;  %v8225_v58 = vor.u32 %v9432_v28, %v8222_v52  ;;  %v9658_v12 = vld [vmem:[%s13250_s9 + $0x7e4] sm:$0xf0]  ;;  %v9626_v30 = vld [vmem:[%s13250_s9 + $0x6ec] sm:$0xf] }
 0xba3   : > { %9068 = vmatmul.msk.bf16.vlgmr.msra.gmra.mxu1 %vm3339_vm5, %v11619_v55  ;;  %9069 = vmatmul.msk.bf16.vlgmr.msra.gmra.mxu2 %vm3339_vm5, %v11619_v55  ;;  %v8742_v11 = vld [vmem:[%s13250_s9 + $0x5e0] sm:$0xf0]  ;;  %v9562_v13 = vld [vmem:[%s13250_s9 + $0x4ec] sm:$0xf]  ;;  %v9466_v46 = vld [vmem:[%s13250_s9 + $0x1e4] sm:$0xf0] }
 0xba4   : > { %6120 = vmatpush.bf16.msra.mxu3 %v8965_v50  ;;  %6133 = vmatpush.bf16.msra.mxu0 %v8969_v59  ;;  %v8989_v50 = vor.u32 %v9656_v7, %v8988_v61  ;;  %v8993_v59 = vor.u32 %v9624_v3, %v8990_v19  ;;  %v9006_v61 = vld [vmem:[%s13250_s9 + $0x7e8] sm:$0xf0]  ;;  %v8740_v3 = vld [vmem:[%s13250_s9 + $0x4e0] sm:$0xf]  ;;  %v9012_v52 = vld [vmem:[%s13250_s9 + $0x6f0] sm:$0xf] }
 0xba5   : > { %v5605_v53 = vpop.f32.mrf.mxu3  ;;  %6146 = vmatpush.bf16.msra.mxu1 %v8973_v9  ;;  %6159 = vmatpush.bf16.msra.mxu2 %v8977_v31  ;;  %v9592_v9 = vld [vmem:[%s13250_s9 + $0x5d4] sm:$0xf0]  ;;  %v9560_v31 = vld [vmem:[%s13250_s9 + $0x4dc] sm:$0xf]  ;;  %v9009_v8 = vor.u32 %v9626_v30, %v9006_v61  ;;  %v9434_v25 = vld [vmem:[%s13250_s9 + $0xec] sm:$0xf] }
 0xba6   : > { %6354 = vst [vmem:[#allocation1] sm:$0xff] %v5605_v53  ;;  %v5644_v40 = vpop.f32.mrf.mxu2  ;;  %v8733_v39 = vor.u32 %v9592_v9, %v8732_v41  ;;  %v8737_v49 = vor.u32 %v9560_v31, %v8734_v51  ;;  %v8476_v53 = vld [vmem:[%s13250_s9 + $0x2d8] sm:$0xf]  ;;  %v8750_v41 = vld [vmem:[%s13250_s9 + $0x5e8] sm:$0xf0] }
 0xba7   : > { %6357 = vst [vmem:[#allocation1 + $0x1b] sm:$0xff] %v5644_v40  ;;  %v5620_v6 = vpop.f32.mrf.mxu0  ;;  %v8484_v51 = vld [vmem:[%s13250_s9 + $0x2e0] sm:$0xf]  ;;  %v8756_v61 = vld [vmem:[%s13250_s9 + $0x4f0] sm:$0xf] }
 0xba8   : > { %v5633_v57 = vpop.f32.mrf.mxu1  ;;  %6121 = vmatpush.bf16.msra.mxu3 %v8709_v43  ;;  %6134 = vmatpush.bf16.msra.mxu0 %v8713_v60  ;;  %v9495_v43 = vld [vmem:[%s13250_s9 + $0x2d4] sm:$0xf]  ;;  %v8212_v6 = vld [vmem:[%s13250_s9 + $0xd0] sm:$0xf] }
 0xba9   : > { %6147 = vmatpush.bf16.msra.mxu1 %v8717_v47  ;;  %6160 = vmatpush.bf16.msra.mxu2 %v8721_v20  ;;  %v9528_v47 = vld [vmem:[%s13250_s9 + $0x3d4] sm:$0xf0]  ;;  %v8473_v44 = vor.u32 %v9495_v43, %v8470_v45  ;;  %v9463_v57 = vld [vmem:[%s13250_s9 + $0x1cc] sm:$0xf0]  ;;  %v8753_v43 = vor.u32 %v9562_v13, %v8750_v41 }
 0xbaa   : > { %v8213_v21 = vor.u32 %v9463_v57, %v8212_v6  ;;  %v9433_v57 = vld [vmem:[%s13250_s9 + $0xe4] sm:$0xf] }
 0xbac   : > { %6122 = vmatpush.bf16.msra.mxu3 %v8453_v34  ;;  %6135 = vmatpush.bf16.msra.mxu0 %v8457_v56  ;;  %v8477_v34 = vor.u32 %v9528_v47, %v8476_v53  ;;  %v8481_v56 = vor.u32 %v9496_v14, %v8478_v16  ;;  %v9498_v53 = vld [vmem:[%s13250_s9 + $0x2ec] sm:$0xf] }
 0xbad   : > { %v5607_v0 = vpop.f32.mrf.mxu3  ;;  %6148 = vmatpush.bf16.msra.mxu1 %v8461_v38  ;;  %6161 = vmatpush.bf16.msra.mxu2 %v8465_v35  ;;  %v8220_v38 = vld [vmem:[%s13250_s9 + $0xd8] sm:$0xf]  ;;  %v8494_v47 = vld [vmem:[%s13250_s9 + $0x3e8] sm:$0xf0] }
 0xbae   : > { %v5646_v54 = vpop.f32.mrf.mxu2  ;;  %v12772_v22 = vld [vmem:[#allocation1 + $0x2] ss:$9 sm:$0xff]  ;;  %v8497_v6 = vor.u32 %v9498_v53, %v8494_v47 }
 0xbaf   : > { %v5670_v62 = vpop.f32.mrf.mxu0  ;;  %v9464_v35 = vld [vmem:[%s13250_s9 + $0x1d4] sm:$0xf0]  ;;  %v8998_v0 = vld [vmem:[%s13250_s9 + $0x7e0] sm:$0xf0] }
 0xbb0   : > { %6367 = vst [vmem:[#allocation1 + $0x9] sm:$0xff] %v5670_v62  ;;  %v5683_v24 = vpop.f32.mrf.mxu1  ;;  %6123 = vmatpush.bf16.msra.mxu3 %v8197_v18  ;;  %6136 = vmatpush.bf16.msra.mxu0 %v8201_v23  ;;  %v8221_v23 = vor.u32 %v9464_v35, %v8220_v38  ;;  %v8997_v62 = vor.u32 %v9657_v27, %v8996_v36  ;;  %v8238_v38 = vld [vmem:[%s13250_s9 + $0x1e8] sm:$0xf0] }
 0xbb1   : > { %6368 = vst [vmem:[#allocation1 + $0x12] sm:$0xff] %v5683_v24  ;;  %6149 = vmatpush.bf16.msra.mxu1 %v8205_v5  ;;  %6162 = vmatpush.bf16.msra.mxu2 %v8209_v29  ;;  %v9004_v5 = vld [vmem:[%s13250_s9 + $0x6e8] sm:$0xf]  ;;  %v9001_v4 = vor.u32 %v9625_v26, %v8998_v0  ;;  %v9593_v24 = vld [vmem:[%s13250_s9 + $0x5dc] sm:$0xf0]  ;;  %v8241_v27 = vor.u32 %v9434_v25, %v8238_v38 }
 0xbb2   : > { %9070 = vmatmul.msk.bf16.vlgmr.msrb.gmra.mxu3 %vm3339_vm5, %v11619_v55  ;;  %9071 = vmatmul.msk.bf16.vlgmr.msrb.gmra.mxu0 %vm3339_vm5, %v11619_v55  ;;  %v8741_v9 = vor.u32 %v9593_v24, %v8740_v3  ;;  %v9660_v0 = vld [vmem:[%s13250_s9 + $0x7f4] sm:$0xf0] }
 0xbb3   : > { %9072 = vmatmul.msk.bf16.vlgmr.msrb.gmra.mxu1 %vm3339_vm5, %v11619_v55  ;;  %9073 = vmatmul.msk.bf16.vlgmr.msrb.gmra.mxu2 %vm3339_vm5, %v11619_v55 }
 0xbb4   : > { %6172 = vmatpush.bf16.msrb.mxu3 %v8981_v17  ;;  %6185 = vmatpush.bf16.msrb.mxu0 %v8985_v42  ;;  %v9561_v17 = vld [vmem:[%s13250_s9 + $0x4e4] sm:$0xf]  ;;  %v9005_v42 = vor.u32 %v9658_v12, %v9004_v5  ;;  %v9628_v5 = vld [vmem:[%s13250_s9 + $0x6fc] sm:$0xf] }
 0xbb5   : > { %v5657_v60 = vpop.f32.mrf.mxu3  ;;  %6198 = vmatpush.bf16.msrb.mxu1 %v8989_v50  ;;  %6211 = vmatpush.bf16.msrb.mxu2 %v8993_v59  ;;  %v8748_v50 = vld [vmem:[%s13250_s9 + $0x4e8] sm:$0xf]  ;;  %v8745_v31 = vor.u32 %v9561_v17, %v8742_v11  ;;  %v9596_v11 = vld [vmem:[%s13250_s9 + $0x5f4] sm:$0xf0] }
 0xbb6   : > { %6366 = vst [vmem:[#allocation1] sm:$0xff] %v5657_v60  ;;  %v5696_v20 = vpop.f32.mrf.mxu2  ;;  %v9594_v59 = vld [vmem:[%s13250_s9 + $0x5e4] sm:$0xf0]  ;;  %v8486_v60 = vld [vmem:[%s13250_s9 + $0x3e0] sm:$0xf0] }
 0xbb7   : > { %6369 = vst [vmem:[#allocation1 + $0x1b] sm:$0xff] %v5696_v20  ;;  %v5672_v2 = vpop.f32.mrf.mxu0  ;;  %v8749_v32 = vor.u32 %v9594_v59, %v8748_v50  ;;  %v9564_v50 = vld [vmem:[%s13250_s9 + $0x4fc] sm:$0xf] }
 0xbb8   : > { %v5685_v40 = vpop.f32.mrf.mxu1  ;;  %6173 = vmatpush.bf16.msrb.mxu3 %v8725_v15  ;;  %6186 = vmatpush.bf16.msrb.mxu0 %v8729_v37  ;;  %v9529_v15 = vld [vmem:[%s13250_s9 + $0x3dc] sm:$0xf0]  ;;  %v9497_v37 = vld [vmem:[%s13250_s9 + $0x2e4] sm:$0xf]  ;;  %v8766_v59 = vld [vmem:[%s13250_s9 + $0x5f8] sm:$0xf0] }
 0xbb9   : > { %6199 = vmatpush.bf16.msrb.mxu1 %v8733_v39  ;;  %6212 = vmatpush.bf16.msrb.mxu2 %v8737_v49  ;;  %v8492_v39 = vld [vmem:[%s13250_s9 + $0x2e8] sm:$0xf]  ;;  %v8485_v16 = vor.u32 %v9529_v15, %v8484_v51  ;;  %v8489_v2 = vor.u32 %v9497_v37, %v8486_v60  ;;  %v8228_v40 = vld [vmem:[%s13250_s9 + $0xe0] sm:$0xf]  ;;  %v9499_v51 = vld [vmem:[%s13250_s9 + $0x2f4] sm:$0xf] }
 0xbba   : > { %v9530_v49 = vld [vmem:[%s13250_s9 + $0x3e4] sm:$0xf0]  ;;  %v9532_v60 = vld [vmem:[%s13250_s9 + $0x3f4] sm:$0xf0] }
 0xbbc   : > { %6174 = vmatpush.bf16.msrb.mxu3 %v8469_v1  ;;  %6187 = vmatpush.bf16.msrb.mxu0 %v8473_v44  ;;  %v9465_v1 = vld [vmem:[%s13250_s9 + $0x1dc] sm:$0xf0]  ;;  %v8493_v44 = vor.u32 %v9530_v49, %v8492_v39  ;;  %v9500_v49 = vld [vmem:[%s13250_s9 + $0x2fc] sm:$0xf] }
 0xbbd   : > { %v5659_v18 = vpop.f32.mrf.mxu3  ;;  %6200 = vmatpush.bf16.msrb.mxu1 %v8477_v34  ;;  %6213 = vmatpush.bf16.msrb.mxu2 %v8481_v56  ;;  %v8230_v34 = vld [vmem:[%s13250_s9 + $0x1e0] sm:$0xf0]  ;;  %v8236_v56 = vld [vmem:[%s13250_s9 + $0xe8] sm:$0xf]  ;;  %v8229_v35 = vor.u32 %v9465_v1, %v8228_v40 }
 0xbbe   : > { %v5698_v29 = vpop.f32.mrf.mxu2  ;;  %v12878_v54 = vld [vmem:[#allocation1 + $0x3] ss:$9 sm:$0xff]  ;;  %v8233_v28 = vor.u32 %v9433_v57, %v8230_v34  ;;  %v8237_v36 = vor.u32 %v9466_v46, %v8236_v56 }
 0xbbf   : > { %v5722_v7 = vpop.f32.mrf.mxu0  ;;  %v9627_v18 = vld [vmem:[%s13250_s9 + $0x6f4] sm:$0xf]  ;;  %v9022_v29 = vld [vmem:[%s13250_s9 + $0x7f8] sm:$0xf0]  ;;  %v8252_v57 = vld [vmem:[%s13250_s9 + $0xf8] sm:$0xf] }
 0xbc0   : > { %6379 = vst [vmem:[#allocation1 + $0x9] sm:$0xff] %v5722_v7  ;;  %v5735_v19 = vpop.f32.mrf.mxu1  ;;  %6175 = vmatpush.bf16.msrb.mxu3 %v8213_v21  ;;  %6188 = vmatpush.bf16.msrb.mxu0 %v8217_v48  ;;  %v9659_v21 = vld [vmem:[%s13250_s9 + $0x7ec] sm:$0xf0]  ;;  %v9025_v17 = vor.u32 %v9628_v5, %v9022_v29  ;;  %v9468_v34 = vld [vmem:[%s13250_s9 + $0x1f4] sm:$0xf0] }
 0xbc1   : > { %6380 = vst [vmem:[#allocation1 + $0x12] sm:$0xff] %v5735_v19  ;;  %6201 = vmatpush.bf16.msrb.mxu1 %v8221_v23  ;;  %6214 = vmatpush.bf16.msrb.mxu2 %v8225_v58  ;;  %v9014_v23 = vld [vmem:[%s13250_s9 + $0x7f0] sm:$0xf0]  ;;  %v9020_v58 = vld [vmem:[%s13250_s9 + $0x6f8] sm:$0xf]  ;;  %v9013_v3 = vor.u32 %v9659_v21, %v9012_v52 }
 0xbc2   : > { %9074 = vmatmul.msk.bf16.vlgmr.msra.gmra.mxu3 %vm3339_vm5, %v11619_v55  ;;  %9075 = vmatmul.msk.bf16.vlgmr.msra.gmra.mxu0 %vm3339_vm5, %v11619_v55  ;;  %v9017_v19 = vor.u32 %v9627_v18, %v9014_v23  ;;  %v9021_v24 = vor.u32 %v9660_v0, %v9020_v58  ;;  %v9436_v56 = vld [vmem:[%s13250_s9 + $0xfc] sm:$0xf] }
 0xbc3   : > { %9076 = vmatmul.msk.bf16.vlgmr.msra.gmra.mxu1 %vm3339_vm5, %v11619_v55  ;;  %9077 = vmatmul.msk.bf16.vlgmr.msra.gmra.mxu2 %vm3339_vm5, %v11619_v55  ;;  %v8254_v46 = vld [vmem:[%s13250_s9 + $0x1f8] sm:$0xf0] }
 0xbc4   : > { %6224 = vmatpush.bf16.msra.mxu3 %v8997_v62  ;;  %6237 = vmatpush.bf16.msra.mxu0 %v9001_v4  ;;  %v9595_v62 = vld [vmem:[%s13250_s9 + $0x5ec] sm:$0xf0]  ;;  %v9563_v4 = vld [vmem:[%s13250_s9 + $0x4f4] sm:$0xf]  ;;  %v8257_v52 = vor.u32 %v9436_v56, %v8254_v46 }
 0xbc5   : > { %v5709_v10 = vpop.f32.mrf.mxu3  ;;  %6250 = vmatpush.bf16.msra.mxu1 %v9005_v42  ;;  %6263 = vmatpush.bf16.msra.mxu2 %v9009_v8  ;;  %v8758_v42 = vld [vmem:[%s13250_s9 + $0x5f0] sm:$0xf0]  ;;  %v8764_v8 = vld [vmem:[%s13250_s9 + $0x4f8] sm:$0xf]  ;;  %v8757_v13 = vor.u32 %v9595_v62, %v8756_v61 }
 0xbc6   : > { %6378 = vst [vmem:[#allocation1] sm:$0xff] %v5709_v10  ;;  %v5748_v45 = vpop.f32.mrf.mxu2  ;;  %v8761_v41 = vor.u32 %v9563_v4, %v8758_v42  ;;  %v8765_v37 = vor.u32 %v9596_v11, %v8764_v8  ;;  %v8769_v10 = vor.u32 %v9564_v50, %v8766_v59  ;;  %v6324_v42 = vld [vmem:[%s13251_s10] sm:$0xf] }
 0xbc7   : > { %6381 = vst [vmem:[#allocation1 + $0x1b] sm:$0xff] %v5748_v45  ;;  %v5724_v20 = vpop.f32.mrf.mxu0  ;;  %v8510_v45 = vld [vmem:[%s13250_s9 + $0x3f8] sm:$0xf0]  ;;  %v6337_v11 = vadd.f32 %v12527_v33, %v6324_v42 }
 0xbc8   : > { %v5737_v14 = vpop.f32.mrf.mxu1  ;;  %6225 = vmatpush.bf16.msra.mxu3 %v8741_v9  ;;  %6238 = vmatpush.bf16.msra.mxu0 %v8745_v31  ;;  %v8500_v9 = vld [vmem:[%s13250_s9 + $0x2f0] sm:$0xf]  ;;  %v8513_v1 = vor.u32 %v9500_v49, %v8510_v45 }
 0xbc9   : > { %6251 = vmatpush.bf16.msra.mxu1 %v8749_v32  ;;  %6264 = vmatpush.bf16.msra.mxu2 %v8753_v43  ;;  %v9531_v31 = vld [vmem:[%s13250_s9 + $0x3ec] sm:$0xf0]  ;;  %v8502_v32 = vld [vmem:[%s13250_s9 + $0x3f0] sm:$0xf0]  ;;  %v8508_v43 = vld [vmem:[%s13250_s9 + $0x2f8] sm:$0xf]  ;;  %v6349_v50 = vadd.f32 %v12666_v63, %v6337_v11 }
 0xbca   : > { %v8501_v20 = vor.u32 %v9531_v31, %v8500_v9  ;;  %v8505_v14 = vor.u32 %v9499_v51, %v8502_v32  ;;  %v8509_v40 = vor.u32 %v9532_v60, %v8508_v43  ;;  %v9675_v11 = vld [vmem:[%s13252_s11 + $0x70] sm:$0xff] }
 0xbcc   : > { %6226 = vmatpush.bf16.msra.mxu3 %v8485_v16  ;;  %6239 = vmatpush.bf16.msra.mxu0 %v8489_v2  ;;  %v8244_v16 = vld [vmem:[%s13250_s9 + $0xf0] sm:$0xf] }
 0xbcd   : > { %v5711_v48 = vpop.f32.mrf.mxu3  ;;  %6252 = vmatpush.bf16.msra.mxu1 %v8493_v44  ;;  %6265 = vmatpush.bf16.msra.mxu2 %v8497_v6  ;;  %v9467_v2 = vld [vmem:[%s13250_s9 + $0x1ec] sm:$0xf0]  ;;  %v9435_v44 = vld [vmem:[%s13250_s9 + $0xf4] sm:$0xf] }
 0xbce   : > { %v5750_v26 = vpop.f32.mrf.mxu2  ;;  %v12984_v12 = vld [vmem:[#allocation1 + $0x4] ss:$9 sm:$0xff]  ;;  %v8245_v25 = vor.u32 %v9467_v2, %v8244_v16 }
 0xbcf   : > { %v5774_v30 = vpop.f32.mrf.mxu0  ;;  %v8246_v6 = vld [vmem:[%s13250_s9 + $0x1f0] sm:$0xf0] }
 0xbd0   : > { %6391 = vst [vmem:[#allocation1 + $0x9] sm:$0xff] %v5774_v30  ;;  %v5787_v7 = vpop.f32.mrf.mxu1  ;;  %6227 = vmatpush.bf16.msra.mxu3 %v8229_v35  ;;  %6240 = vmatpush.bf16.msra.mxu0 %v8233_v28  ;;  %v8249_v38 = vor.u32 %v9435_v44, %v8246_v6  ;;  %v8253_v28 = vor.u32 %v9468_v34, %v8252_v57 }
 0xbd1   : > { %6392 = vst [vmem:[#allocation1 + $0x12] sm:$0xff] %v5787_v7  ;;  %6253 = vmatpush.bf16.msra.mxu1 %v8237_v36  ;;  %6266 = vmatpush.bf16.msra.mxu2 %v8241_v27 }
 0xbd2   : > { %9078 = vmatmul.msk.bf16.vlgmr.msrb.gmra.mxu3 %vm3339_vm5, %v11619_v55  ;;  %9079 = vmatmul.msk.bf16.vlgmr.msrb.gmra.mxu0 %vm3339_vm5, %v11619_v55 }
 0xbd3   : > { %9080 = vmatmul.msk.bf16.vlgmr.msrb.gmra.mxu1 %vm3339_vm5, %v11619_v55  ;;  %9081 = vmatmul.msk.bf16.vlgmr.msrb.gmra.mxu2 %vm3339_vm5, %v11619_v55 }
 0xbd4   : > { %6276 = vmatpush.bf16.msrb.mxu3 %v9013_v3  ;;  %6289 = vmatpush.bf16.msrb.mxu0 %v9017_v19 }
 0xbd5   : > { %v5761_v15 = vpop.f32.mrf.mxu3  ;;  %6302 = vmatpush.bf16.msrb.mxu1 %v9021_v24  ;;  %6315 = vmatpush.bf16.msrb.mxu2 %v9025_v17 }
 0xbd6   : > { %6390 = vst [vmem:[#allocation1] sm:$0xff] %v5761_v15  ;;  %v5800_v39 = vpop.f32.mrf.mxu2 }
 0xbd7   : > { %6393 = vst [vmem:[#allocation1 + $0x1b] sm:$0xff] %v5800_v39  ;;  %v5776_v53 = vpop.f32.mrf.mxu0 }
 0xbd8   : > { %v5789_v47 = vpop.f32.mrf.mxu1  ;;  %6277 = vmatpush.bf16.msrb.mxu3 %v8757_v13  ;;  %6290 = vmatpush.bf16.msrb.mxu0 %v8761_v41  ;;  %v6361_v13 = vadd.f32 %v12772_v22, %v6349_v50  ;;  %v9683_v50 = vld [vmem:[%s13252_s11 + $0xb0] sm:$0xff] }
 0xbd9   : > { %6303 = vmatpush.bf16.msrb.mxu1 %v8765_v37  ;;  %6316 = vmatpush.bf16.msrb.mxu2 %v8769_v10 }
 0xbda   : > { %v6373_v31 = vadd.f32 %v12878_v54, %v6361_v13  ;;  %v9674_v13 = vld [vmem:[%s13252_s11 + $0x68] sm:$0xff] }
 0xbdc   : > { %6278 = vmatpush.bf16.msrb.mxu3 %v8501_v20  ;;  %6291 = vmatpush.bf16.msrb.mxu0 %v8505_v14  ;;  %v6385_v51 = vadd.f32 %v12984_v12, %v6373_v31  ;;  %v9690_v31 = vld [vmem:[%s13252_s11 + $0xe8] sm:$0xff] }
 0xbdd   : > { %v5763_v35 = vpop.f32.mrf.mxu3  ;;  %6304 = vmatpush.bf16.msrb.mxu1 %v8509_v40  ;;  %6317 = vmatpush.bf16.msrb.mxu2 %v8513_v1 }
 0xbde   : > { %v5802_v21 = vpop.f32.mrf.mxu2  ;;  %v6395_v48 = vld [vmem:[#allocation1 + $0x5] ss:$9 sm:$0xff] }
 0xbdf   : > { %v5826_v36 = vpop.f32.mrf.mxu0  ;;  %v6397_v10 = vadd.f32 %v6395_v48, %v6385_v51 }
 0xbe0   : > { %6403 = vst [vmem:[#allocation1 + $0x9] sm:$0xff] %v5826_v36  ;;  %v5839_v27 = vpop.f32.mrf.mxu1  ;;  %6279 = vmatpush.bf16.msrb.mxu3 %v8245_v25  ;;  %6292 = vmatpush.bf16.msrb.mxu0 %v8249_v38 }
 0xbe1   : > { %6404 = vst [vmem:[#allocation1 + $0x12] sm:$0xff] %v5839_v27  ;;  %6305 = vmatpush.bf16.msrb.mxu1 %v8253_v28  ;;  %6318 = vmatpush.bf16.msrb.mxu2 %v8257_v52 }
 0xbe2   : > { %9082 = vmatmul.msk.bf16.vlgmr.msra.gmra.mxu3 %vm3339_vm5, %v11619_v55  ;;  %9083 = vmatmul.msk.bf16.vlgmr.msra.gmra.mxu0 %vm3339_vm5, %v11619_v55 }
 0xbe3   : > { %9084 = vmatmul.msk.bf16.vlgmr.msra.gmra.mxu1 %vm3339_vm5, %v11619_v55  ;;  %9085 = vmatmul.msk.bf16.vlgmr.msra.gmra.mxu2 %vm3339_vm5, %v11619_v55 }
 0xbe5   : > { %v5813_v18 = vpop.f32.mrf.mxu3 }
 0xbe6   : > { %6402 = vst [vmem:[#allocation1] sm:$0xff] %v5813_v18  ;;  %v5852_v23 = vpop.f32.mrf.mxu2 }
 0xbe7   : > { %6405 = vst [vmem:[#allocation1 + $0x1b] sm:$0xff] %v5852_v23  ;;  %v5828_v58 = vpop.f32.mrf.mxu0 }
 0xbe8   : > { %v5841_v26 = vpop.f32.mrf.mxu1 }
 0xbed   : > { %v5815_v0 = vpop.f32.mrf.mxu3 }
 0xbee   : > { %v5854_v5 = vpop.f32.mrf.mxu2  ;;  %v6407_v29 = vld [vmem:[#allocation1 + $0x6] ss:$9 sm:$0xff] }
 0xbef   : > { %v5878_v30 = vpop.f32.mrf.mxu0  ;;  %v6409_v39 = vadd.f32 %v6407_v29, %v6397_v10 }
 0xbf0   : > { %6415 = vst [vmem:[#allocation1 + $0x9] sm:$0xff] %v5878_v30  ;;  %v5891_v61 = vpop.f32.mrf.mxu1 }
 0xbf1   : > { %6416 = vst [vmem:[#allocation1 + $0x12] sm:$0xff] %v5891_v61 }
 0xbf2   : > { %9086 = vmatmul.msk.bf16.vlgmr.msrb.gmra.mxu3 %vm3339_vm5, %v11619_v55  ;;  %9087 = vmatmul.msk.bf16.vlgmr.msrb.gmra.mxu0 %vm3339_vm5, %v11619_v55 }
 0xbf3   : > { %9088 = vmatmul.msk.bf16.vlgmr.msrb.gmra.mxu1 %vm3339_vm5, %v11619_v55  ;;  %9089 = vmatmul.msk.bf16.vlgmr.msrb.gmra.mxu2 %vm3339_vm5, %v11619_v55 }
 0xbf5   : > { %v5865_v7 = vpop.f32.mrf.mxu3 }
 0xbf6   : > { %6414 = vst [vmem:[#allocation1] sm:$0xff] %v5865_v7  ;;  %v5904_v3 = vpop.f32.mrf.mxu2  ;;  %v9668_v7 = vld [vmem:[%s13252_s11 + $0x38] sm:$0xff] }
 0xbf7   : > { %6417 = vst [vmem:[#allocation1 + $0x1b] sm:$0xff] %v5904_v3  ;;  %v5880_v19 = vpop.f32.mrf.mxu0  ;;  %v9676_v3 = vld [vmem:[%s13252_s11 + $0x78] sm:$0xff]  ;;  %6788 = vmatpush.bf16.msra.mxu3 %v9668_v7 }
 0xbf8   : > { %v5893_v62 = vpop.f32.mrf.mxu1  ;;  %v9684_v19 = vld [vmem:[%s13252_s11 + $0xb8] sm:$0xff]  ;;  %6801 = vmatpush.bf16.msra.mxu0 %v9676_v3 }
 0xbf9   : > { %6814 = vmatpush.bf16.msra.mxu1 %v9684_v19 }
 0xbfc   : > { %6802 = vmatpush.bf16.msra.mxu0 %v9675_v11 }
 0xbfd   : > { %v5867_v4 = vpop.f32.mrf.mxu3  ;;  %6815 = vmatpush.bf16.msra.mxu1 %v9683_v50 }
 0xbfe   : > { %v5906_v24 = vpop.f32.mrf.mxu2  ;;  %v6419_v32 = vld [vmem:[#allocation1 + $0x7] ss:$9 sm:$0xff] }
 0xbff   : > { %v5930_v17 = vpop.f32.mrf.mxu0  ;;  %v6421_v53 = vadd.f32 %v6419_v32, %v6409_v39  ;;  %v9692_v4 = vld [vmem:[%s13252_s11 + $0xf8] sm:$0xff]  ;;  %v9665_v32 = vld [vmem:[%s13252_s11 + $0x20] sm:$0xff] }
 0xc00   : > { %v5943_v8 = vpop.f32.mrf.mxu1  ;;  %6827 = vmatpush.bf16.msra.mxu2 %v9692_v4  ;;  %6803 = vmatpush.bf16.msra.mxu0 %v9674_v13  ;;  %v9664_v39 = vld [vmem:[%s13252_s11 + $0x18] sm:$0xff] }
 0xc01   : > { %v9667_v8 = vld [vmem:[%s13252_s11 + $0x30] sm:$0xff] }
 0xc02   : > { %6789 = vmatpush.bf16.msra.mxu3 %v9667_v8 }
 0xc05   : > { %v5917_v59 = vpop.f32.mrf.mxu3 }
 0xc06   : > { %v5956_v55 = vpop.f32.mrf.mxu2  ;;  %v9691_v59 = vld [vmem:[%s13252_s11 + $0xf0] sm:$0xff] }
 0xc07   : > { %v5931_v41 = vpop.f32.mrf.mxu0  ;;  %6828 = vmatpush.bf16.msra.mxu2 %v9691_v59  ;;  %v9666_v55 = vld [vmem:[%s13252_s11 + $0x28] sm:$0xff] }
 0xc08   : > { %v5944_v9 = vpop.f32.mrf.mxu1  ;;  %v6426_v15 = vrot.slane %v5931_v41, 7  ;;  %v9682_v41 = vld [vmem:[%s13252_s11 + $0xa8] sm:$0xff]  ;;  %6790 = vmatpush.bf16.msra.mxu3 %v9666_v55 }
 0xc09   : > { %v6427_v33 = vrot.slane %v5944_v9, 6  ;;  %6816 = vmatpush.bf16.msra.mxu1 %v9682_v41 }
 0xc0b   : > { %6829 = vmatpush.bf16.msra.mxu2 %v9690_v31  ;;  %v6595_v31 = vld [vmem:[%s13253_s12] sm:$0x1] }
 0xc0c   : > { %6791 = vmatpush.bf16.msra.mxu3 %v9665_v32 }
 0xc0d   : > { %v5918_v37 = vpop.f32.mrf.mxu3 }
 0xc0e   : > { %v6429_v43 = vsel %vm996_vm0, %v5918_v37, %v6426_v15  ;;  %v5957_v60 = vpop.f32.mrf.mxu2 }
 0xc0f   : > { %v6428_v63 = vrot.slane %v5957_v60, 5  ;;  %v5982_v49 = vpop.f32.mrf.mxu0  ;;  %v9681_v60 = vld [vmem:[%s13252_s11 + $0xa0] sm:$0xff] }
 0xc10   : > { %v5995_v45 = vpop.f32.mrf.mxu1  ;;  %6817 = vmatpush.bf16.msra.mxu1 %v9681_v60  ;;  %v9680_v49 = vld [vmem:[%s13252_s11 + $0x98] sm:$0xff]  ;;  %6792 = vmatpush.bf16.msra.mxu3 %v9664_v39 }
 0xc11   : > { %v6430_v22 = vsel %vm6333_vm6, %v6427_v33, %v6428_v63  ;;  %v9689_v33 = vld [vmem:[%s13252_s11 + $0xe0] sm:$0xff]  ;;  %v9672_v63 = vld [vmem:[%s13252_s11 + $0x58] sm:$0xff] }
 0xc12   : > { %v6431_v47 = vsel %vm3253_vm3, %v6429_v43, %v6430_v22  ;;  %v9673_v43 = vld [vmem:[%s13252_s11 + $0x60] sm:$0xff]  ;;  %6830 = vmatpush.bf16.msra.mxu2 %v9689_v33 }
 0xc13   : > { %v13093_v54 = vadd.f32 %v6431_v47, %v6421_v53  ;;  %6804 = vmatpush.bf16.msra.mxu0 %v9673_v43  ;;  %v9688_v53 = vld [vmem:[%s13252_s11 + $0xd8] sm:$0xff]  ;;  %v9663_v47 = vld [vmem:[%s13252_s11 + $0x10] sm:$0xff] }
 0xc14   : > { %6818 = vmatpush.bf16.msra.mxu1 %v9680_v49  ;;  %6793 = vmatpush.bf16.msra.mxu3 %v9663_v47 }
 0xc15   : > { %v5969_v12 = vpop.f32.mrf.mxu3 }
 0xc16   : > { %v6008_v20 = vpop.f32.mrf.mxu2  ;;  %v9671_v12 = vld [vmem:[%s13252_s11 + $0x50] sm:$0xff]  ;;  %6831 = vmatpush.bf16.msra.mxu2 %v9688_v53 }
 0xc17   : > { %v5983_v14 = vpop.f32.mrf.mxu0  ;;  %6805 = vmatpush.bf16.msra.mxu0 %v9672_v63 }
 0xc18   : > { %6439 = vst [vmem:[#allocation1 + $0x9] sm:$0xff] %v5983_v14  ;;  %v5996_v16 = vpop.f32.mrf.mxu1  ;;  %v9679_v14 = vld [vmem:[%s13252_s11 + $0x90] sm:$0xff] }
 0xc19   : > { %6440 = vst [vmem:[#allocation1 + $0x12] sm:$0xff] %v5996_v16  ;;  %v9687_v16 = vld [vmem:[%s13252_s11 + $0xd0] sm:$0xff]  ;;  %6819 = vmatpush.bf16.msra.mxu1 %v9679_v14 }
 0xc1a   : > { %6832 = vmatpush.bf16.msra.mxu2 %v9687_v16 }
 0xc1b   : > { %6806 = vmatpush.bf16.msra.mxu0 %v9671_v12 }
 0xc1d   : > { %v5970_v2 = vpop.f32.mrf.mxu3 }
 0xc1e   : > { %6438 = vst [vmem:[#allocation1] sm:$0xff] %v5970_v2  ;;  %v6009_v40 = vpop.f32.mrf.mxu2 }
 0xc1f   : > { %6441 = vst [vmem:[#allocation1 + $0x1b] sm:$0xff] %v6009_v40  ;;  %v6034_v1 = vpop.f32.mrf.mxu0  ;;  %v9662_v40 = vld [vmem:[%s13252_s11 + $0x8] sm:$0xff] }
 0xc20   : > { %v6047_v44 = vpop.f32.mrf.mxu1  ;;  %v9670_v1 = vld [vmem:[%s13252_s11 + $0x48] sm:$0xff]  ;;  %6794 = vmatpush.bf16.msra.mxu3 %v9662_v40 }
 0xc21   : > { %v9678_v44 = vld [vmem:[%s13252_s11 + $0x88] sm:$0xff]  ;;  %6807 = vmatpush.bf16.msra.mxu0 %v9670_v1 }
 0xc22   : > { %6820 = vmatpush.bf16.msra.mxu1 %v9678_v44 }
 0xc25   : > { %v6021_v6 = vpop.f32.mrf.mxu3 }
 0xc26   : > { %v6060_v57 = vpop.f32.mrf.mxu2  ;;  %v13095_v34 = vld [vmem:[#allocation1 + $0x1] ss:$9 sm:$0xff] }
 0xc27   : > { %v6035_v56 = vpop.f32.mrf.mxu0  ;;  %v9686_v6 = vld [vmem:[%s13252_s11 + $0xc8] sm:$0xff] }
 0xc28   : > { %6451 = vst [vmem:[#allocation1 + $0x9] sm:$0xff] %v6035_v56  ;;  %v6048_v46 = vpop.f32.mrf.mxu1  ;;  %6833 = vmatpush.bf16.msra.mxu2 %v9686_v6 }
 0xc29   : > { %6452 = vst [vmem:[#allocation1 + $0x12] sm:$0xff] %v6048_v46  ;;  %v9661_v46 = vld [vmem:[%s13252_s11] sm:$0xff] }
 0xc2a   : > { %6795 = vmatpush.bf16.msra.mxu3 %v9661_v46 }
 0xc2d   : > { %v6022_v25 = vpop.f32.mrf.mxu3 }
 0xc2e   : > { %6450 = vst [vmem:[#allocation1] sm:$0xff] %v6022_v25  ;;  %v6061_v38 = vpop.f32.mrf.mxu2  ;;  %v9669_v25 = vld [vmem:[%s13252_s11 + $0x40] sm:$0xff] }
 0xc2f   : > { %6453 = vst [vmem:[#allocation1 + $0x1b] sm:$0xff] %v6061_v38  ;;  %v6086_v35 = vpop.f32.mrf.mxu0  ;;  %6808 = vmatpush.bf16.msra.mxu0 %v9669_v25 }
 0xc30   : > { %v6099_v28 = vpop.f32.mrf.mxu1  ;;  %v9677_v35 = vld [vmem:[%s13252_s11 + $0x80] sm:$0xff] }
 0xc31   : > { %v9685_v28 = vld [vmem:[%s13252_s11 + $0xc0] sm:$0xff]  ;;  %6821 = vmatpush.bf16.msra.mxu1 %v9677_v35 }
 0xc32   : > { %6834 = vmatpush.bf16.msra.mxu2 %v9685_v28 }
 0xc35   : > { %v6073_v52 = vpop.f32.mrf.mxu3 }
 0xc36   : > { %v6112_v21 = vpop.f32.mrf.mxu2  ;;  %v13097_v48 = vld [vmem:[#allocation1 + $0x2] ss:$9 sm:$0xff] }
 0xc37   : > { %v6087_v36 = vpop.f32.mrf.mxu0 }
 0xc38   : > { %6463 = vst [vmem:[#allocation1 + $0x9] sm:$0xff] %v6087_v36  ;;  %v6100_v27 = vpop.f32.mrf.mxu1 }
 0xc39   : > { %6464 = vst [vmem:[#allocation1 + $0x12] sm:$0xff] %v6100_v27 }
 0xc3d   : > { %v6074_v18 = vpop.f32.mrf.mxu3 }
 0xc3e   : > { %6462 = vst [vmem:[#allocation1] sm:$0xff] %v6074_v18  ;;  %v6113_v23 = vpop.f32.mrf.mxu2 }
 0xc3f   : > { %6465 = vst [vmem:[#allocation1 + $0x1b] sm:$0xff] %v6113_v23  ;;  %v6138_v58 = vpop.f32.mrf.mxu0 }
 0xc40   : > { %v6151_v26 = vpop.f32.mrf.mxu1 }
 0xc45   : > { %v6125_v0 = vpop.f32.mrf.mxu3 }
 0xc46   : > { %v6164_v5 = vpop.f32.mrf.mxu2  ;;  %v13099_v29 = vld [vmem:[#allocation1 + $0x3] ss:$9 sm:$0xff] }
 0xc47   : > { %v6139_v30 = vpop.f32.mrf.mxu0 }
 0xc48   : > { %6475 = vst [vmem:[#allocation1 + $0x9] sm:$0xff] %v6139_v30  ;;  %v6152_v61 = vpop.f32.mrf.mxu1 }
 0xc49   : > { %6476 = vst [vmem:[#allocation1 + $0x12] sm:$0xff] %v6152_v61  ;;  %v6445_v61 = vadd.f32 %v13095_v34, %v13093_v54 }
 0xc4b   : > { %v6457_v3 = vadd.f32 %v13097_v48, %v6445_v61  ;;  %v9807_v48 = vmov 6  }
 0xc4c   : > { %9736 = vset.pattern.permute.xlu0 %v9807_v48 }
 0xc4d   : > { %v6126_v62 = vpop.f32.mrf.mxu3 }
 0xc4e   : > { %6474 = vst [vmem:[#allocation1] sm:$0xff] %v6126_v62  ;;  %v6165_v24 = vpop.f32.mrf.mxu2  ;;  %v6469_v62 = vadd.f32 %v13099_v29, %v6457_v3 }
 0xc4f   : > { %6477 = vst [vmem:[#allocation1 + $0x1b] sm:$0xff] %v6165_v24  ;;  %v6190_v17 = vpop.f32.mrf.mxu0 }
 0xc50   : > { %v6203_v42 = vpop.f32.mrf.mxu1 }
 0xc55   : > { %v6177_v9 = vpop.f32.mrf.mxu3 }
 0xc56   : > { %v6216_v51 = vpop.f32.mrf.mxu2  ;;  %v13137_v15 = vld [vmem:[#allocation1 + $0x4] ss:$9 sm:$0xff] }
 0xc57   : > { %v6191_v37 = vpop.f32.mrf.mxu0  ;;  %v6481_v4 = vadd.f32 %v13137_v15, %v6469_v62 }
 0xc58   : > { %6487 = vst [vmem:[#allocation1 + $0x9] sm:$0xff] %v6191_v37  ;;  %v6204_v10 = vpop.f32.mrf.mxu1 }
 0xc59   : > { %6488 = vst [vmem:[#allocation1 + $0x12] sm:$0xff] %v6204_v10 }
 0xc5d   : > { %v6178_v45 = vpop.f32.mrf.mxu3 }
 0xc5e   : > { %6486 = vst [vmem:[#allocation1] sm:$0xff] %v6178_v45  ;;  %v6217_v22 = vpop.f32.mrf.mxu2  ;;  %v9808_v45 = vmov 6.0  }
 0xc5f   : > { %6489 = vst [vmem:[#allocation1 + $0x1b] sm:$0xff] %v6217_v22  ;;  %v6242_v20 = vpop.f32.mrf.mxu0  ;;  %9740 = vrcp.f32 %v9808_v45 }
 0xc60   : > { %v6255_v2 = vpop.f32.mrf.mxu1 }
 0xc65   : > { %v6229_v57 = vpop.f32.mrf.mxu3  ;;  %v9741_v53 = vpop.eup %9740 }
 0xc66   : > { %v6268_v56 = vpop.f32.mrf.mxu2  ;;  %v6491_v52 = vld [vmem:[#allocation1 + $0x5] ss:$9 sm:$0xff]  ;;  %v6851_v22 = vmul.f32 6.0, %v9741_v53  ;;  %vm6855_vm8 = vweird.f32 %v9741_v53 }
 0xc67   : > { %v6243_v38 = vpop.f32.mrf.mxu0  ;;  %v6493_v24 = vadd.f32 %v6491_v52, %v6481_v4 }
 0xc68   : > { %v6256_v21 = vpop.f32.mrf.mxu1  ;;  %6499 = vst [vmem:[#allocation1 + $0x9] sm:$0xff] %v6243_v38  ;;  %v6852_v47 = vsub.f32 1.0, %v6851_v22 }
 0xc69   : > { %6500 = vst [vmem:[#allocation1 + $0x12] sm:$0xff] %v6256_v21 }
 0xc6a   : > { %v6853_v12 = vmul.f32 %v9741_v53, %v6852_v47 }
 0xc6c   : > { %v6854_v14 = vadd.f32 %v9741_v53, %v6853_v12 }
 0xc6d   : > { %v6230_v36 = vpop.f32.mrf.mxu3 }
 0xc6e   : > { %v6269_v27 = vpop.f32.mrf.mxu2  ;;  %6498 = vst [vmem:[#allocation1] sm:$0xff] %v6230_v36  ;;  %v6856_v16 = vsel %vm6855_vm8, %v9741_v53, %v6854_v14 }
 0xc6f   : > { %v6294_v18 = vpop.f32.mrf.mxu0  ;;  %6501 = vst [vmem:[#allocation1 + $0x1b] sm:$0xff] %v6269_v27 }
 0xc70   : > { %v6307_v23 = vpop.f32.mrf.mxu1 }
 0xc75   : > { %v6281_v58 = vpop.f32.mrf.mxu3 }
 0xc76   : > { %v6320_v26 = vpop.f32.mrf.mxu2  ;;  %v6503_v5 = vld [vmem:[#allocation1 + $0x6] ss:$9 sm:$0xff] }
 0xc77   : > { %v6295_v0 = vpop.f32.mrf.mxu0  ;;  %v6505_v17 = vadd.f32 %v6503_v5, %v6493_v24 }
 0xc78   : > { %v6308_v30 = vpop.f32.mrf.mxu1  ;;  %6511 = vst [vmem:[#allocation1 + $0x9] sm:$0xff] %v6295_v0 }
 0xc79   : > { %6512 = vst [vmem:[#allocation1 + $0x12] sm:$0xff] %v6308_v30 }
 0xc7d   : > { %v6282_v7 = vpop.f32.mrf.mxu3 }
 0xc7e   : > { %v6321_v19 = vpop.f32.mrf.mxu2  ;;  %6510 = vst [vmem:[#allocation1] sm:$0xff] %v6282_v7 }
 0xc7f   : > { %6513 = vst [vmem:[#allocation1 + $0x1b] sm:$0xff] %v6321_v19 }
 0xc86   : > { %v6515_v42 = vld [vmem:[#allocation1 + $0x7] ss:$9 sm:$0xff] }
 0xc87   : > { %v6517_v8 = vadd.f32 %v6515_v42, %v6505_v17 }
 0xc89   : > { %v6519_v11 = vperm.slane %v6517_v8, 0  ;;  %v6520_v50 = vperm.slane %v6517_v8, 1  ;;  %v6521_v59 = vperm.slane %v6517_v8, 2  ;;  %v6522_v55 = vperm.slane %v6517_v8, 3 }
 0xc8b   : > { %v6527_v13 = vpack.c.bf16 %v6519_v11, %v6519_v11  ;;  %v6528_v54 = vpack.c.bf16 %v6520_v50, %v6520_v50  ;;  %v6529_v34 = vpack.c.bf16 %v6521_v59, %v6521_v59  ;;  %v6530_v41 = vpack.c.bf16 %v6522_v55, %v6522_v55 }
 0xc8d   : > { %6796 = vmatmul.bf16.vlgmr.msra.gmra.mxu3 %v6527_v13  ;;  %6809 = vmatmul.bf16.vlgmr.msra.gmra.mxu0 %v6528_v54 }
 0xc8e   : > { %6822 = vmatmul.bf16.vlgmr.msra.gmra.mxu1 %v6529_v34  ;;  %6835 = vmatmul.bf16.vlgmr.msra.gmra.mxu2 %v6530_v41 }
 0xd0a   : > { %v6810_v29 = vpop.f32.mrf.mxu0 }
 0xd0b   : > { %v6823_v9 = vpop.f32.mrf.mxu1 }
 0xd10   : > { %v6797_v51 = vpop.f32.mrf.mxu3 }
 0xd11   : > { %v6798_v15 = vadd.f32 %v6797_v51, %v6595_v31  ;;  %v6836_v37 = vpop.f32.mrf.mxu2 }
 0xd12   : > { %v6812_v10 = vpop.f32.mrf.mxu0 }
 0xd13   : > { %v6811_v32 = vadd.f32 %v6810_v29, %v6798_v15  ;;  %v6825_v43 = vpop.f32.mrf.mxu1 }
 0xd15   : > { %v6824_v60 = vadd.f32 %v6823_v9, %v6811_v32 }
 0xd17   : > { %v6837_v33 = vadd.f32 %v6836_v37, %v6824_v60 }
 0xd18   : > { %v6799_v39 = vpop.f32.mrf.mxu3 }
 0xd19   : > { %v6838_v63 = vpop.f32.mrf.mxu2  ;;  %v6847_v49 = vsel %vm6846_vm7, %v6837_v33, 0.0 }
 0xd1a   : > { %6848 = vadd.xlane.f32.xlu0 %v6847_v49 }
 0xd2e   : > { %6842 = vperm.xlu0 %9736, %v6837_v33  }
 0xd8d   : > { %v6849_v20 = vpop.xlane.xlu0 %6848 }
 0xd8e   : > { %v6857_v40 = vmul.f32 %v6856_v16, %v6849_v20 }
 0xda0   : > { %v6843_v2 = vpop.permute.xlu0 %6842 }
 0xda1   : > { %v6845_v1 = vadd.f32 %v6843_v2, %v6837_v33 }
 0xda3   : > { %v6858_v44 = vsub.f32 %v6845_v1, %v6857_v40 }
 0xda5   : > { %6859 = vst.msk [vmem:[%s432_s23] sm:$0x1] %vm6846_vm7, %v6858_v44 }
 0xda6   : > { %9769 = shalt.err (!%p9766_p3)
}
 0xda7   : > { %9694 = dma.vmem_to_hbm [thread:$0]  (%p9917_p5), %s6872_s21, 16, %s6874_s27, %s6861_s25  }
 0xda8 PF: > { %s13267_s16 = sld [smem:[#allocation5_spill]]  ;;  %p9700_p4 = scmp.ge.s32.totalorder %s9804_s28, 2 }
 0xdaa   : > { %p9697_p7 = pnand %p9700_p4, %p9921_p6 }
 0xdac   : > { %p9698_p8 = pneg %p9697_p7 }
 0xdae   : > { %s6885_s22 = sand.u32 1, %s13267_s16  }
 0xdaf   : > { %s6886_s23 = scalar_lea.sflag [#allocation3], %s6885_s22 }
 0xdb0   : > { %9787 = dma.done.wait (%p9698_p8), %s6886_s23, 16  }
 0xdb1   : > { %9789 = vsyncadd (%p9698_p8), %s6886_s23, 4294967280  ;;  %s13269_s28 = sld [smem:[#allocation7_spill]]  ;;  %s13272_s25 = smov %s9796_s26 }
 0xdb2   : > { %s13270_s14 = sld [smem:[#allocation6_spill]] }
 0xdb3   : > { %s13271_s27 = sld [smem:[#allocation8_spill]] }
 0xdb7   : > { %p23_p9 = scmp.ge.s32.totalorder %s13269_s28, 4  }
 0xdb8   : > { %s13273_s26 = smov %s13270_s14 }
 0xdb9   :  { %25 = sbr.rel (!%p23_p9) target bundleno = 3 (0x3), region = 167 }
 0xdbe   :  { %6891 = vsyncpa [#allocation3], 1 }
 0xdbf   :  { %6893 = vsyncpa [#allocation3 + $0x1], 1 }

</bundles_post_ra>
